<compile_context>
chip_gen: v7x
topology: tpu7x:2x2x1
jax: 0.10.0
libtpu: 0.0.40
codegen_flags: <defaults>
</compile_context>

<pallas_src>
import math

import jax
import jax.numpy as jnp
from jax.experimental import pallas as pl
from jax.experimental.pallas import tpu as pltpu

CONDITION = 10
CHANNELS = 1
IMAGE_SIZE = 28
IMG_FLAT = CHANNELS * IMAGE_SIZE * IMAGE_SIZE        # 784
H1, H2, H3 = 512, 256, 128
TB_MAX = 1024                                        # batch-tile upper bound (review: 512-1024)
_SUB = 8                                             # sublane granularity


def _leaky_relu(x, slope=0.2):
    return jnp.where(x > 0, x, slope * x)


def _round_up(n, m):
    return (n + m - 1) // m * m


def _choose_tile(B):
    """Pick (tb, b_pad) batch tile rows / padded batch.

    * no wrapper-side pad whenever the (8-rounded) batch is tile-friendly,
    * >= 2 grid steps once tiles are >= 128 rows (keeps both v7x TCs busy),
    * tb is a multiple of 128 whenever the grid has > 1 step (lane-dense out block),
    * tb as large as possible (<= TB_MAX) to amortize per-grid-step overhead.
    """
    b8 = _round_up(B, _SUB)
    if b8 <= TB_MAX:
        if b8 % 256 == 0:
            return b8 // 2, b8                       # 2 grid steps, 128-multiple tiles
        return b8, b8                                # single full-extent tile, no pad
    for tb in range(TB_MAX, 127, -128):              # largest 128-multiple divisor
        if b8 % tb == 0:
            return tb, b8
    return 256, _round_up(B, 256)                    # ragged fallback (small pad)


def _disc_mlp_kernel(img_ref, lab_ref, embp_ref, w1_ref, b1_ref,
                     w2_ref, b2_ref, w3_ref, b3_ref, w4_ref, b4_ref, o_ref):
    # One batch tile per grid step.  Weights/biases have constant index maps ->
    # fetched once, VMEM-resident across all grid steps.
    x = img_ref[...].astype(jnp.bfloat16)            # (TB, 784) bf16 (no-op if producer emits bf16)
    labels = lab_ref[...]                            # (TB, 1) int32
    tb = x.shape[0]

    # Fused label embedding: one_hot(labels) @ (emb_table @ W1[784:794]) is the
    # W1-projection of label_emb(labels); no concat / zero-pad needed.
    classes = jax.lax.broadcasted_iota(jnp.int32, (tb, CONDITION), 1)
    one_hot = (labels == classes).astype(jnp.bfloat16)          # (TB, 10)

    # Layer 1: 794 -> 512 (image part + label part, mathematically identical).
    h = jnp.dot(x, w1_ref[...], preferred_element_type=jnp.float32)
    h = h + jnp.dot(one_hot, embp_ref[...], preferred_element_type=jnp.float32)
    h = _leaky_relu(h + b1_ref[...])                            # (TB, 512) f32 on VPU

    # Layer 2: 512 -> 256.  Dropout(0.4) == identity (eval mode).
    h = jnp.dot(h.astype(jnp.bfloat16), w2_ref[...],
                preferred_element_type=jnp.float32)
    h = _leaky_relu(h + b2_ref[...])                            # (TB, 256)

    # Layer 3: 256 -> 128.  Dropout(0.4) == identity (eval mode).
    h = jnp.dot(h.astype(jnp.bfloat16), w3_ref[...],
                preferred_element_type=jnp.float32)
    h = _leaky_relu(h + b3_ref[...])                            # (TB, 128)

    # Layer 4: 128 -> 1, emitted lane-major: transpose (XLU has slack), multiply
    # by the w4 column and reduce over sublanes -> dense (1, TB) output row
    # (unmasked stores + contiguous HBM writeback instead of a (TB,1) slab).
    h_t = jnp.transpose(h)                                      # (128, TB) f32
    out = jnp.sum(h_t * w4_ref[...], axis=0, keepdims=True)     # (1, TB) f32
    o_ref[...] = out + b4_ref[...]                              # (1, TB) f32


def init_params(key):
    """Deterministic parameter init mirroring PyTorch default shapes/inits (f32)."""
    ks = jax.random.split(key, 9)

    def linear(kw, kb, fan_in, fan_out):
        bound = 1.0 / math.sqrt(fan_in)
        w = jax.random.uniform(kw, (fan_in, fan_out), jnp.float32, -bound, bound)
        b = jax.random.uniform(kb, (1, fan_out), jnp.float32, -bound, bound)
        return w, b

    emb = jax.random.normal(ks[0], (CONDITION, CONDITION), jnp.float32)  # nn.Embedding default N(0,1)
    w1, b1 = linear(ks[1], ks[2], CONDITION + IMG_FLAT, H1)
    w2, b2 = linear(ks[3], ks[4], H1, H2)
    w3, b3 = linear(ks[5], ks[6], H2, H3)
    w4, b4 = linear(ks[7], ks[8], H3, 1)
    return dict(emb=emb, w1=w1, b1=b1, w2=w2, b2=b2, w3=w3, b3=b3, w4=w4, b4=b4)


def pack_params(params):
    """One-time repack: bf16 MXU weights, label embedding pre-projected through
    W1's last 10 input rows, final layer as an f32 column for the VPU/XLU path."""
    w1 = params["w1"]                                              # (794, 512) f32
    return dict(
        w1_img=w1[:IMG_FLAT].astype(jnp.bfloat16),                 # (784, 512) bf16
        emb_proj=(params["emb"] @ w1[IMG_FLAT:]).astype(jnp.bfloat16),  # (10, 512) bf16
        b1=params["b1"],                                           # (1, 512) f32
        w2=params["w2"].astype(jnp.bfloat16),                      # (512, 256) bf16
        b2=params["b2"],                                           # (1, 256) f32
        w3=params["w3"].astype(jnp.bfloat16),                      # (256, 128) bf16
        b3=params["b3"],                                           # (1, 128) f32
        w4_col=params["w4"],                                       # (128, 1) f32
        b4=params["b4"],                                           # (1, 1) f32
    )


@jax.jit
def discriminator_forward(packed, image, labels):
    """image: (B,1,28,28) bf16 (preferred) or f32; labels: (B,) int -> (B,1) f32 (eval)."""
    B = image.shape[0]
    tb, b_pad = _choose_tile(B)

    img_flat = image.reshape(B, IMG_FLAT)            # dtype passed through (no wrapper astype)
    lab2d = labels.reshape(B, 1).astype(jnp.int32)
    if b_pad != B:                                   # rare: sublane / ragged remainder only
        img_flat = jnp.pad(img_flat, ((0, b_pad - B), (0, 0)))
        lab2d = jnp.pad(lab2d, ((0, b_pad - B), (0, 0)))

    resident = lambda i: (0, 0)                      # weights/biases: DMA'd once, VMEM-resident
    flops = 2 * b_pad * (IMG_FLAT * H1 + CONDITION * H1 + H1 * H2 + H2 * H3 + H3)
    bytes_accessed = (b_pad * (IMG_FLAT * img_flat.dtype.itemsize + 4 + 4)
                      + 2 * (IMG_FLAT * H1 + CONDITION * H1 + H1 * H2 + H2 * H3)
                      + 4 * (H1 + H2 + H3 + H3 + 1))

    out = pl.pallas_call(
        _disc_mlp_kernel,
        out_shape=jax.ShapeDtypeStruct((1, b_pad), jnp.float32),
        grid=(b_pad // tb,),
        in_specs=[
            pl.BlockSpec((tb, IMG_FLAT), lambda i: (i, 0)),    # image tile (bf16/f32)
            pl.BlockSpec((tb, 1), lambda i: (i, 0)),           # labels tile (int32)
            pl.BlockSpec((CONDITION, H1), resident),           # emb_proj  (bf16)
            pl.BlockSpec((IMG_FLAT, H1), resident),            # w1_img    (bf16)
            pl.BlockSpec((1, H1), resident),                   # b1        (f32)
            pl.BlockSpec((H1, H2), resident),                  # w2        (bf16)
            pl.BlockSpec((1, H2), resident),                   # b2        (f32)
            pl.BlockSpec((H2, H3), resident),                  # w3        (bf16)
            pl.BlockSpec((1, H3), resident),                   # b3        (f32)
            pl.BlockSpec((H3, 1), resident),                   # w4 column (f32)
            pl.BlockSpec((1, 1), resident),                    # b4        (f32)
        ],
        out_specs=pl.BlockSpec((1, tb), lambda i: (0, i)),     # lane-dense output row
        compiler_params=pltpu.CompilerParams(
            dimension_semantics=("parallel",),
            vmem_limit_bytes=32 * 1024 * 1024,
        ),
        cost_estimate=pl.CostEstimate(
            flops=flops, transcendentals=0, bytes_accessed=bytes_accessed),
    )(img_flat, lab2d,
      packed["emb_proj"], packed["w1_img"], packed["b1"],
      packed["w2"], packed["b2"], packed["w3"], packed["b3"],
      packed["w4_col"], packed["b4"])

    return out[0, :B].reshape(B, 1)                  # (B, 1)


def _reference_forward(params, image, labels):
    """Pure-JAX f32 reference of the PyTorch forward (eval mode)."""
    B = image.shape[0]
    d_in = jnp.concatenate(
        [image.reshape(B, -1), jnp.take(params["emb"], labels, axis=0)], axis=-1)
    h = _leaky_relu(d_in @ params["w1"] + params["b1"])
    h = _leaky_relu(h @ params["w2"] + params["b2"])
    h = _leaky_relu(h @ params["w3"] + params["b3"])
    return h @ params["w4"] + params["b4"]


if __name__ == "__main__":
    key = jax.random.PRNGKey(0)
    k_param, k_img, k_lab = jax.random.split(key, 3)

    # Typical GAN mini-batch; exercises the 2-grid-step path (128-row tiles, no padding).
    B = 256
    params = init_params(k_param)
    packed = pack_params(params)
    # Producer emits bf16 images (halves the dominant HBM read on v6e/v7x);
    # the kernel also accepts f32 and casts in-kernel.
    image = jax.random.normal(k_img, (B, CHANNELS, IMAGE_SIZE, IMAGE_SIZE), jnp.bfloat16)
    labels = jax.random.randint(k_lab, (B,), 0, CONDITION, jnp.int32)

    validity = discriminator_forward(packed, image, labels)
    validity = jax.block_until_ready(validity)

    ref = _reference_forward(params, image.astype(jnp.float32), labels)
    assert validity.shape == (B, 1)
    # bf16 image + bf16 MXU weights with f32 accumulation vs. pure-f32 reference.
    assert jnp.allclose(validity, ref, atol=5e-2, rtol=5e-2), (validity, ref)

    print("KERNEL_OK")
</pallas_src>

<mosaic_0001>
module attributes {stable_mosaic.version = 11 : i64} {
  func.func @_disc_mlp_kernel(%arg0: i32, %arg1: memref<128x784xbf16, #tpu.memory_space<vmem>>, %arg2: memref<128x1xi32, #tpu.memory_space<vmem>>, %arg3: memref<10x512xbf16, #tpu.memory_space<vmem>>, %arg4: memref<784x512xbf16, #tpu.memory_space<vmem>>, %arg5: memref<1x512xf32, #tpu.memory_space<vmem>>, %arg6: memref<512x256xbf16, #tpu.memory_space<vmem>>, %arg7: memref<1x256xf32, #tpu.memory_space<vmem>>, %arg8: memref<256x128xbf16, #tpu.memory_space<vmem>>, %arg9: memref<1x128xf32, #tpu.memory_space<vmem>>, %arg10: memref<128x1xf32, #tpu.memory_space<vmem>>, %arg11: memref<1x1xf32, #tpu.memory_space<vmem>>, %arg12: memref<1x128xf32, #tpu.memory_space<vmem>>) attributes {dimension_semantics = [#tpu.dimension_semantics<parallel>], iteration_bounds = array<i64: 2>, scalar_prefetch = 0 : i64, scratch_operands = 0 : i64, tpu.core_type = #tpu.core_type<tc>, window_params = [{transform_indices = @transform_0, window_bounds = array<i64: 128, 784>}, {transform_indices = @transform_1, window_bounds = array<i64: 128, 1>}, {pipeline_mode = #tpu.pipeline_mode<synchronous>, transform_indices = @transform_2, window_bounds = array<i64: 10, 512>}, {pipeline_mode = #tpu.pipeline_mode<synchronous>, transform_indices = @transform_3, window_bounds = array<i64: 784, 512>}, {pipeline_mode = #tpu.pipeline_mode<synchronous>, transform_indices = @transform_4, window_bounds = array<i64: 1, 512>}, {pipeline_mode = #tpu.pipeline_mode<synchronous>, transform_indices = @transform_5, window_bounds = array<i64: 512, 256>}, {pipeline_mode = #tpu.pipeline_mode<synchronous>, transform_indices = @transform_6, window_bounds = array<i64: 1, 256>}, {pipeline_mode = #tpu.pipeline_mode<synchronous>, transform_indices = @transform_7, window_bounds = array<i64: 256, 128>}, {pipeline_mode = #tpu.pipeline_mode<synchronous>, transform_indices = @transform_8, window_bounds = array<i64: 1, 128>}, {pipeline_mode = #tpu.pipeline_mode<synchronous>, transform_indices = @transform_9, window_bounds = array<i64: 128, 1>}, {pipeline_mode = #tpu.pipeline_mode<synchronous>, transform_indices = @transform_10, window_bounds = array<i64: 1, 1>}, {transform_indices = @transform_11, window_bounds = array<i64: 1, 128>}]} {
    %c0 = arith.constant 0 : index
    %c0_0 = arith.constant 0 : index
    %0 = vector.load %arg1[%c0, %c0_0] : memref<128x784xbf16, #tpu.memory_space<vmem>>, vector<128x784xbf16>
    %c0_1 = arith.constant 0 : index
    %c0_2 = arith.constant 0 : index
    %1 = vector.load %arg2[%c0_1, %c0_2] : memref<128x1xi32, #tpu.memory_space<vmem>>, vector<128x1xi32>
    %2 = tpu.iota {dimensions = array<i32: 1>} : vector<128x10xi32>
    %3 = vector.broadcast %1 : vector<128x1xi32> to vector<128x10xi32>
    %4 = arith.cmpi eq, %3, %2 : vector<128x10xi32>
    %5 = arith.extui %4 : vector<128x10xi1> to vector<128x10xi32>
    %6 = arith.sitofp %5 : vector<128x10xi32> to vector<128x10xf32>
    %7 = arith.truncf %6 : vector<128x10xf32> to vector<128x10xbf16>
    %c0_3 = arith.constant 0 : index
    %c0_4 = arith.constant 0 : index
    %8 = vector.load %arg4[%c0_3, %c0_4] : memref<784x512xbf16, #tpu.memory_space<vmem>>, vector<784x512xbf16>
    %cst = arith.constant dense<0.000000e+00> : vector<128x512xf32>
    %9 = tpu.matmul %0, %8, %cst {dimension_numbers = #tpu.dot_dimension_numbers<[1], [0], [0], [1], [0, 0, 1, 1], [], []>} : vector<128x784xbf16>, vector<784x512xbf16>, vector<128x512xf32> -> vector<128x512xf32>
    %c0_5 = arith.constant 0 : index
    %c0_6 = arith.constant 0 : index
    %10 = vector.load %arg3[%c0_5, %c0_6] : memref<10x512xbf16, #tpu.memory_space<vmem>>, vector<10x512xbf16>
    %cst_7 = arith.constant dense<0.000000e+00> : vector<128x512xf32>
    %11 = tpu.matmul %7, %10, %cst_7 {dimension_numbers = #tpu.dot_dimension_numbers<[1], [0], [0], [1], [0, 0, 1, 1], [], []>} : vector<128x10xbf16>, vector<10x512xbf16>, vector<128x512xf32> -> vector<128x512xf32>
    %12 = arith.addf %9, %11 : vector<128x512xf32>
    %c0_8 = arith.constant 0 : index
    %c0_9 = arith.constant 0 : index
    %13 = vector.load %arg5[%c0_8, %c0_9] : memref<1x512xf32, #tpu.memory_space<vmem>>, vector<1x512xf32>
    %14 = vector.broadcast %13 : vector<1x512xf32> to vector<128x512xf32>
    %15 = arith.addf %12, %14 : vector<128x512xf32>
    %cst_10 = arith.constant 0.000000e+00 : f32
    %16 = vector.broadcast %cst_10 : f32 to vector<128x512xf32>
    %17 = arith.cmpf ogt, %15, %16 : vector<128x512xf32>
    %cst_11 = arith.constant 2.000000e-01 : f32
    %18 = vector.broadcast %cst_11 : f32 to vector<128x512xf32>
    %19 = arith.mulf %18, %15 : vector<128x512xf32>
    %20 = arith.select %17, %15, %19 : vector<128x512xi1>, vector<128x512xf32>
    %21 = arith.truncf %20 : vector<128x512xf32> to vector<128x512xbf16>
    %c0_12 = arith.constant 0 : index
    %c0_13 = arith.constant 0 : index
    %22 = vector.load %arg6[%c0_12, %c0_13] : memref<512x256xbf16, #tpu.memory_space<vmem>>, vector<512x256xbf16>
    %cst_14 = arith.constant dense<0.000000e+00> : vector<128x256xf32>
    %23 = tpu.matmul %21, %22, %cst_14 {dimension_numbers = #tpu.dot_dimension_numbers<[1], [0], [0], [1], [0, 0, 1, 1], [], []>} : vector<128x512xbf16>, vector<512x256xbf16>, vector<128x256xf32> -> vector<128x256xf32>
    %c0_15 = arith.constant 0 : index
    %c0_16 = arith.constant 0 : index
    %24 = vector.load %arg7[%c0_15, %c0_16] : memref<1x256xf32, #tpu.memory_space<vmem>>, vector<1x256xf32>
    %25 = vector.broadcast %24 : vector<1x256xf32> to vector<128x256xf32>
    %26 = arith.addf %23, %25 : vector<128x256xf32>
    %cst_17 = arith.constant 0.000000e+00 : f32
    %27 = vector.broadcast %cst_17 : f32 to vector<128x256xf32>
    %28 = arith.cmpf ogt, %26, %27 : vector<128x256xf32>
    %cst_18 = arith.constant 2.000000e-01 : f32
    %29 = vector.broadcast %cst_18 : f32 to vector<128x256xf32>
    %30 = arith.mulf %29, %26 : vector<128x256xf32>
    %31 = arith.select %28, %26, %30 : vector<128x256xi1>, vector<128x256xf32>
    %32 = arith.truncf %31 : vector<128x256xf32> to vector<128x256xbf16>
    %c0_19 = arith.constant 0 : index
    %c0_20 = arith.constant 0 : index
    %33 = vector.load %arg8[%c0_19, %c0_20] : memref<256x128xbf16, #tpu.memory_space<vmem>>, vector<256x128xbf16>
    %cst_21 = arith.constant dense<0.000000e+00> : vector<128x128xf32>
    %34 = tpu.matmul %32, %33, %cst_21 {dimension_numbers = #tpu.dot_dimension_numbers<[1], [0], [0], [1], [0, 0, 1, 1], [], []>} : vector<128x256xbf16>, vector<256x128xbf16>, vector<128x128xf32> -> vector<128x128xf32>
    %c0_22 = arith.constant 0 : index
    %c0_23 = arith.constant 0 : index
    %35 = vector.load %arg9[%c0_22, %c0_23] : memref<1x128xf32, #tpu.memory_space<vmem>>, vector<1x128xf32>
    %36 = vector.broadcast %35 : vector<1x128xf32> to vector<128x128xf32>
    %37 = arith.addf %34, %36 : vector<128x128xf32>
    %cst_24 = arith.constant 0.000000e+00 : f32
    %38 = vector.broadcast %cst_24 : f32 to vector<128x128xf32>
    %39 = arith.cmpf ogt, %37, %38 : vector<128x128xf32>
    %cst_25 = arith.constant 2.000000e-01 : f32
    %40 = vector.broadcast %cst_25 : f32 to vector<128x128xf32>
    %41 = arith.mulf %40, %37 : vector<128x128xf32>
    %42 = arith.select %39, %37, %41 : vector<128x128xi1>, vector<128x128xf32>
    %43 = tpu.transpose %42, [1, 0] : vector<128x128xf32> -> vector<128x128xf32>
    %c0_26 = arith.constant 0 : index
    %c0_27 = arith.constant 0 : index
    %44 = vector.load %arg10[%c0_26, %c0_27] : memref<128x1xf32, #tpu.memory_space<vmem>>, vector<128x1xf32>
    %45 = vector.broadcast %44 : vector<128x1xf32> to vector<128x128xf32>
    %46 = arith.mulf %43, %45 : vector<128x128xf32>
    %cst_28 = arith.constant dense<0.000000e+00> : vector<128xf32>
    %47 = vector.multi_reduction <add>, %46, %cst_28 [0] : vector<128x128xf32> to vector<128xf32>
    %48 = vector.shape_cast %47 : vector<128xf32> to vector<1x128xf32>
    %c0_29 = arith.constant 0 : index
    %c0_30 = arith.constant 0 : index
    %49 = vector.load %arg11[%c0_29, %c0_30] : memref<1x1xf32, #tpu.memory_space<vmem>>, vector<1x1xf32>
    %50 = vector.broadcast %49 : vector<1x1xf32> to vector<1x128xf32>
    %51 = arith.addf %48, %50 : vector<1x128xf32>
    %c0_31 = arith.constant 0 : index
    %c0_32 = arith.constant 0 : index
    %52 = vector.load %arg12[%c0_31, %c0_32] : memref<1x128xf32, #tpu.memory_space<vmem>>, vector<1x128xf32>
    tpu.vector_store %arg12[%c0_31, %c0_32], %51 {strides = array<i32>} : memref<1x128xf32, #tpu.memory_space<vmem>>, vector<1x128xf32>,
    return
  }
  func.func @transform_0(%arg0: i32) -> (i32, i32) {
    %c0_i32 = arith.constant 0 : i32
    %c0_i32_0 = arith.constant 0 : i32
    return %arg0, %c0_i32 : i32, i32
  }
  func.func @transform_1(%arg0: i32) -> (i32, i32) {
    %c0_i32 = arith.constant 0 : i32
    %c0_i32_0 = arith.constant 0 : i32
    return %arg0, %c0_i32 : i32, i32
  }
  func.func @transform_2(%arg0: i32) -> (i32, i32) {
    %c0_i32 = arith.constant 0 : i32
    %c0_i32_0 = arith.constant 0 : i32
    %c0_i32_1 = arith.constant 0 : i32
    return %c0_i32, %c0_i32_0 : i32, i32
  }
  func.func @transform_3(%arg0: i32) -> (i32, i32) {
    %c0_i32 = arith.constant 0 : i32
    %c0_i32_0 = arith.constant 0 : i32
    %c0_i32_1 = arith.constant 0 : i32
    return %c0_i32, %c0_i32_0 : i32, i32
  }
  func.func @transform_4(%arg0: i32) -> (i32, i32) {
    %c0_i32 = arith.constant 0 : i32
    %c0_i32_0 = arith.constant 0 : i32
    %c0_i32_1 = arith.constant 0 : i32
    return %c0_i32, %c0_i32_0 : i32, i32
  }
  func.func @transform_5(%arg0: i32) -> (i32, i32) {
    %c0_i32 = arith.constant 0 : i32
    %c0_i32_0 = arith.constant 0 : i32
    %c0_i32_1 = arith.constant 0 : i32
    return %c0_i32, %c0_i32_0 : i32, i32
  }
  func.func @transform_6(%arg0: i32) -> (i32, i32) {
    %c0_i32 = arith.constant 0 : i32
    %c0_i32_0 = arith.constant 0 : i32
    %c0_i32_1 = arith.constant 0 : i32
    return %c0_i32, %c0_i32_0 : i32, i32
  }
  func.func @transform_7(%arg0: i32) -> (i32, i32) {
    %c0_i32 = arith.constant 0 : i32
    %c0_i32_0 = arith.constant 0 : i32
    %c0_i32_1 = arith.constant 0 : i32
    return %c0_i32, %c0_i32_0 : i32, i32
  }
  func.func @transform_8(%arg0: i32) -> (i32, i32) {
    %c0_i32 = arith.constant 0 : i32
    %c0_i32_0 = arith.constant 0 : i32
    %c0_i32_1 = arith.constant 0 : i32
    return %c0_i32, %c0_i32_0 : i32, i32
  }
  func.func @transform_9(%arg0: i32) -> (i32, i32) {
    %c0_i32 = arith.constant 0 : i32
    %c0_i32_0 = arith.constant 0 : i32
    %c0_i32_1 = arith.constant 0 : i32
    return %c0_i32, %c0_i32_0 : i32, i32
  }
  func.func @transform_10(%arg0: i32) -> (i32, i32) {
    %c0_i32 = arith.constant 0 : i32
    %c0_i32_0 = arith.constant 0 : i32
    %c0_i32_1 = arith.constant 0 : i32
    return %c0_i32, %c0_i32_0 : i32, i32
  }
  func.func @transform_11(%arg0: i32) -> (i32, i32) {
    %c0_i32 = arith.constant 0 : i32
    %c0_i32_0 = arith.constant 0 : i32
    return %c0_i32, %arg0 : i32, i32
  }
}

</mosaic_0001>

<bundles_post_ra>
// kernel: discriminator_forward.1
= control target key start
LH: loop header
LB: loop body
LE: loop exit
PB: predicated region body
PF: predicated region fallthrough
CT: control target
= control target key end

     0   :  { %s8125_s0 = inlined_call_operand.vmem [shape: bf16[256,784], index: 0, kind: input, shape index: {}]   ;;  %s8126_s1 = inlined_call_operand.vmem [shape: s32[256,1], index: 1, kind: input, shape index: {}]   ;;  %s8127_s2 = inlined_call_operand.vmem [shape: bf16[10,512], index: 2, kind: input, shape index: {}]   ;;  %s8128_s3 = inlined_call_operand.vmem [shape: bf16[784,512], index: 3, kind: input, shape index: {}]   ;;  %s8129_s4 = inlined_call_operand.vmem [shape: f32[1,512], index: 4, kind: input, shape index: {}]   ;;  %s8130_s5 = inlined_call_operand.vmem [shape: bf16[512,256], index: 5, kind: input, shape index: {}]   ;;  %s8131_s6 = inlined_call_operand.vmem [shape: f32[1,256], index: 6, kind: input, shape index: {}]   ;;  %s8132_s7 = inlined_call_operand.vmem [shape: bf16[256,128], index: 7, kind: input, shape index: {}]   ;;  %s8133_s8 = inlined_call_operand.vmem [shape: f32[1,128], index: 8, kind: input, shape index: {}]   ;;  %s8134_s9 = inlined_call_operand.vmem [shape: f32[128,1], index: 9, kind: input, shape index: {}]   ;;  %s8135_s10 = inlined_call_operand.<no memory space> [shape: f32[1,1], index: 10, kind: input, shape index: {}]   ;;  %s8136_s11 = inlined_call_operand.hbm [shape: f32[1,256], index: 11, kind: output, shape index: {}]  }
   0x1   :  { %8149 = sst [smem:[#allocation16_spill]] %s8126_s1  ;;  %v16_v0 = vstv %s8135_s10 }
   0x2   :  { %17 = vst [vmem:[#allocation2] sm:$0x1] %v16_v0 }
   0x3   :  { %18 = vsyncpa [#allocation4], 0 }
   0x4   :  { %20 = vsyncpa [#allocation4 + $0x1], 0  ;;  %s6330_s19 = smov 0   ;;  %s6332_s20 = smov 0  }
   0x5   :  { %s6334_s21 = smov 0   ;;  %s6336_s22 = smov 0  }
   0x6 LB: > { %s4849_s10 = sadd.s32 4294967295, %s6262_s22   ;;  %s4850_s23 = sadd.s32 4294967294, %s6262_s22   ;;  %s6262_s22 = sphi %s6336_s22, %s8186_s22   ;;  %s6258_s21 = sphi %s6334_s21, %s8185_s21   ;;  %s6254_s20 = sphi %s6332_s20, %s8184_s20   ;;  %s6250_s19 = sphi %s6330_s19, %s8183_s19  }
   0x7   : > { %s6353_s24 = sadd.s32 1, %s6262_s22   ;;  %s274_s25 = sadd.s32 1, %s6258_s21 }
   0x8   : > { %s271_s26 = ssub.s32 %s6262_s22, %s6353_s24  ;;  %p284_p0 = scmp.ne.s32.totalorder %s6258_s21, %s6254_s20 }
   0x9   : > { %p272_p1 = scmp.eq.s32.totalorder %s271_s26, 0  ;;  %p285_p2 = scmp.eq.s32.totalorder %s4849_s10, 1 }
   0xa   : > { %p290_p3 = scmp.ne.s32.totalorder %s6254_s20, %s6250_s19  ;;  %p291_p4 = scmp.eq.s32.totalorder %s4850_s23, 1 }
   0xb   : > { %s6363_s27 = scalar_select %p272_p1, %s6258_s21, %s274_s25  }
   0xc   : > { %p6365_p5 = por %p285_p2, %p284_p0  ;;  %p6369_p6 = por %p291_p4, %p290_p3 }
   0xd   : > { %p4853_p7 = scmp.ge.s32.totalorder %s6262_s22, 1  ;;  %p355_p8 = scmp.lt.s32.totalorder %s6262_s22, 3 }
   0xf   : > { %p356_p9 = pnand %p4853_p7, %p355_p8 }
  0x11   : > { %359 = sbr.rel (%p356_p9) target bundleno = 1384 (0x568), region = 64 }
  0x18   : > { %s6375_s30 = sshll.u32 %s4849_s10, 4  ;;  %v6264_v1 = vmov 0   ;;  %s8152_s1 = sld [smem:[#allocation16_spill]]  ;;  %vm841_vm0 = vcmask 1044480   ;;  %v5716_v14 = vld [vmem:[%s8128_s3 + $0x4] ss:$16 sps:$4 sm:$0xff]   ;;  %v494_v43 = vlaneseq }
  0x19   : > { %5707 = vset.pattern.permute.xlu1 %v6264_v1  ;;  %5706 = vset.pattern.permute.xlu0 %v6264_v1  ;;  %p401_p10 = scmp.lt.s32.totalorder %s6375_s30, 31  ;;  %v5708_v8 = vld [vmem:[%s8127_s2 + $0x4] ss:$16 sps:$4 sm:$0x1f]   ;;  %v5719_v17 = vld [vmem:[%s8128_s3 + $0xc] ss:$16 sps:$4 sm:$0xff]  }
  0x1a   : > { %886 = vmatprep.mubr.bf16.mxu0 %v6264_v1  ;;  %999 = vmatprep.mubr.bf16.mxu1 %v6264_v1  ;;  %v5710_v9 = vld [vmem:[%s8127_s2] ss:$16 sps:$4 sm:$0x1f]   ;;  %v5711_v10 = vld [vmem:[%s8127_s2 + $0xc] ss:$16 sps:$4 sm:$0x1f]  }
  0x1b   : > { %s6383_s12 = scalar_select %p401_p10, %s6375_s30, 31  ;;  %4878 = vmatprep.subr.msk.bf16.mxu0 %vm841_vm0, %v5708_v8  ;;  %v5713_v11 = vld [vmem:[%s8127_s2 + $0x8] ss:$16 sps:$4 sm:$0x1f]   ;;  %v843_v13 = vsel %vm841_vm0, %v5710_v9, 0  ;;  %4887 = vmatprep.subr.msk.bf16.mxu1 %vm841_vm0, %v5711_v10  ;;  %v4625_v26 = vld [vmem:[%s8134_s9] sm:$0xff] }
  0x1c   : > { %v849_v16 = vsel %vm841_vm0, %v5713_v11, 0  ;;  %855 = vmatpush1.bf16.msra.mxu0 %v843_v13  ;;  %v4626_v27 = vld [vmem:[%s8134_s9 + $0x8] sm:$0xff]  ;;  %v4627_v28 = vld [vmem:[%s8134_s9 + $0x10] sm:$0xff]  ;;  %v4628_v29 = vld [vmem:[%s8134_s9 + $0x18] sm:$0xff]  ;;  %v6484_v44 = vand.u32 127, %v494_v43  ;;  %v6265_v49 = vmov 0.0  }
  0x1d   : > { %s4857_s13 = sshll.u32 %s6383_s12, 3  ;;  %968 = vmatpush1.bf16.msra.mxu1 %v849_v16  ;;  %2365 = vmatprep.subr.bf16.mxu0 %v5716_v14  ;;  %s5664_s14 = smul.u32 28, %s6383_s12  ;;  %v4629_v30 = vld [vmem:[%s8134_s9 + $0x20] sm:$0xff]  ;;  %v4630_v31 = vld [vmem:[%s8134_s9 + $0x28] sm:$0xff]  ;;  %v4631_v32 = vld [vmem:[%s8134_s9 + $0x30] sm:$0xff]  ;;  %vm816_vm3 = vcmask 80896  }
  0x1e   : > { %s6389_s16 = scalar_lea.vmem %s8152_s1, %s4857_s13  ;;  %2817 = vmatprep.subr.bf16.mxu1 %v5719_v17  ;;  %v4632_v33 = vld [vmem:[%s8134_s9 + $0x38] sm:$0xff]  ;;  %v4633_v34 = vld [vmem:[%s8134_s9 + $0x40] sm:$0xff]  ;;  %v4634_v35 = vld [vmem:[%s8134_s9 + $0x48] sm:$0xff]  ;;  %s398_s23 = sand.u32 1, %s6254_s20  }
  0x1f   : > { %v480_v2 = vld [vmem:[%s6389_s16 + $0x10] sm:$0xff]  ;;  %v478_v3 = vld [vmem:[%s6389_s16] sm:$0xff]  ;;  %v481_v4 = vld [vmem:[%s6389_s16 + $0x18] sm:$0xff]  ;;  %s6442_s10 = scalar_lea.vmem %s8125_s0, %s5664_s14  ;;  %s399_s1 = scalar_lea.vmem [#allocation3], %s398_s23 }
  0x20   : > { %503 = vperm.xlu1 %5707, %v480_v2   ;;  %497 = vperm.xlu0 %5706, %v478_v3   ;;  %v479_v5 = vld [vmem:[%s6389_s16 + $0x8] sm:$0xff]  ;;  %v482_v7 = vld [vmem:[%s6389_s16 + $0x20] sm:$0xff]  ;;  %v485_v12 = vld [vmem:[%s6389_s16 + $0x38] sm:$0xff]  ;;  %s4783_s25 = sshll.u32 %s399_s1, 4  ;;  %s8083_s13 = scalar_lea.hbm %s8136_s11, %s6375_s30  ;;  %s8085_s25 = int_to_ptr.vmem [resolvable:$true] %s4783_s25 }
  0x21   : > { %v483_v6 = vld [vmem:[%s6389_s16 + $0x28] sm:$0xff]  ;;  %v484_v15 = vld [vmem:[%s6389_s16 + $0x30] sm:$0xff]  ;;  %v486_v19 = vld [vmem:[%s6389_s16 + $0x40] sm:$0xff]  ;;  %s4771_s15 = scalar_lea.sflag [#allocation4], %s398_s23  ;;  %s6200_s17 = scalar_lea.vmem %s8085_s25, 16 }
  0x22   : > { %v487_v18 = vld [vmem:[%s6389_s16 + $0x48] sm:$0xff]  ;;  %v489_v20 = vld [vmem:[%s6389_s16 + $0x58] sm:$0xff]  ;;  %v488_v21 = vld [vmem:[%s6389_s16 + $0x50] sm:$0xff]  ;;  %p6201_p11 = scmp.ne.s32.totalorder %s8085_s25, %s6200_s17  ;;  %s6266_s14 = smov [#allocation3]  }
  0x23   : > { %v491_v22 = vld [vmem:[%s6389_s16 + $0x68] sm:$0xff]  ;;  %v490_v23 = vld [vmem:[%s6389_s16 + $0x60] sm:$0xff]  ;;  %v493_v24 = vld [vmem:[%s6389_s16 + $0x78] sm:$0xff] }
  0x24   : > { %506 = vperm.xlu1 %5707, %v481_v4   ;;  %500 = vperm.xlu0 %5706, %v479_v5   ;;  %v492_v25 = vld [vmem:[%s6389_s16 + $0x70] sm:$0xff]  ;;  %v4636_v37 = vld [vmem:[%s8134_s9 + $0x58] sm:$0xff]  ;;  %v4637_v38 = vld [vmem:[%s8134_s9 + $0x60] sm:$0xff]  ;;  %p6202_p12 = pnand %p6201_p11, %p6365_p5  ;;  %s6204_s16 = sshll.u32 %s6266_s14, 4  ;;  %s6205_s16 = int_to_ptr.vmem [resolvable:$false] %s6204_s16 }
  0x25   : > { %v4635_v36 = vld [vmem:[%s8134_s9 + $0x50] sm:$0xff]  ;;  %v4638_v39 = vld [vmem:[%s8134_s9 + $0x68] sm:$0xff]  ;;  %v4640_v41 = vld [vmem:[%s8134_s9 + $0x78] sm:$0xff]  ;;  %p6207_p0 = scmp.lt.s32.totalorder %s8085_s25, %s6205_s16 }
  0x26   : > { %v4639_v40 = vld [vmem:[%s8134_s9 + $0x70] sm:$0xff]  ;;  %v4758_v42 = vld [vmem:[#allocation2] sm:$0x1]  ;;  %v5717_v52 = vld [vmem:[%s8128_s3 + $0x8] ss:$16 sps:$4 sm:$0xff]   ;;  %p6203_p13 = pneg %p6202_p12 }
  0x27   : > { %v5714_v48 = vld [vmem:[%s8128_s3] ss:$16 sps:$4 sm:$0xff]   ;;  %v5722_v54 = vld [vmem:[%s8128_s3 + $0x24] ss:$16 sps:$4 sm:$0xff]   ;;  %v5725_v55 = vld [vmem:[%s8128_s3 + $0x2c] ss:$16 sps:$4 sm:$0xff]  }
  0x28   : > { %512 = vperm.xlu1 %5707, %v483_v6   ;;  %509 = vperm.xlu0 %5706, %v482_v7   ;;  %v5720_v57 = vld [vmem:[%s8128_s3 + $0x20] ss:$16 sps:$4 sm:$0xff]   ;;  %v5723_v58 = vld [vmem:[%s8128_s3 + $0x28] ss:$16 sps:$4 sm:$0xff]   ;;  %v5728_v59 = vld [vmem:[%s8128_s3 + $0x44] ss:$16 sps:$4 sm:$0xff]  }
  0x29   : > { %v5731_v60 = vld [vmem:[%s8128_s3 + $0x4c] ss:$16 sps:$4 sm:$0xff]   ;;  %v5726_v2 = vld [vmem:[%s8128_s3 + $0x40] ss:$16 sps:$4 sm:$0xff]   ;;  %v5729_v3 = vld [vmem:[%s8128_s3 + $0x48] ss:$16 sps:$4 sm:$0xff]  }
  0x2a   : > { %v5734_v5 = vld [vmem:[%s8128_s3 + $0x64] ss:$16 sps:$4 sm:$0xff]   ;;  %v5737_v6 = vld [vmem:[%s8128_s3 + $0x6c] ss:$16 sps:$4 sm:$0xff]   ;;  %v5732_v7 = vld [vmem:[%s8128_s3 + $0x60] ss:$16 sps:$4 sm:$0xff]  }
  0x2b   : > { %v5735_v8 = vld [vmem:[%s8128_s3 + $0x68] ss:$16 sps:$4 sm:$0xff]   ;;  %v5740_v9 = vld [vmem:[%s8128_s3 + $0x84] ss:$16 sps:$4 sm:$0xff]   ;;  %v5743_v10 = vld [vmem:[%s8128_s3 + $0x8c] ss:$16 sps:$4 sm:$0xff]  }
  0x2c   : > { %518 = vperm.xlu1 %5707, %v485_v12   ;;  %515 = vperm.xlu0 %5706, %v484_v15   ;;  %v5738_v15 = vld [vmem:[%s8128_s3 + $0x80] ss:$16 sps:$4 sm:$0xff]   ;;  %v5741_v16 = vld [vmem:[%s8128_s3 + $0x88] ss:$16 sps:$4 sm:$0xff]  }
  0x30   : > { %524 = vperm.xlu1 %5707, %v487_v18   ;;  %521 = vperm.xlu0 %5706, %v486_v19   ;;  %v5746_v18 = vld [vmem:[%s8128_s3 + $0xa4] ss:$16 sps:$4 sm:$0xff]   ;;  %v5749_v19 = vld [vmem:[%s8128_s3 + $0xac] ss:$16 sps:$4 sm:$0xff]  }
  0x34   : > { %530 = vperm.xlu1 %5707, %v489_v20   ;;  %527 = vperm.xlu0 %5706, %v488_v21   ;;  %v5744_v20 = vld [vmem:[%s8128_s3 + $0xa0] ss:$16 sps:$4 sm:$0xff]   ;;  %v5747_v21 = vld [vmem:[%s8128_s3 + $0xa8] ss:$16 sps:$4 sm:$0xff]  }
  0x38   : > { %536 = vperm.xlu1 %5707, %v491_v22   ;;  %533 = vperm.xlu0 %5706, %v490_v23   ;;  %v5752_v22 = vld [vmem:[%s8128_s3 + $0xc4] ss:$16 sps:$4 sm:$0xff]   ;;  %v5755_v23 = vld [vmem:[%s8128_s3 + $0xcc] ss:$16 sps:$4 sm:$0xff]  }
  0x3c   : > { %542 = vperm.xlu1 %5707, %v493_v24   ;;  %539 = vperm.xlu0 %5706, %v492_v25  }
  0x40   : > { %4643 = vperm.xlu1 %5707, %v4625_v26  }
  0x44   : > { %4648 = vperm.xlu1 %5707, %v4626_v27  }
  0x48   : > { %4653 = vperm.xlu1 %5707, %v4627_v28   ;;  %v5750_v28 = vld [vmem:[%s8128_s3 + $0xc0] ss:$16 sps:$4 sm:$0xff]  }
  0x4c   : > { %4658 = vperm.xlu1 %5707, %v4628_v29   ;;  %v5753_v29 = vld [vmem:[%s8128_s3 + $0xc8] ss:$16 sps:$4 sm:$0xff]  }
  0x50   : > { %4663 = vperm.xlu1 %5707, %v4629_v30  }
  0x54   : > { %4668 = vperm.xlu1 %5707, %v4630_v31   ;;  %v5758_v31 = vld [vmem:[%s8128_s3 + $0xe4] ss:$16 sps:$4 sm:$0xff]  }
  0x58   : > { %4673 = vperm.xlu1 %5707, %v4631_v32   ;;  %v5761_v32 = vld [vmem:[%s8128_s3 + $0xec] ss:$16 sps:$4 sm:$0xff]  }
  0x5c   : > { %4678 = vperm.xlu1 %5707, %v4632_v33   ;;  %v5756_v33 = vld [vmem:[%s8128_s3 + $0xe0] ss:$16 sps:$4 sm:$0xff]  }
  0x60   : > { %4683 = vperm.xlu1 %5707, %v4633_v34   ;;  %v5759_v34 = vld [vmem:[%s8128_s3 + $0xe8] ss:$16 sps:$4 sm:$0xff]  }
  0x64   : > { %4688 = vperm.xlu1 %5707, %v4634_v35   ;;  %v5764_v35 = vld [vmem:[%s8128_s3 + $0x104] ss:$16 sps:$4 sm:$0xff]  }
  0x68   : > { %4693 = vperm.xlu1 %5707, %v4635_v36   ;;  %v5767_v36 = vld [vmem:[%s8128_s3 + $0x10c] ss:$16 sps:$4 sm:$0xff]  }
  0x6c   : > { %4698 = vperm.xlu1 %5707, %v4636_v37  }
  0x70   : > { %4703 = vperm.xlu1 %5707, %v4637_v38  }
  0x74   : > { %4708 = vperm.xlu1 %5707, %v4638_v39  }
  0x78   : > { %4713 = vperm.xlu1 %5707, %v4639_v40  }
  0x7c   : > { %4718 = vperm.xlu1 %5707, %v4640_v41   ;;  %v5762_v41 = vld [vmem:[%s8128_s3 + $0x100] ss:$16 sps:$4 sm:$0xff]  }
  0x80   : > { %4761 = vperm.xlu1 %5707, %v4758_v42   ;;  %v5765_v42 = vld [vmem:[%s8128_s3 + $0x108] ss:$16 sps:$4 sm:$0xff]  }
  0x9f   : > { %v498_v45 = vpop.permute.xlu0 %497  ;;  %v504_v46 = vpop.permute.xlu1 %503 }
  0xa0   : > { %vm544_vm1 = vcmp.eq.s32.totalorder %v498_v45, %v6484_v44  ;;  %vm546_vm4 = vcmp.eq.s32.totalorder %v504_v46, %v6484_v44  ;;  %v5770_v46 = vld [vmem:[%s8128_s3 + $0x124] ss:$16 sps:$4 sm:$0xff]  }
  0xa1   : > { %v4858_v50 = vsel %vm544_vm1, 1.0, %v6265_v49  ;;  %v4860_v61 = vsel %vm546_vm4, 1.0, %v6265_v49 }
  0xa3   : > { %v501_v47 = vpop.permute.xlu0 %500  ;;  %v507_v56 = vpop.permute.xlu1 %506 }
  0xa4   : > { %vm545_vm2 = vcmp.eq.s32.totalorder %v501_v47, %v6484_v44  ;;  %vm547_vm5 = vcmp.eq.s32.totalorder %v507_v56, %v6484_v44  ;;  %v5773_v47 = vld [vmem:[%s8128_s3 + $0x12c] ss:$16 sps:$4 sm:$0xff]  }
  0xa5   : > { %v4859_v51 = vsel %vm545_vm2, 1.0, %v6265_v49  ;;  %v4861_v62 = vsel %vm547_vm5, 1.0, %v6265_v49  ;;  %vm2340_vm2 = vcmask 130048  }
  0xa6   : > { %v592_v53 = vpack.c.bf16 %v4859_v51, %v4858_v50  ;;  %v593_v4 = vpack.c.bf16 %v4861_v62, %v4860_v61  ;;  %v5771_v50 = vld [vmem:[%s8128_s3 + $0x128] ss:$16 sps:$4 sm:$0xff]   ;;  %v5776_v51 = vld [vmem:[%s8128_s3 + $0x144] ss:$16 sps:$4 sm:$0xff]   ;;  %v5785_v61 = vld [vmem:[%s8128_s3 + $0x16c] ss:$16 sps:$4 sm:$0xff]  }
  0xa7   : > { %v513_v63 = vpop.permute.xlu1 %512  ;;  %v510_v0 = vpop.permute.xlu0 %509  ;;  %v5780_v62 = vld [vmem:[%s8128_s3 + $0x160] ss:$16 sps:$4 sm:$0xff]  }
  0xa8   : > { %4879 = vmatmul.mubr.msk.bf16.vlgmr.msra.gmra.mrb[0].mxu0 %vm816_vm3, %v592_v53  ;;  %4888 = vmatmul.mubr.msk.bf16.vlgmr.msra.gmra.mrb[0].mxu1 %vm816_vm3, %v592_v53  ;;  %vm549_vm6 = vcmp.eq.s32.totalorder %v513_v63, %v6484_v44  ;;  %vm548_vm7 = vcmp.eq.s32.totalorder %v510_v0, %v6484_v44  ;;  %v5783_v63 = vld [vmem:[%s8128_s3 + $0x168] ss:$16 sps:$4 sm:$0xff]   ;;  %v5788_v0 = vld [vmem:[%s8128_s3 + $0x184] ss:$16 sps:$4 sm:$0xff]  }
  0xa9   : > { %2366 = vmatpush1.bf16.msra.mxu0 %v5714_v48  ;;  %2818 = vmatpush1.bf16.msra.mxu1 %v5717_v52  ;;  %v4863_v11 = vsel %vm549_vm6, 1.0, %v6265_v49  ;;  %v4862_v12 = vsel %vm548_vm7, 1.0, %v6265_v49  ;;  %v5768_v48 = vld [vmem:[%s8128_s3 + $0x120] ss:$16 sps:$4 sm:$0xff]   ;;  %v5779_v52 = vld [vmem:[%s8128_s3 + $0x14c] ss:$16 sps:$4 sm:$0xff]  }
  0xaa   : > { %2367 = vmatprep.subr.bf16.mxu0 %v5722_v54  ;;  %2819 = vmatprep.subr.bf16.mxu1 %v5725_v55  ;;  %v594_v17 = vpack.c.bf16 %v4863_v11, %v4862_v12  ;;  %v5797_v11 = vld [vmem:[%s8128_s3 + $0x1ac] ss:$16 sps:$4 sm:$0xff]   ;;  %v5792_v12 = vld [vmem:[%s8128_s3 + $0x1a0] ss:$16 sps:$4 sm:$0xff]  }
  0xab   : > { %896 = vmatprep.mubr.bf16.mxu0 %v6264_v1  ;;  %1009 = vmatprep.mubr.bf16.mxu1 %v6264_v1  ;;  %v519_v13 = vpop.permute.xlu1 %518  ;;  %v516_v14 = vpop.permute.xlu0 %515 }
  0xac   : > { %vm551_vm8 = vcmp.eq.s32.totalorder %v519_v13, %v6484_v44  ;;  %vm550_vm9 = vcmp.eq.s32.totalorder %v516_v14, %v6484_v44  ;;  %v5795_v13 = vld [vmem:[%s8128_s3 + $0x1a8] ss:$16 sps:$4 sm:$0xff]   ;;  %v5800_v14 = vld [vmem:[%s8128_s3 + $0x1c4] ss:$16 sps:$4 sm:$0xff]  }
  0xad   : > { %2368 = vmatpush1.bf16.msra.mxu0 %v5720_v57  ;;  %2820 = vmatpush1.bf16.msra.mxu1 %v5723_v58  ;;  %v4865_v24 = vsel %vm551_vm8, 1.0, %v6265_v49  ;;  %v4864_v25 = vsel %vm550_vm9, 1.0, %v6265_v49  ;;  %v5774_v57 = vld [vmem:[%s8128_s3 + $0x140] ss:$16 sps:$4 sm:$0xff]   ;;  %v5777_v58 = vld [vmem:[%s8128_s3 + $0x148] ss:$16 sps:$4 sm:$0xff]  }
  0xae   : > { %2369 = vmatprep.subr.bf16.mxu0 %v5728_v59  ;;  %2821 = vmatprep.subr.bf16.mxu1 %v5731_v60  ;;  %v595_v30 = vpack.c.bf16 %v4865_v24, %v4864_v25  ;;  %v5782_v60 = vld [vmem:[%s8128_s3 + $0x164] ss:$16 sps:$4 sm:$0xff]   ;;  %v5810_v25 = vld [vmem:[%s6442_s10] ss:$28 sps:$4 sm:$0xff]  }
  0xaf   : > { %v525_v26 = vpop.permute.xlu1 %524  ;;  %v522_v27 = vpop.permute.xlu0 %521  ;;  %v5815_v24 = vld [vmem:[%s8128_s3 + $0x204] ss:$16 sps:$4 sm:$0xff]  }
  0xb0   : > { %4880 = vmatmul.mubr.msk.bf16.gmra.mrb[4].mxu0 %vm816_vm3, %v593_v4  ;;  %4889 = vmatmul.mubr.msk.bf16.gmra.mrb[4].mxu1 %vm816_vm3, %v593_v4  ;;  %vm553_vm10 = vcmp.eq.s32.totalorder %v525_v26, %v6484_v44  ;;  %vm552_vm11 = vcmp.eq.s32.totalorder %v522_v27, %v6484_v44  ;;  %v5818_v26 = vld [vmem:[%s8128_s3 + $0x20c] ss:$16 sps:$4 sm:$0xff]   ;;  %v5813_v27 = vld [vmem:[%s8128_s3 + $0x200] ss:$16 sps:$4 sm:$0xff]  }
  0xb1   : > { %2370 = vmatpush1.bf16.msra.mxu0 %v5726_v2  ;;  %2822 = vmatpush1.bf16.msra.mxu1 %v5729_v3  ;;  %v4867_v37 = vsel %vm553_vm10, 1.0, %v6265_v49  ;;  %v4866_v38 = vsel %vm552_vm11, 1.0, %v6265_v49  ;;  %v5791_v2 = vld [vmem:[%s8128_s3 + $0x18c] ss:$16 sps:$4 sm:$0xff]  }
  0xb2   : > { %2371 = vmatprep.subr.bf16.mxu0 %v5734_v5  ;;  %2823 = vmatprep.subr.bf16.mxu1 %v5737_v6  ;;  %v596_v45 = vpack.c.bf16 %v4867_v37, %v4866_v38  ;;  %v5827_v37 = vld [vmem:[%s8128_s3 + $0x240] ss:$16 sps:$4 sm:$0xff]   ;;  %v5831_v38 = vld [vmem:[%s8128_s3 + $0x248] ss:$16 sps:$4 sm:$0xff]  }
  0xb3   : > { %906 = vmatprep.mubr.bf16.mxu0 %v6264_v1  ;;  %1019 = vmatprep.mubr.bf16.mxu1 %v6264_v1  ;;  %v531_v39 = vpop.permute.xlu1 %530  ;;  %v528_v40 = vpop.permute.xlu0 %527 }
  0xb4   : > { %vm555_vm12 = vcmp.eq.s32.totalorder %v531_v39, %v6484_v44  ;;  %vm554_vm13 = vcmp.eq.s32.totalorder %v528_v40, %v6484_v44  ;;  %v5836_v39 = vld [vmem:[%s8128_s3 + $0x264] ss:$16 sps:$4 sm:$0xff]   ;;  %v5839_v40 = vld [vmem:[%s8128_s3 + $0x26c] ss:$16 sps:$4 sm:$0xff]  }
  0xb5   : > { %2372 = vmatpush1.bf16.msra.mxu0 %v5732_v7  ;;  %2824 = vmatpush1.bf16.msra.mxu1 %v5735_v8  ;;  %v4869_v53 = vsel %vm555_vm12, 1.0, %v6265_v49  ;;  %v4868_v54 = vsel %vm554_vm13, 1.0, %v6265_v49  ;;  %v5786_v7 = vld [vmem:[%s8128_s3 + $0x180] ss:$16 sps:$4 sm:$0xff]   ;;  %v5789_v8 = vld [vmem:[%s8128_s3 + $0x188] ss:$16 sps:$4 sm:$0xff]  }
  0xb6   : > { %2373 = vmatprep.subr.bf16.mxu0 %v5740_v9  ;;  %2825 = vmatprep.subr.bf16.mxu1 %v5743_v10  ;;  %v597_v59 = vpack.c.bf16 %v4869_v53, %v4868_v54  ;;  %v5794_v10 = vld [vmem:[%s8128_s3 + $0x1a4] ss:$16 sps:$4 sm:$0xff]   ;;  %v5854_v53 = vld [vmem:[%s8128_s3 + $0x2ac] ss:$16 sps:$4 sm:$0xff]  }
  0xb7   : > { %v537_v55 = vpop.permute.xlu1 %536  ;;  %v534_v56 = vpop.permute.xlu0 %533  ;;  %v5855_v54 = vld [vmem:[%s6442_s10 + $0xac] ss:$28 sps:$4 sm:$0xff]  }
  0xb8   : > { %4881 = vmatmul.mubr.msk.bf16.gmra.mrb[8].mxu0 %vm816_vm3, %v594_v17  ;;  %4890 = vmatmul.mubr.msk.bf16.gmra.mrb[8].mxu1 %vm816_vm3, %v594_v17  ;;  %vm557_vm14 = vcmp.eq.s32.totalorder %v537_v55, %v6484_v44  ;;  %vm556_vm15 = vcmp.eq.s32.totalorder %v534_v56, %v6484_v44  ;;  %v5798_v17 = vld [vmem:[%s8128_s3 + $0x1c0] ss:$16 sps:$4 sm:$0xff]   ;;  %v5852_v56 = vld [vmem:[%s8128_s3 + $0x2a8] ss:$16 sps:$4 sm:$0xff]  }
  0xb9   : > { %2374 = vmatpush1.bf16.msra.mxu0 %v5738_v15  ;;  %2826 = vmatpush1.bf16.msra.mxu1 %v5741_v16  ;;  %v4871_v3 = vsel %vm557_vm14, 1.0, %v6265_v49  ;;  %v4870_v4 = vsel %vm556_vm15, 1.0, %v6265_v49  ;;  %v5849_v55 = vld [vmem:[%s8128_s3 + $0x2a0] ss:$16 sps:$4 sm:$0xff]  }
  0xba   : > { %2375 = vmatprep.subr.bf16.mxu0 %v5746_v18  ;;  %2827 = vmatprep.subr.bf16.mxu1 %v5749_v19  ;;  %v598_v9 = vpack.c.bf16 %v4871_v3, %v4870_v4  ;;  %v5801_v18 = vld [vmem:[%s8128_s3 + $0x1c8] ss:$16 sps:$4 sm:$0xff]   ;;  %v5874_v4 = vld [vmem:[%s8128_s3 + $0x304] ss:$16 sps:$4 sm:$0xff]  }
  0xbb   : > { %916 = vmatprep.mubr.bf16.mxu0 %v6264_v1  ;;  %1029 = vmatprep.mubr.bf16.mxu1 %v6264_v1  ;;  %v543_v5 = vpop.permute.xlu1 %542  ;;  %v540_v6 = vpop.permute.xlu0 %539  ;;  %v5867_v3 = vld [vmem:[%s8128_s3 + $0x2e8] ss:$16 sps:$4 sm:$0xff]  }
  0xbc   : > { %vm559_vm0 = vcmp.eq.s32.totalorder %v543_v5, %v6484_v44  ;;  %vm558_vm1 = vcmp.eq.s32.totalorder %v540_v6, %v6484_v44  ;;  %v5803_v44 = vld [vmem:[%s8128_s3 + $0x1cc] ss:$16 sps:$4 sm:$0xff]  }
  0xbd   : > { %2376 = vmatpush1.bf16.msra.mxu0 %v5744_v20  ;;  %2828 = vmatpush1.bf16.msra.mxu1 %v5747_v21  ;;  %v4873_v15 = vsel %vm559_vm0, 1.0, %v6265_v49  ;;  %v4872_v16 = vsel %vm558_vm1, 1.0, %v6265_v49  ;;  %v5806_v49 = vld [vmem:[%s8128_s3 + $0x1e4] ss:$16 sps:$4 sm:$0xff]   ;;  %v5809_v20 = vld [vmem:[%s8128_s3 + $0x1ec] ss:$16 sps:$4 sm:$0xff]  }
  0xbe   : > { %2377 = vmatprep.subr.bf16.mxu0 %v5752_v22  ;;  %2829 = vmatprep.subr.bf16.mxu1 %v5755_v23  ;;  %v599_v19 = vpack.c.bf16 %v4873_v15, %v4872_v16  ;;  %v5804_v21 = vld [vmem:[%s8128_s3 + $0x1e0] ss:$16 sps:$4 sm:$0xff]   ;;  %v5807_v23 = vld [vmem:[%s8128_s3 + $0x1e8] ss:$16 sps:$4 sm:$0xff]   ;;  %v5878_v5 = vld [vmem:[%s8128_s3 + $0x30c] ss:$16 sps:$4 sm:$0xff]  }
  0xbf   : > { %v5812_v22 = vld [vmem:[%s6442_s10 + $0x4] ss:$28 sps:$4 sm:$0xff]   ;;  %v5890_v15 = vld [vmem:[%s6442_s10 + $0x118] ss:$28 sps:$4 sm:$0xff]  }
  0xc0   : > { %4882 = vmatmul.mubr.msk.bf16.gmra.mrb[12].mxu0 %vm816_vm3, %v595_v30  ;;  %4891 = vmatmul.mubr.msk.bf16.gmra.mrb[12].mxu1 %vm816_vm3, %v595_v30  ;;  %v5824_v30 = vld [vmem:[%s8128_s3 + $0x22c] ss:$16 sps:$4 sm:$0xff]   ;;  %v5887_v16 = vld [vmem:[%s8128_s3 + $0x340] ss:$16 sps:$4 sm:$0xff]  }
  0xc1   : > { %2378 = vmatpush1.bf16.msra.mxu0 %v5750_v28  ;;  %2830 = vmatpush1.bf16.msra.mxu1 %v5753_v29  ;;  %v5816_v28 = vld [vmem:[%s8128_s3 + $0x208] ss:$16 sps:$4 sm:$0xff]   ;;  %v5821_v29 = vld [vmem:[%s8128_s3 + $0x224] ss:$16 sps:$4 sm:$0xff]   ;;  %v5875_v6 = vld [vmem:[%s6442_s10 + $0xe0] ss:$28 sps:$4 sm:$0xff]  }
  0xc2   : > { %2379 = vmatprep.subr.bf16.mxu0 %v5758_v31  ;;  %2831 = vmatprep.subr.bf16.mxu1 %v5761_v32  ;;  %v5825_v31 = vld [vmem:[%s6442_s10 + $0x3c] ss:$28 sps:$4 sm:$0xff]   ;;  %v5819_v32 = vld [vmem:[%s8128_s3 + $0x220] ss:$16 sps:$4 sm:$0xff]  }
  0xc3   : > { %926 = vmatprep.mubr.bf16.mxu0 %v6264_v1  ;;  %1039 = vmatprep.mubr.bf16.mxu1 %v6264_v1 }
  0xc5   : > { %2380 = vmatpush1.bf16.msra.mxu0 %v5756_v33  ;;  %2832 = vmatpush1.bf16.msra.mxu1 %v5759_v34  ;;  %v5822_v33 = vld [vmem:[%s8128_s3 + $0x228] ss:$16 sps:$4 sm:$0xff]   ;;  %v5829_v34 = vld [vmem:[%s8128_s3 + $0x244] ss:$16 sps:$4 sm:$0xff]  }
  0xc6   : > { %2381 = vmatprep.subr.bf16.mxu0 %v5764_v35  ;;  %2833 = vmatprep.subr.bf16.mxu1 %v5767_v36  ;;  %v5833_v35 = vld [vmem:[%s8128_s3 + $0x24c] ss:$16 sps:$4 sm:$0xff]   ;;  %v5830_v36 = vld [vmem:[%s6442_s10 + $0x38] ss:$28 sps:$4 sm:$0xff]  }
  0xc8   : > { %4883 = vmatmul.mubr.msk.bf16.gmra.mrb[16].mxu0 %vm816_vm3, %v596_v45  ;;  %4892 = vmatmul.mubr.msk.bf16.gmra.mrb[16].mxu1 %vm816_vm3, %v596_v45  ;;  %v5837_v45 = vld [vmem:[%s8128_s3 + $0x268] ss:$16 sps:$4 sm:$0xff]  }
  0xc9   : > { %2382 = vmatpush1.bf16.msra.mxu0 %v5762_v41  ;;  %2834 = vmatpush1.bf16.msra.mxu1 %v5765_v42  ;;  %v5840_v41 = vld [vmem:[%s6442_s10 + $0x74] ss:$28 sps:$4 sm:$0xff]  }
  0xca   : > { %2383 = vmatprep.subr.bf16.mxu0 %v5770_v46  ;;  %2835 = vmatprep.subr.bf16.mxu1 %v5773_v47  ;;  %v5834_v42 = vld [vmem:[%s8128_s3 + $0x260] ss:$16 sps:$4 sm:$0xff]   ;;  %v5844_v46 = vld [vmem:[%s8128_s3 + $0x284] ss:$16 sps:$4 sm:$0xff]   ;;  %v5848_v47 = vld [vmem:[%s8128_s3 + $0x28c] ss:$16 sps:$4 sm:$0xff]  }
  0xcb   : > { %936 = vmatprep.mubr.bf16.mxu0 %v6264_v1  ;;  %1049 = vmatprep.mubr.bf16.mxu1 %v6264_v1 }
  0xcd   : > { %2384 = vmatpush1.bf16.msra.mxu0 %v5768_v48  ;;  %2836 = vmatpush1.bf16.msra.mxu1 %v5771_v50  ;;  %v5845_v48 = vld [vmem:[%s6442_s10 + $0x70] ss:$28 sps:$4 sm:$0xff]  }
  0xce   : > { %2385 = vmatprep.subr.bf16.mxu0 %v5776_v51  ;;  %2837 = vmatprep.subr.bf16.mxu1 %v5779_v52  ;;  %v5842_v50 = vld [vmem:[%s8128_s3 + $0x280] ss:$16 sps:$4 sm:$0xff]   ;;  %v5846_v51 = vld [vmem:[%s8128_s3 + $0x288] ss:$16 sps:$4 sm:$0xff]   ;;  %v5851_v52 = vld [vmem:[%s8128_s3 + $0x2a4] ss:$16 sps:$4 sm:$0xff]  }
  0xd0   : > { %4884 = vmatmul.mubr.msk.bf16.gmra.mrb[20].mxu0 %vm816_vm3, %v597_v59  ;;  %4893 = vmatmul.mubr.msk.bf16.gmra.mrb[20].mxu1 %vm816_vm3, %v597_v59  ;;  %v5860_v59 = vld [vmem:[%s6442_s10 + $0xa8] ss:$28 sps:$4 sm:$0xff]  }
  0xd1   : > { %2386 = vmatpush1.bf16.msra.mxu0 %v5774_v57  ;;  %2838 = vmatpush1.bf16.msra.mxu1 %v5777_v58  ;;  %v5859_v57 = vld [vmem:[%s8128_s3 + $0x2c4] ss:$16 sps:$4 sm:$0xff]   ;;  %v5863_v58 = vld [vmem:[%s8128_s3 + $0x2cc] ss:$16 sps:$4 sm:$0xff]  }
  0xd2   : > { %2387 = vmatprep.subr.bf16.mxu0 %v5782_v60  ;;  %2839 = vmatprep.subr.bf16.mxu1 %v5785_v61  ;;  %v5857_v60 = vld [vmem:[%s8128_s3 + $0x2c0] ss:$16 sps:$4 sm:$0xff]   ;;  %v5861_v61 = vld [vmem:[%s8128_s3 + $0x2c8] ss:$16 sps:$4 sm:$0xff]  }
  0xd3   : > { %946 = vmatprep.mubr.bf16.mxu0 %v6264_v1  ;;  %1059 = vmatprep.mubr.bf16.mxu1 %v6264_v1 }
  0xd5   : > { %2388 = vmatpush1.bf16.msra.mxu0 %v5780_v62  ;;  %2840 = vmatpush1.bf16.msra.mxu1 %v5783_v63  ;;  %v5866_v62 = vld [vmem:[%s8128_s3 + $0x2e4] ss:$16 sps:$4 sm:$0xff]   ;;  %v5869_v63 = vld [vmem:[%s8128_s3 + $0x2ec] ss:$16 sps:$4 sm:$0xff]  }
  0xd6   : > { %2389 = vmatprep.subr.bf16.mxu0 %v5788_v0  ;;  %2841 = vmatprep.subr.bf16.mxu1 %v5791_v2  ;;  %v5870_v0 = vld [vmem:[%s6442_s10 + $0xe4] ss:$28 sps:$4 sm:$0xff]  }
  0xd7   : > { %v5864_v2 = vld [vmem:[%s8128_s3 + $0x2e0] ss:$16 sps:$4 sm:$0xff]  }
  0xd8   : > { %4885 = vmatmul.mubr.msk.bf16.gmra.mrb[24].mxu0 %vm816_vm3, %v598_v9  ;;  %4894 = vmatmul.mubr.msk.bf16.gmra.mrb[24].mxu1 %vm816_vm3, %v598_v9  ;;  %v5881_v9 = vld [vmem:[%s8128_s3 + $0x324] ss:$16 sps:$4 sm:$0xff]  }
  0xd9   : > { %2390 = vmatpush1.bf16.msra.mxu0 %v5786_v7  ;;  %2842 = vmatpush1.bf16.msra.mxu1 %v5789_v8  ;;  %v5872_v7 = vld [vmem:[%s8128_s3 + $0x300] ss:$16 sps:$4 sm:$0xff]   ;;  %v5876_v8 = vld [vmem:[%s8128_s3 + $0x308] ss:$16 sps:$4 sm:$0xff]  }
  0xda   : > { %2391 = vmatprep.subr.bf16.mxu0 %v5794_v10  ;;  %2843 = vmatprep.subr.bf16.mxu1 %v5797_v11  ;;  %v5884_v10 = vld [vmem:[%s8128_s3 + $0x32c] ss:$16 sps:$4 sm:$0xff]  }
  0xdb   : > { %956 = vmatprep.mubr.bf16.mxu0 %v6264_v1  ;;  %1069 = vmatprep.mubr.bf16.mxu1 %v6264_v1  ;;  %v5885_v11 = vld [vmem:[%s6442_s10 + $0x11c] ss:$28 sps:$4 sm:$0xff]  }
  0xdd   : > { %2392 = vmatpush1.bf16.msra.mxu0 %v5792_v12  ;;  %2844 = vmatpush1.bf16.msra.mxu1 %v5795_v13  ;;  %v5879_v12 = vld [vmem:[%s8128_s3 + $0x320] ss:$16 sps:$4 sm:$0xff]   ;;  %v5882_v13 = vld [vmem:[%s8128_s3 + $0x328] ss:$16 sps:$4 sm:$0xff]  }
  0xde   : > { %2393 = vmatprep.subr.bf16.mxu0 %v5800_v14  ;;  %2845 = vmatprep.subr.bf16.mxu1 %v5803_v44  ;;  %v5889_v14 = vld [vmem:[%s8128_s3 + $0x344] ss:$16 sps:$4 sm:$0xff]   ;;  %v5893_v44 = vld [vmem:[%s8128_s3 + $0x34c] ss:$16 sps:$4 sm:$0xff]  }
  0xe0   : > { %4886 = vmatmul.mubr.msk.bf16.gmra.mrb[28].mxu0 %vm816_vm3, %v599_v19  ;;  %4895 = vmatmul.mubr.msk.bf16.gmra.mrb[28].mxu1 %vm816_vm3, %v599_v19  ;;  %v5899_v19 = vld [vmem:[%s8128_s3 + $0x36c] ss:$16 sps:$4 sm:$0xff]  }
  0xe1   : > { %2394 = vmatpush1.bf16.msra.mxu0 %v5798_v17  ;;  %2846 = vmatpush1.bf16.msra.mxu1 %v5801_v18  ;;  %v5891_v17 = vld [vmem:[%s8128_s3 + $0x348] ss:$16 sps:$4 sm:$0xff]   ;;  %v5896_v18 = vld [vmem:[%s8128_s3 + $0x364] ss:$16 sps:$4 sm:$0xff]  }
  0xe2   : > { %2395 = vmatprep.subr.bf16.mxu0 %v5806_v49  ;;  %2847 = vmatprep.subr.bf16.mxu1 %v5809_v20  ;;  %v5900_v49 = vld [vmem:[%s6442_s10 + $0x154] ss:$28 sps:$4 sm:$0xff]  }
  0xe3   : > { %2397 = vmatprep.mubr.bf16.mxu0 %v5812_v22  ;;  %2849 = vmatprep.mubr.bf16.mxu1 %v5812_v22  ;;  %v5894_v20 = vld [vmem:[%s8128_s3 + $0x360] ss:$16 sps:$4 sm:$0xff]   ;;  %v5904_v22 = vld [vmem:[%s8128_s3 + $0x384] ss:$16 sps:$4 sm:$0xff]  }
  0xe5   : > { %2396 = vmatpush1.bf16.msra.mxu0 %v5804_v21  ;;  %2848 = vmatpush1.bf16.msra.mxu1 %v5807_v23  ;;  %v5897_v21 = vld [vmem:[%s8128_s3 + $0x368] ss:$16 sps:$4 sm:$0xff]   ;;  %v5908_v23 = vld [vmem:[%s8128_s3 + $0x38c] ss:$16 sps:$4 sm:$0xff]  }
  0xe6   : > { %2478 = vmatprep.subr.bf16.mxu0 %v5815_v24  ;;  %2930 = vmatprep.subr.bf16.mxu1 %v5818_v26  ;;  %v5905_v24 = vld [vmem:[%s6442_s10 + $0x150] ss:$28 sps:$4 sm:$0xff]   ;;  %v5906_v26 = vld [vmem:[%s8128_s3 + $0x388] ss:$16 sps:$4 sm:$0xff]  }
  0xe8   : > { %2398 = vmatmul.mubr.bf16.vlgmr.msra.gmra.mrb[0].mxu0 %v5810_v25  ;;  %2850 = vmatmul.mubr.bf16.vlgmr.msra.gmra.mrb[0].mxu1 %v5810_v25  ;;  %v5902_v25 = vld [vmem:[%s8128_s3 + $0x380] ss:$16 sps:$4 sm:$0xff]  }
  0xe9   : > { %2479 = vmatpush1.bf16.msra.mxu0 %v5813_v27  ;;  %2931 = vmatpush1.bf16.msra.mxu1 %v5816_v28  ;;  %v5911_v27 = vld [vmem:[%s8128_s3 + $0x3a4] ss:$16 sps:$4 sm:$0xff]   ;;  %v5914_v28 = vld [vmem:[%s8128_s3 + $0x3ac] ss:$16 sps:$4 sm:$0xff]  }
  0xea   : > { %2480 = vmatprep.subr.bf16.mxu0 %v5821_v29  ;;  %2932 = vmatprep.subr.bf16.mxu1 %v5824_v30  ;;  %v5915_v29 = vld [vmem:[%s6442_s10 + $0x18c] ss:$28 sps:$4 sm:$0xff]   ;;  %v5909_v30 = vld [vmem:[%s8128_s3 + $0x3a0] ss:$16 sps:$4 sm:$0xff]  }
  0xeb   : > { %2407 = vmatprep.mubr.bf16.mxu0 %v5825_v31  ;;  %2859 = vmatprep.mubr.bf16.mxu1 %v5825_v31  ;;  %v5912_v31 = vld [vmem:[%s8128_s3 + $0x3a8] ss:$16 sps:$4 sm:$0xff]  }
  0xed   : > { %2481 = vmatpush1.bf16.msra.mxu0 %v5819_v32  ;;  %2933 = vmatpush1.bf16.msra.mxu1 %v5822_v33  ;;  %v5919_v32 = vld [vmem:[%s8128_s3 + $0x3c4] ss:$16 sps:$4 sm:$0xff]   ;;  %v5923_v33 = vld [vmem:[%s8128_s3 + $0x3cc] ss:$16 sps:$4 sm:$0xff]  }
  0xee   : > { %2482 = vmatprep.subr.bf16.mxu0 %v5829_v34  ;;  %2934 = vmatprep.subr.bf16.mxu1 %v5833_v35  ;;  %v5920_v34 = vld [vmem:[%s6442_s10 + $0x188] ss:$28 sps:$4 sm:$0xff]   ;;  %v5917_v35 = vld [vmem:[%s8128_s3 + $0x3c0] ss:$16 sps:$4 sm:$0xff]  }
  0xf0   : > { %2408 = vmatmul.mubr.bf16.gmra.mrb[4].mxu0 %v5830_v36  ;;  %2860 = vmatmul.mubr.bf16.gmra.mrb[4].mxu1 %v5830_v36  ;;  %v5921_v36 = vld [vmem:[%s8128_s3 + $0x3c8] ss:$16 sps:$4 sm:$0xff]  }
  0xf1   : > { %2483 = vmatpush1.bf16.msra.mxu0 %v5827_v37  ;;  %2935 = vmatpush1.bf16.msra.mxu1 %v5831_v38  ;;  %v5926_v37 = vld [vmem:[%s8128_s3 + $0x3e4] ss:$16 sps:$4 sm:$0xff]   ;;  %v5929_v38 = vld [vmem:[%s8128_s3 + $0x3ec] ss:$16 sps:$4 sm:$0xff]  }
  0xf2   : > { %2484 = vmatprep.subr.bf16.mxu0 %v5836_v39  ;;  %2936 = vmatprep.subr.bf16.mxu1 %v5839_v40  ;;  %v5932_v39 = vld [vmem:[%s6442_s10 + $0xc] ss:$28 sps:$4 sm:$0xff]   ;;  %v5924_v40 = vld [vmem:[%s8128_s3 + $0x3e0] ss:$16 sps:$4 sm:$0xff]  }
  0xf3   : > { %2417 = vmatprep.mubr.bf16.mxu0 %v5840_v41  ;;  %2869 = vmatprep.mubr.bf16.mxu1 %v5840_v41  ;;  %v5927_v41 = vld [vmem:[%s8128_s3 + $0x3e8] ss:$16 sps:$4 sm:$0xff]  }
  0xf5   : > { %2485 = vmatpush1.bf16.msra.mxu0 %v5834_v42  ;;  %2937 = vmatpush1.bf16.msra.mxu1 %v5837_v45  ;;  %v5935_v42 = vld [vmem:[%s8128_s3 + $0x404] ss:$16 sps:$4 sm:$0xff]   ;;  %v5938_v45 = vld [vmem:[%s8128_s3 + $0x40c] ss:$16 sps:$4 sm:$0xff]  }
  0xf6   : > { %2486 = vmatprep.subr.bf16.mxu0 %v5844_v46  ;;  %2938 = vmatprep.subr.bf16.mxu1 %v5848_v47  ;;  %v5930_v46 = vld [vmem:[%s6442_s10 + $0x8] ss:$28 sps:$4 sm:$0xff]   ;;  %v5933_v47 = vld [vmem:[%s8128_s3 + $0x400] ss:$16 sps:$4 sm:$0xff]  }
  0xf8   : > { %2418 = vmatmul.mubr.bf16.gmra.mrb[8].mxu0 %v5845_v48  ;;  %2870 = vmatmul.mubr.bf16.gmra.mrb[8].mxu1 %v5845_v48  ;;  %v5936_v48 = vld [vmem:[%s8128_s3 + $0x408] ss:$16 sps:$4 sm:$0xff]  }
  0xf9   : > { %2487 = vmatpush1.bf16.msra.mxu0 %v5842_v50  ;;  %2939 = vmatpush1.bf16.msra.mxu1 %v5846_v51  ;;  %v5941_v50 = vld [vmem:[%s8128_s3 + $0x424] ss:$16 sps:$4 sm:$0xff]   ;;  %v5944_v51 = vld [vmem:[%s8128_s3 + $0x42c] ss:$16 sps:$4 sm:$0xff]  }
  0xfa   : > { %2488 = vmatprep.subr.bf16.mxu0 %v5851_v52  ;;  %2940 = vmatprep.subr.bf16.mxu1 %v5854_v53  ;;  %v5945_v52 = vld [vmem:[%s6442_s10 + $0x44] ss:$28 sps:$4 sm:$0xff]  }
  0xfb   : > { %2427 = vmatprep.mubr.bf16.mxu0 %v5855_v54  ;;  %2879 = vmatprep.mubr.bf16.mxu1 %v5855_v54  ;;  %v5939_v53 = vld [vmem:[%s8128_s3 + $0x420] ss:$16 sps:$4 sm:$0xff]   ;;  %v5942_v54 = vld [vmem:[%s8128_s3 + $0x428] ss:$16 sps:$4 sm:$0xff]  }
  0xfd   : > { %2489 = vmatpush1.bf16.msra.mxu0 %v5849_v55  ;;  %2941 = vmatpush1.bf16.msra.mxu1 %v5852_v56  ;;  %v5949_v55 = vld [vmem:[%s8128_s3 + $0x444] ss:$16 sps:$4 sm:$0xff]   ;;  %v5953_v56 = vld [vmem:[%s8128_s3 + $0x44c] ss:$16 sps:$4 sm:$0xff]  }
  0xfe   : > { %2490 = vmatprep.subr.bf16.mxu0 %v5859_v57  ;;  %2942 = vmatprep.subr.bf16.mxu1 %v5863_v58  ;;  %v5950_v57 = vld [vmem:[%s6442_s10 + $0x40] ss:$28 sps:$4 sm:$0xff]  }
  0xff   : > { %v5947_v58 = vld [vmem:[%s8128_s3 + $0x440] ss:$16 sps:$4 sm:$0xff]  }
 0x100   : > { %2428 = vmatmul.mubr.bf16.gmra.mrb[12].mxu0 %v5860_v59  ;;  %2880 = vmatmul.mubr.bf16.gmra.mrb[12].mxu1 %v5860_v59  ;;  %v5951_v59 = vld [vmem:[%s8128_s3 + $0x448] ss:$16 sps:$4 sm:$0xff]  }
 0x101   : > { %2491 = vmatpush1.bf16.msra.mxu0 %v5857_v60  ;;  %2943 = vmatpush1.bf16.msra.mxu1 %v5861_v61  ;;  %v5956_v60 = vld [vmem:[%s8128_s3 + $0x464] ss:$16 sps:$4 sm:$0xff]   ;;  %v5959_v61 = vld [vmem:[%s8128_s3 + $0x46c] ss:$16 sps:$4 sm:$0xff]  }
 0x102   : > { %2492 = vmatprep.subr.bf16.mxu0 %v5866_v62  ;;  %2944 = vmatprep.subr.bf16.mxu1 %v5869_v63  ;;  %v5960_v62 = vld [vmem:[%s6442_s10 + $0x7c] ss:$28 sps:$4 sm:$0xff]   ;;  %v5954_v63 = vld [vmem:[%s8128_s3 + $0x460] ss:$16 sps:$4 sm:$0xff]  }
 0x103   : > { %2437 = vmatprep.mubr.bf16.mxu0 %v5870_v0  ;;  %2889 = vmatprep.mubr.bf16.mxu1 %v5870_v0  ;;  %v5957_v0 = vld [vmem:[%s8128_s3 + $0x468] ss:$16 sps:$4 sm:$0xff]  }
 0x105   : > { %2493 = vmatpush1.bf16.msra.mxu0 %v5864_v2  ;;  %2945 = vmatpush1.bf16.msra.mxu1 %v5867_v3  ;;  %v5964_v2 = vld [vmem:[%s8128_s3 + $0x484] ss:$16 sps:$4 sm:$0xff]   ;;  %v5968_v3 = vld [vmem:[%s8128_s3 + $0x48c] ss:$16 sps:$4 sm:$0xff]  }
 0x106   : > { %2494 = vmatprep.subr.bf16.mxu0 %v5874_v4  ;;  %2946 = vmatprep.subr.bf16.mxu1 %v5878_v5  ;;  %v5965_v4 = vld [vmem:[%s6442_s10 + $0x78] ss:$28 sps:$4 sm:$0xff]   ;;  %v5962_v5 = vld [vmem:[%s8128_s3 + $0x480] ss:$16 sps:$4 sm:$0xff]  }
 0x108   : > { %2438 = vmatmul.mubr.bf16.gmra.mrb[16].mxu0 %v5875_v6  ;;  %2890 = vmatmul.mubr.bf16.gmra.mrb[16].mxu1 %v5875_v6  ;;  %v5966_v6 = vld [vmem:[%s8128_s3 + $0x488] ss:$16 sps:$4 sm:$0xff]  }
 0x109   : > { %2495 = vmatpush1.bf16.msra.mxu0 %v5872_v7  ;;  %2947 = vmatpush1.bf16.msra.mxu1 %v5876_v8  ;;  %v5971_v7 = vld [vmem:[%s8128_s3 + $0x4a4] ss:$16 sps:$4 sm:$0xff]   ;;  %v5974_v8 = vld [vmem:[%s8128_s3 + $0x4ac] ss:$16 sps:$4 sm:$0xff]  }
 0x10a   : > { %2496 = vmatprep.subr.bf16.mxu0 %v5881_v9  ;;  %2948 = vmatprep.subr.bf16.mxu1 %v5884_v10  ;;  %v5975_v9 = vld [vmem:[%s6442_s10 + $0xb4] ss:$28 sps:$4 sm:$0xff]  }
 0x10b   : > { %2447 = vmatprep.mubr.bf16.mxu0 %v5885_v11  ;;  %2899 = vmatprep.mubr.bf16.mxu1 %v5885_v11  ;;  %v5969_v10 = vld [vmem:[%s8128_s3 + $0x4a0] ss:$16 sps:$4 sm:$0xff]   ;;  %v5972_v11 = vld [vmem:[%s8128_s3 + $0x4a8] ss:$16 sps:$4 sm:$0xff]  }
 0x10d   : > { %2497 = vmatpush1.bf16.msra.mxu0 %v5879_v12  ;;  %2949 = vmatpush1.bf16.msra.mxu1 %v5882_v13  ;;  %v5979_v12 = vld [vmem:[%s8128_s3 + $0x4c4] ss:$16 sps:$4 sm:$0xff]   ;;  %v5983_v13 = vld [vmem:[%s8128_s3 + $0x4cc] ss:$16 sps:$4 sm:$0xff]  }
 0x10e   : > { %2498 = vmatprep.subr.bf16.mxu0 %v5889_v14  ;;  %2950 = vmatprep.subr.bf16.mxu1 %v5893_v44  ;;  %v5980_v14 = vld [vmem:[%s6442_s10 + $0xb0] ss:$28 sps:$4 sm:$0xff]  }
 0x10f   : > { %v5977_v44 = vld [vmem:[%s8128_s3 + $0x4c0] ss:$16 sps:$4 sm:$0xff]  }
 0x110   : > { %2448 = vmatmul.mubr.bf16.gmra.mrb[20].mxu0 %v5890_v15  ;;  %2900 = vmatmul.mubr.bf16.gmra.mrb[20].mxu1 %v5890_v15  ;;  %v5981_v15 = vld [vmem:[%s8128_s3 + $0x4c8] ss:$16 sps:$4 sm:$0xff]  }
 0x111   : > { %2499 = vmatpush1.bf16.msra.mxu0 %v5887_v16  ;;  %2951 = vmatpush1.bf16.msra.mxu1 %v5891_v17  ;;  %v5986_v16 = vld [vmem:[%s8128_s3 + $0x4e4] ss:$16 sps:$4 sm:$0xff]   ;;  %v5989_v17 = vld [vmem:[%s8128_s3 + $0x4ec] ss:$16 sps:$4 sm:$0xff]  }
 0x112   : > { %2500 = vmatprep.subr.bf16.mxu0 %v5896_v18  ;;  %2952 = vmatprep.subr.bf16.mxu1 %v5899_v19  ;;  %v5990_v18 = vld [vmem:[%s6442_s10 + $0xec] ss:$28 sps:$4 sm:$0xff]   ;;  %v5984_v19 = vld [vmem:[%s8128_s3 + $0x4e0] ss:$16 sps:$4 sm:$0xff]  }
 0x113   : > { %2457 = vmatprep.mubr.bf16.mxu0 %v5900_v49  ;;  %2909 = vmatprep.mubr.bf16.mxu1 %v5900_v49  ;;  %v5987_v49 = vld [vmem:[%s8128_s3 + $0x4e8] ss:$16 sps:$4 sm:$0xff]  }
 0x115   : > { %2501 = vmatpush1.bf16.msra.mxu0 %v5894_v20  ;;  %2953 = vmatpush1.bf16.msra.mxu1 %v5897_v21  ;;  %v5994_v20 = vld [vmem:[%s8128_s3 + $0x504] ss:$16 sps:$4 sm:$0xff]   ;;  %v5998_v21 = vld [vmem:[%s8128_s3 + $0x50c] ss:$16 sps:$4 sm:$0xff]  }
 0x116   : > { %2502 = vmatprep.subr.bf16.mxu0 %v5904_v22  ;;  %2954 = vmatprep.subr.bf16.mxu1 %v5908_v23  ;;  %v5995_v22 = vld [vmem:[%s6442_s10 + $0xe8] ss:$28 sps:$4 sm:$0xff]   ;;  %v5992_v23 = vld [vmem:[%s8128_s3 + $0x500] ss:$16 sps:$4 sm:$0xff]  }
 0x118   : > { %2458 = vmatmul.mubr.bf16.gmra.mrb[24].mxu0 %v5905_v24  ;;  %2910 = vmatmul.mubr.bf16.gmra.mrb[24].mxu1 %v5905_v24  ;;  %v5996_v24 = vld [vmem:[%s8128_s3 + $0x508] ss:$16 sps:$4 sm:$0xff]  }
 0x119   : > { %2503 = vmatpush1.bf16.msra.mxu0 %v5902_v25  ;;  %2955 = vmatpush1.bf16.msra.mxu1 %v5906_v26  ;;  %v6001_v25 = vld [vmem:[%s8128_s3 + $0x524] ss:$16 sps:$4 sm:$0xff]   ;;  %v6004_v26 = vld [vmem:[%s8128_s3 + $0x52c] ss:$16 sps:$4 sm:$0xff]  }
 0x11a   : > { %2504 = vmatprep.subr.bf16.mxu0 %v5911_v27  ;;  %2956 = vmatprep.subr.bf16.mxu1 %v5914_v28  ;;  %v6005_v27 = vld [vmem:[%s6442_s10 + $0x124] ss:$28 sps:$4 sm:$0xff]  }
 0x11b   : > { %2467 = vmatprep.mubr.bf16.mxu0 %v5915_v29  ;;  %2919 = vmatprep.mubr.bf16.mxu1 %v5915_v29  ;;  %v5999_v28 = vld [vmem:[%s8128_s3 + $0x520] ss:$16 sps:$4 sm:$0xff]   ;;  %v6002_v29 = vld [vmem:[%s8128_s3 + $0x528] ss:$16 sps:$4 sm:$0xff]  }
 0x11d   : > { %2505 = vmatpush1.bf16.msra.mxu0 %v5909_v30  ;;  %2957 = vmatpush1.bf16.msra.mxu1 %v5912_v31  ;;  %v6009_v30 = vld [vmem:[%s8128_s3 + $0x544] ss:$16 sps:$4 sm:$0xff]   ;;  %v6013_v31 = vld [vmem:[%s8128_s3 + $0x54c] ss:$16 sps:$4 sm:$0xff]  }
 0x11e   : > { %2506 = vmatprep.subr.bf16.mxu0 %v5919_v32  ;;  %2958 = vmatprep.subr.bf16.mxu1 %v5923_v33  ;;  %v6010_v32 = vld [vmem:[%s6442_s10 + $0x120] ss:$28 sps:$4 sm:$0xff]  }
 0x11f   : > { %v6007_v33 = vld [vmem:[%s8128_s3 + $0x540] ss:$16 sps:$4 sm:$0xff]  }
 0x120   : > { %2468 = vmatmul.mubr.bf16.gmra.mrb[28].mxu0 %v5920_v34  ;;  %2920 = vmatmul.mubr.bf16.gmra.mrb[28].mxu1 %v5920_v34  ;;  %v6011_v34 = vld [vmem:[%s8128_s3 + $0x548] ss:$16 sps:$4 sm:$0xff]  }
 0x121   : > { %2507 = vmatpush1.bf16.msra.mxu0 %v5917_v35  ;;  %2959 = vmatpush1.bf16.msra.mxu1 %v5921_v36  ;;  %v6016_v35 = vld [vmem:[%s8128_s3 + $0x564] ss:$16 sps:$4 sm:$0xff]   ;;  %v6019_v36 = vld [vmem:[%s8128_s3 + $0x56c] ss:$16 sps:$4 sm:$0xff]  }
 0x122   : > { %2508 = vmatprep.subr.bf16.mxu0 %v5926_v37  ;;  %2960 = vmatprep.subr.bf16.mxu1 %v5929_v38  ;;  %v6020_v37 = vld [vmem:[%s6442_s10 + $0x15c] ss:$28 sps:$4 sm:$0xff]   ;;  %v6014_v38 = vld [vmem:[%s8128_s3 + $0x560] ss:$16 sps:$4 sm:$0xff]  }
 0x123   : > { %2510 = vmatprep.mubr.bf16.mxu0 %v5932_v39  ;;  %2962 = vmatprep.mubr.bf16.mxu1 %v5932_v39  ;;  %v6017_v39 = vld [vmem:[%s8128_s3 + $0x568] ss:$16 sps:$4 sm:$0xff]  }
 0x125   : > { %2509 = vmatpush1.bf16.msra.mxu0 %v5924_v40  ;;  %2961 = vmatpush1.bf16.msra.mxu1 %v5927_v41  ;;  %v6024_v40 = vld [vmem:[%s8128_s3 + $0x584] ss:$16 sps:$4 sm:$0xff]   ;;  %v6028_v41 = vld [vmem:[%s8128_s3 + $0x58c] ss:$16 sps:$4 sm:$0xff]  }
 0x126   : > { %2591 = vmatprep.subr.bf16.mxu0 %v5935_v42  ;;  %3043 = vmatprep.subr.bf16.mxu1 %v5938_v45  ;;  %v6025_v42 = vld [vmem:[%s6442_s10 + $0x158] ss:$28 sps:$4 sm:$0xff]   ;;  %v6022_v45 = vld [vmem:[%s8128_s3 + $0x580] ss:$16 sps:$4 sm:$0xff]  }
 0x128   : > { %2511 = vmatmul.mubr.bf16.vlgmr.msra.gmra.mrb[0].mxu0 %v5930_v46  ;;  %2963 = vmatmul.mubr.bf16.vlgmr.msra.gmra.mrb[0].mxu1 %v5930_v46  ;;  %v6026_v46 = vld [vmem:[%s8128_s3 + $0x588] ss:$16 sps:$4 sm:$0xff]  }
 0x129   : > { %2592 = vmatpush1.bf16.msra.mxu0 %v5933_v47  ;;  %3044 = vmatpush1.bf16.msra.mxu1 %v5936_v48  ;;  %v6031_v47 = vld [vmem:[%s8128_s3 + $0x5a4] ss:$16 sps:$4 sm:$0xff]   ;;  %v6034_v48 = vld [vmem:[%s8128_s3 + $0x5ac] ss:$16 sps:$4 sm:$0xff]  }
 0x12a   : > { %2593 = vmatprep.subr.bf16.mxu0 %v5941_v50  ;;  %3045 = vmatprep.subr.bf16.mxu1 %v5944_v51  ;;  %v6035_v50 = vld [vmem:[%s6442_s10 + $0x194] ss:$28 sps:$4 sm:$0xff]  }
 0x12b   : > { %2520 = vmatprep.mubr.bf16.mxu0 %v5945_v52  ;;  %2972 = vmatprep.mubr.bf16.mxu1 %v5945_v52  ;;  %v6029_v51 = vld [vmem:[%s8128_s3 + $0x5a0] ss:$16 sps:$4 sm:$0xff]   ;;  %v6032_v52 = vld [vmem:[%s8128_s3 + $0x5a8] ss:$16 sps:$4 sm:$0xff]  }
 0x12d   : > { %2594 = vmatpush1.bf16.msra.mxu0 %v5939_v53  ;;  %3046 = vmatpush1.bf16.msra.mxu1 %v5942_v54  ;;  %v6039_v53 = vld [vmem:[%s8128_s3 + $0x5c4] ss:$16 sps:$4 sm:$0xff]   ;;  %v6043_v54 = vld [vmem:[%s8128_s3 + $0x5cc] ss:$16 sps:$4 sm:$0xff]  }
 0x12e   : > { %2595 = vmatprep.subr.bf16.mxu0 %v5949_v55  ;;  %3047 = vmatprep.subr.bf16.mxu1 %v5953_v56  ;;  %v6040_v55 = vld [vmem:[%s6442_s10 + $0x190] ss:$28 sps:$4 sm:$0xff]  }
 0x12f   : > { %v6037_v56 = vld [vmem:[%s8128_s3 + $0x5c0] ss:$16 sps:$4 sm:$0xff]  }
 0x130   : > { %2521 = vmatmul.mubr.bf16.gmra.mrb[4].mxu0 %v5950_v57  ;;  %2973 = vmatmul.mubr.bf16.gmra.mrb[4].mxu1 %v5950_v57  ;;  %v6041_v57 = vld [vmem:[%s8128_s3 + $0x5c8] ss:$16 sps:$4 sm:$0xff]  }
 0x131   : > { %2596 = vmatpush1.bf16.msra.mxu0 %v5947_v58  ;;  %3048 = vmatpush1.bf16.msra.mxu1 %v5951_v59  ;;  %v6046_v58 = vld [vmem:[%s8128_s3 + $0x5e4] ss:$16 sps:$4 sm:$0xff]   ;;  %v6049_v59 = vld [vmem:[%s8128_s3 + $0x5ec] ss:$16 sps:$4 sm:$0xff]  }
 0x132   : > { %2597 = vmatprep.subr.bf16.mxu0 %v5956_v60  ;;  %3049 = vmatprep.subr.bf16.mxu1 %v5959_v61  ;;  %v6052_v60 = vld [vmem:[%s6442_s10 + $0x14] ss:$28 sps:$4 sm:$0xff]  }
 0x133   : > { %2530 = vmatprep.mubr.bf16.mxu0 %v5960_v62  ;;  %2982 = vmatprep.mubr.bf16.mxu1 %v5960_v62  ;;  %v6044_v61 = vld [vmem:[%s8128_s3 + $0x5e0] ss:$16 sps:$4 sm:$0xff]   ;;  %v6047_v62 = vld [vmem:[%s8128_s3 + $0x5e8] ss:$16 sps:$4 sm:$0xff]  }
 0x135   : > { %2598 = vmatpush1.bf16.msra.mxu0 %v5954_v63  ;;  %3050 = vmatpush1.bf16.msra.mxu1 %v5957_v0  ;;  %v6055_v63 = vld [vmem:[%s8128_s3 + $0x604] ss:$16 sps:$4 sm:$0xff]   ;;  %v6079_v0 = vld [vmem:[%s8128_s3 + $0x60c] ss:$16 sps:$4 sm:$0xff]  }
 0x136   : > { %2599 = vmatprep.subr.bf16.mxu0 %v5964_v2  ;;  %3051 = vmatprep.subr.bf16.mxu1 %v5968_v3  ;;  %v6050_v2 = vld [vmem:[%s6442_s10 + $0x10] ss:$28 sps:$4 sm:$0xff]  }
 0x137   : > { %v6053_v3 = vld [vmem:[%s8128_s3 + $0x600] ss:$16 sps:$4 sm:$0xff]  }
 0x138   : > { %2531 = vmatmul.mubr.bf16.gmra.mrb[8].mxu0 %v5965_v4  ;;  %2983 = vmatmul.mubr.bf16.gmra.mrb[8].mxu1 %v5965_v4  ;;  %v6056_v4 = vld [vmem:[%s6442_s10 + $0x4c] ss:$28 sps:$4 sm:$0xff]  }
 0x139   : > { %2600 = vmatpush1.bf16.msra.mxu0 %v5962_v5  ;;  %3052 = vmatpush1.bf16.msra.mxu1 %v5966_v6  ;;  %v6077_v5 = vld [vmem:[%s8128_s3 + $0x608] ss:$16 sps:$4 sm:$0xff]   ;;  %v6090_v6 = vld [vmem:[%s8130_s5 + $0x4] ss:$8 sps:$4 sm:$0xff]  }
 0x13a   : > { %2601 = vmatprep.subr.bf16.mxu0 %v5971_v7  ;;  %3053 = vmatprep.subr.bf16.mxu1 %v5974_v8  ;;  %v7171_v7 = vld [vmem:[%s8130_s5 + $0x104] ss:$8 sps:$4 sm:$0xff]  }
 0x13b   : > { %2540 = vmatprep.mubr.bf16.mxu0 %v5975_v9  ;;  %2992 = vmatprep.mubr.bf16.mxu1 %v5975_v9  ;;  %v6058_v8 = vld [vmem:[%s6442_s10 + $0x48] ss:$28 sps:$4 sm:$0xff]  }
 0x13c   : > { %v6059_v9 = vld [vmem:[%s6442_s10 + $0x84] ss:$28 sps:$4 sm:$0xff]  }
 0x13d   : > { %2602 = vmatpush1.bf16.msra.mxu0 %v5969_v10  ;;  %3054 = vmatpush1.bf16.msra.mxu1 %v5972_v11  ;;  %v6061_v10 = vld [vmem:[%s6442_s10 + $0x80] ss:$28 sps:$4 sm:$0xff]  }
 0x13e   : > { %2603 = vmatprep.subr.bf16.mxu0 %v5979_v12  ;;  %3055 = vmatprep.subr.bf16.mxu1 %v5983_v13  ;;  %v6062_v11 = vld [vmem:[%s6442_s10 + $0xbc] ss:$28 sps:$4 sm:$0xff]   ;;  %v6065_v13 = vld [vmem:[%s6442_s10 + $0xf4] ss:$28 sps:$4 sm:$0xff]  }
 0x13f   : > { %v6064_v12 = vld [vmem:[%s6442_s10 + $0xb8] ss:$28 sps:$4 sm:$0xff]  }
 0x140   : > { %2541 = vmatmul.mubr.bf16.gmra.mrb[12].mxu0 %v5980_v14  ;;  %2993 = vmatmul.mubr.bf16.gmra.mrb[12].mxu1 %v5980_v14  ;;  %v6067_v14 = vld [vmem:[%s6442_s10 + $0xf0] ss:$28 sps:$4 sm:$0xff]  }
 0x141   : > { %2604 = vmatpush1.bf16.msra.mxu0 %v5977_v44  ;;  %3056 = vmatpush1.bf16.msra.mxu1 %v5981_v15  ;;  %v6068_v44 = vld [vmem:[%s6442_s10 + $0x12c] ss:$28 sps:$4 sm:$0xff]  }
 0x142   : > { %2605 = vmatprep.subr.bf16.mxu0 %v5986_v16  ;;  %3057 = vmatprep.subr.bf16.mxu1 %v5989_v17  ;;  %v6070_v15 = vld [vmem:[%s6442_s10 + $0x128] ss:$28 sps:$4 sm:$0xff]   ;;  %v6073_v17 = vld [vmem:[%s6442_s10 + $0x160] ss:$28 sps:$4 sm:$0xff]  }
 0x143   : > { %2550 = vmatprep.mubr.bf16.mxu0 %v5990_v18  ;;  %3002 = vmatprep.mubr.bf16.mxu1 %v5990_v18  ;;  %v6071_v16 = vld [vmem:[%s6442_s10 + $0x164] ss:$28 sps:$4 sm:$0xff]   ;;  %v6074_v18 = vld [vmem:[%s6442_s10 + $0x19c] ss:$28 sps:$4 sm:$0xff]  }
 0x145   : > { %2606 = vmatpush1.bf16.msra.mxu0 %v5984_v19  ;;  %3058 = vmatpush1.bf16.msra.mxu1 %v5987_v49  ;;  %v6076_v19 = vld [vmem:[%s6442_s10 + $0x198] ss:$28 sps:$4 sm:$0xff]  }
 0x146   : > { %2607 = vmatprep.subr.bf16.mxu0 %v5994_v20  ;;  %3059 = vmatprep.subr.bf16.mxu1 %v5998_v21  ;;  %v6080_v49 = vld [vmem:[%s6442_s10 + $0x18] ss:$28 sps:$4 sm:$0xff]   ;;  %v6088_v20 = vld [vmem:[%s8130_s5] ss:$8 sps:$4 sm:$0xff]  }
 0x147   : > { %v7196_v21 = vld [vmem:[%s8130_s5 + $0x100] ss:$8 sps:$4 sm:$0xff]  }
 0x148   : > { %2551 = vmatmul.mubr.bf16.gmra.mrb[16].mxu0 %v5995_v22  ;;  %3003 = vmatmul.mubr.bf16.gmra.mrb[16].mxu1 %v5995_v22  ;;  %v6093_v22 = vld [vmem:[%s8130_s5 + $0x14] ss:$8 sps:$4 sm:$0xff]  }
 0x149   : > { %2608 = vmatpush1.bf16.msra.mxu0 %v5992_v23  ;;  %3060 = vmatpush1.bf16.msra.mxu1 %v5996_v24  ;;  %v7204_v23 = vld [vmem:[%s8130_s5 + $0x114] ss:$8 sps:$4 sm:$0xff]   ;;  %v6091_v24 = vld [vmem:[%s8130_s5 + $0x10] ss:$8 sps:$4 sm:$0xff]  }
 0x14a   : > { %2609 = vmatprep.subr.bf16.mxu0 %v6001_v25  ;;  %3061 = vmatprep.subr.bf16.mxu1 %v6004_v26  ;;  %v7217_v25 = vld [vmem:[%s8130_s5 + $0x110] ss:$8 sps:$4 sm:$0xff]   ;;  %v6096_v26 = vld [vmem:[%s8130_s5 + $0x24] ss:$8 sps:$4 sm:$0xff]  }
 0x14b   : > { %2560 = vmatprep.mubr.bf16.mxu0 %v6005_v27  ;;  %3012 = vmatprep.mubr.bf16.mxu1 %v6005_v27  ;;  %v7226_v27 = vld [vmem:[%s8130_s5 + $0x124] ss:$8 sps:$4 sm:$0xff]  }
 0x14d   : > { %2610 = vmatpush1.bf16.msra.mxu0 %v5999_v28  ;;  %3062 = vmatpush1.bf16.msra.mxu1 %v6002_v29  ;;  %v6081_v28 = vld [vmem:[%s6442_s10 + $0x50] ss:$28 sps:$4 sm:$0xff]   ;;  %v6094_v29 = vld [vmem:[%s8130_s5 + $0x20] ss:$8 sps:$4 sm:$0xff]  }
 0x14e   : > { %2611 = vmatprep.subr.bf16.mxu0 %v6009_v30  ;;  %3063 = vmatprep.subr.bf16.mxu1 %v6013_v31  ;;  %v7236_v30 = vld [vmem:[%s8130_s5 + $0x120] ss:$8 sps:$4 sm:$0xff]   ;;  %v6099_v31 = vld [vmem:[%s8130_s5 + $0x34] ss:$8 sps:$4 sm:$0xff]  }
 0x150   : > { %2561 = vmatmul.mubr.bf16.gmra.mrb[20].mxu0 %v6010_v32  ;;  %3013 = vmatmul.mubr.bf16.gmra.mrb[20].mxu1 %v6010_v32  ;;  %v7245_v32 = vld [vmem:[%s8130_s5 + $0x134] ss:$8 sps:$4 sm:$0xff]  }
 0x151   : > { %2612 = vmatpush1.bf16.msra.mxu0 %v6007_v33  ;;  %3064 = vmatpush1.bf16.msra.mxu1 %v6011_v34  ;;  %v6097_v33 = vld [vmem:[%s8130_s5 + $0x30] ss:$8 sps:$4 sm:$0xff]  }
 0x152   : > { %2613 = vmatprep.subr.bf16.mxu0 %v6016_v35  ;;  %3065 = vmatprep.subr.bf16.mxu1 %v6019_v36  ;;  %v7258_v34 = vld [vmem:[%s8130_s5 + $0x130] ss:$8 sps:$4 sm:$0xff]   ;;  %v6102_v35 = vld [vmem:[%s8130_s5 + $0x44] ss:$8 sps:$4 sm:$0xff]  }
 0x153   : > { %2570 = vmatprep.mubr.bf16.mxu0 %v6020_v37  ;;  %3022 = vmatprep.mubr.bf16.mxu1 %v6020_v37  ;;  %v7267_v36 = vld [vmem:[%s8130_s5 + $0x144] ss:$8 sps:$4 sm:$0xff]  }
 0x154   : > { %v6082_v37 = vld [vmem:[%s6442_s10 + $0x88] ss:$28 sps:$4 sm:$0xff]  }
 0x155   : > { %2614 = vmatpush1.bf16.msra.mxu0 %v6014_v38  ;;  %3066 = vmatpush1.bf16.msra.mxu1 %v6017_v39  ;;  %v6100_v38 = vld [vmem:[%s8130_s5 + $0x40] ss:$8 sps:$4 sm:$0xff]  }
 0x156   : > { %2615 = vmatprep.subr.bf16.mxu0 %v6024_v40  ;;  %3067 = vmatprep.subr.bf16.mxu1 %v6028_v41  ;;  %v7277_v39 = vld [vmem:[%s8130_s5 + $0x140] ss:$8 sps:$4 sm:$0xff]   ;;  %v6105_v40 = vld [vmem:[%s8130_s5 + $0x54] ss:$8 sps:$4 sm:$0xff]   ;;  %v6103_v41 = vld [vmem:[%s8130_s5 + $0x50] ss:$8 sps:$4 sm:$0xff]  }
 0x158   : > { %2571 = vmatmul.mubr.bf16.gmra.mrb[24].mxu0 %v6025_v42  ;;  %3023 = vmatmul.mubr.bf16.gmra.mrb[24].mxu1 %v6025_v42  ;;  %v6108_v42 = vld [vmem:[%s8130_s5 + $0x64] ss:$8 sps:$4 sm:$0xff]  }
 0x159   : > { %2616 = vmatpush1.bf16.msra.mxu0 %v6022_v45  ;;  %3068 = vmatpush1.bf16.msra.mxu1 %v6026_v46  ;;  %v6083_v45 = vld [vmem:[%s6442_s10 + $0xc0] ss:$28 sps:$4 sm:$0xff]  }
 0x15a   : > { %2617 = vmatprep.subr.bf16.mxu0 %v6031_v47  ;;  %3069 = vmatprep.subr.bf16.mxu1 %v6034_v48  ;;  %v6106_v46 = vld [vmem:[%s8130_s5 + $0x60] ss:$8 sps:$4 sm:$0xff]   ;;  %v6111_v47 = vld [vmem:[%s8130_s5 + $0x74] ss:$8 sps:$4 sm:$0xff]   ;;  %v6109_v48 = vld [vmem:[%s8130_s5 + $0x70] ss:$8 sps:$4 sm:$0xff]  }
 0x15b   : > { %2580 = vmatprep.mubr.bf16.mxu0 %v6035_v50  ;;  %3032 = vmatprep.mubr.bf16.mxu1 %v6035_v50  ;;  %v6114_v50 = vld [vmem:[%s8130_s5 + $0x84] ss:$8 sps:$4 sm:$0xff]  }
 0x15d   : > { %2618 = vmatpush1.bf16.msra.mxu0 %v6029_v51  ;;  %3070 = vmatpush1.bf16.msra.mxu1 %v6032_v52  ;;  %v6084_v51 = vld [vmem:[%s6442_s10 + $0xf8] ss:$28 sps:$4 sm:$0xff]   ;;  %v6112_v52 = vld [vmem:[%s8130_s5 + $0x80] ss:$8 sps:$4 sm:$0xff]  }
 0x15e   : > { %2619 = vmatprep.subr.bf16.mxu0 %v6039_v53  ;;  %3071 = vmatprep.subr.bf16.mxu1 %v6043_v54  ;;  %v6120_v53 = vld [vmem:[%s8130_s5 + $0x94] ss:$8 sps:$4 sm:$0xff]   ;;  %v6118_v54 = vld [vmem:[%s8130_s5 + $0x90] ss:$8 sps:$4 sm:$0xff]  }
 0x160   : > { %2581 = vmatmul.mubr.bf16.gmra.mrb[28].mxu0 %v6040_v55  ;;  %3033 = vmatmul.mubr.bf16.gmra.mrb[28].mxu1 %v6040_v55  ;;  %v6126_v55 = vld [vmem:[%s8130_s5 + $0xa4] ss:$8 sps:$4 sm:$0xff]  }
 0x161   : > { %2620 = vmatpush1.bf16.msra.mxu0 %v6037_v56  ;;  %3072 = vmatpush1.bf16.msra.mxu1 %v6041_v57  ;;  %v6085_v56 = vld [vmem:[%s6442_s10 + $0x130] ss:$28 sps:$4 sm:$0xff]   ;;  %v6124_v57 = vld [vmem:[%s8130_s5 + $0xa0] ss:$8 sps:$4 sm:$0xff]  }
 0x162   : > { %2621 = vmatprep.subr.bf16.mxu0 %v6046_v58  ;;  %3073 = vmatprep.subr.bf16.mxu1 %v6049_v59  ;;  %v6132_v58 = vld [vmem:[%s8130_s5 + $0xb4] ss:$8 sps:$4 sm:$0xff]   ;;  %v6130_v59 = vld [vmem:[%s8130_s5 + $0xb0] ss:$8 sps:$4 sm:$0xff]  }
 0x163   : > { %2623 = vmatprep.mubr.bf16.mxu0 %v6052_v60  ;;  %3075 = vmatprep.mubr.bf16.mxu1 %v6052_v60  ;;  %v6138_v60 = vld [vmem:[%s8130_s5 + $0xc4] ss:$8 sps:$4 sm:$0xff]  }
 0x165   : > { %2622 = vmatpush1.bf16.msra.mxu0 %v6044_v61  ;;  %3074 = vmatpush1.bf16.msra.mxu1 %v6047_v62  ;;  %v6086_v61 = vld [vmem:[%s6442_s10 + $0x168] ss:$28 sps:$4 sm:$0xff]  }
 0x166   : > { %2704 = vmatprep.subr.bf16.mxu0 %v6055_v63  ;;  %3156 = vmatprep.subr.bf16.mxu1 %v6079_v0  ;;  %v6136_v62 = vld [vmem:[%s8130_s5 + $0xc0] ss:$8 sps:$4 sm:$0xff]   ;;  %v6144_v63 = vld [vmem:[%s8130_s5 + $0xd4] ss:$8 sps:$4 sm:$0xff]   ;;  %v6142_v0 = vld [vmem:[%s8130_s5 + $0xd0] ss:$8 sps:$4 sm:$0xff]  }
 0x168   : > { %2624 = vmatmul.mubr.bf16.vlgmr.msra.gmra.mrb[0].mxu0 %v6050_v2  ;;  %3076 = vmatmul.mubr.bf16.vlgmr.msra.gmra.mrb[0].mxu1 %v6050_v2  ;;  %v6087_v2 = vld [vmem:[%s6442_s10 + $0x1a0] ss:$28 sps:$4 sm:$0xff]   ;;  %s6206_s10 = scalar_lea.vmem %s6205_s16, 32 }
 0x169   : > { %2705 = vmatpush1.bf16.msra.mxu0 %v6053_v3  ;;  %2633 = vmatprep.mubr.bf16.mxu0 %v6056_v4  ;;  %v7365_v3 = vld [vmem:[%s8130_s5 + $0x154] ss:$8 sps:$4 sm:$0xff]   ;;  %p6208_p1 = scmp.lt.s32.totalorder %s6206_s10, %s6200_s17 }
 0x16a   : > { %3085 = vmatprep.mubr.bf16.mxu1 %v6056_v4  ;;  %3157 = vmatpush1.bf16.msra.mxu1 %v6077_v5  ;;  %v6150_v4 = vld [vmem:[%s8130_s5 + $0xe4] ss:$8 sps:$4 sm:$0xff]  }
 0x16b   : > { %3975 = vmatprep.subr.bf16.mxu0 %v6090_v6  ;;  %5312 = vmatprep.subr.bf16.mxu1 %v7171_v7  ;;  %v7380_v5 = vld [vmem:[%s8130_s5 + $0x164] ss:$8 sps:$4 sm:$0xff]   ;;  %v6148_v6 = vld [vmem:[%s8130_s5 + $0xe0] ss:$8 sps:$4 sm:$0xff]   ;;  %p6209_p2 = por %p6208_p1, %p6207_p0 }
 0x16d   : > { %p6210_p3 = pnand %p6209_p2, %p6203_p13 }
 0x170   : > { %2634 = vmatmul.mubr.bf16.gmra.mrb[4].mxu0 %v6058_v8  ;;  %3086 = vmatmul.mubr.bf16.gmra.mrb[4].mxu1 %v6058_v8  ;;  %v7388_v8 = vld [vmem:[%s8130_s5 + $0x160] ss:$8 sps:$4 sm:$0xff]  }
 0x171   : > { %2643 = vmatprep.mubr.bf16.mxu0 %v6059_v9  ;;  %3095 = vmatprep.mubr.bf16.mxu1 %v6059_v9  ;;  %v6156_v9 = vld [vmem:[%s8130_s5 + $0xf4] ss:$8 sps:$4 sm:$0xff]  }
 0x178   : > { %2644 = vmatmul.mubr.bf16.gmra.mrb[8].mxu0 %v6061_v10  ;;  %3096 = vmatmul.mubr.bf16.gmra.mrb[8].mxu1 %v6061_v10  ;;  %v7398_v10 = vld [vmem:[%s8130_s5 + $0x174] ss:$8 sps:$4 sm:$0xff]  }
 0x179   : > { %2653 = vmatprep.mubr.bf16.mxu0 %v6062_v11  ;;  %3105 = vmatprep.mubr.bf16.mxu1 %v6062_v11  ;;  %v6154_v11 = vld [vmem:[%s8130_s5 + $0xf0] ss:$8 sps:$4 sm:$0xff]  }
 0x180   : > { %2654 = vmatmul.mubr.bf16.gmra.mrb[12].mxu0 %v6064_v12  ;;  %3106 = vmatmul.mubr.bf16.gmra.mrb[12].mxu1 %v6064_v12  ;;  %v7406_v12 = vld [vmem:[%s8130_s5 + $0x170] ss:$8 sps:$4 sm:$0xff]  }
 0x181   : > { %2663 = vmatprep.mubr.bf16.mxu0 %v6065_v13  ;;  %3115 = vmatprep.mubr.bf16.mxu1 %v6065_v13  ;;  %v7414_v13 = vld [vmem:[%s8130_s5 + $0x184] ss:$8 sps:$4 sm:$0xff]  }
 0x188   : > { %2664 = vmatmul.mubr.bf16.gmra.mrb[16].mxu0 %v6067_v14  ;;  %3116 = vmatmul.mubr.bf16.gmra.mrb[16].mxu1 %v6067_v14  ;;  %v7419_v14 = vld [vmem:[%s8130_s5 + $0x180] ss:$8 sps:$4 sm:$0xff]  }
 0x189   : > { %2673 = vmatprep.mubr.bf16.mxu0 %v6068_v44  ;;  %3125 = vmatprep.mubr.bf16.mxu1 %v6068_v44  ;;  %v7426_v44 = vld [vmem:[%s8130_s5 + $0x194] ss:$8 sps:$4 sm:$0xff]  }
 0x190   : > { %2674 = vmatmul.mubr.bf16.gmra.mrb[20].mxu0 %v6070_v15  ;;  %3126 = vmatmul.mubr.bf16.gmra.mrb[20].mxu1 %v6070_v15  ;;  %v7438_v15 = vld [vmem:[%s8130_s5 + $0x1a4] ss:$8 sps:$4 sm:$0xff]  }
 0x191   : > { %2683 = vmatprep.mubr.bf16.mxu0 %v6071_v16  ;;  %3135 = vmatprep.mubr.bf16.mxu1 %v6071_v16  ;;  %v7443_v16 = vld [vmem:[%s8130_s5 + $0x1a0] ss:$8 sps:$4 sm:$0xff]  }
 0x198   : > { %2684 = vmatmul.mubr.bf16.gmra.mrb[24].mxu0 %v6073_v17  ;;  %3136 = vmatmul.mubr.bf16.gmra.mrb[24].mxu1 %v6073_v17  ;;  %v7450_v17 = vld [vmem:[%s8130_s5 + $0x1b4] ss:$8 sps:$4 sm:$0xff]  }
 0x199   : > { %2693 = vmatprep.mubr.bf16.mxu0 %v6074_v18  ;;  %3145 = vmatprep.mubr.bf16.mxu1 %v6074_v18  ;;  %v7455_v18 = vld [vmem:[%s8130_s5 + $0x1b0] ss:$8 sps:$4 sm:$0xff]  }
 0x1a0   : > { %2694 = vmatmul.mubr.bf16.gmra.mrb[28].mxu0 %v6076_v19  ;;  %3146 = vmatmul.mubr.bf16.gmra.mrb[28].mxu1 %v6076_v19  ;;  %v7462_v19 = vld [vmem:[%s8130_s5 + $0x1c4] ss:$8 sps:$4 sm:$0xff]  }
 0x1a1   : > { %2736 = vmatprep.mubr.bf16.mxu0 %v6264_v1  ;;  %3188 = vmatprep.mubr.bf16.mxu1 %v6264_v1 }
 0x1a8   : > { %5148 = vmatmul.mubr.msk.bf16.vlgmr.msra.gmra.mrb[0].mxu0 %vm2340_vm2, %v6080_v49  ;;  %5156 = vmatmul.mubr.msk.bf16.vlgmr.msra.gmra.mrb[0].mxu1 %vm2340_vm2, %v6080_v49  ;;  %v7467_v49 = vld [vmem:[%s8130_s5 + $0x1c0] ss:$8 sps:$4 sm:$0xff]  }
 0x1a9   : > { %2746 = vmatprep.mubr.bf16.mxu0 %v6264_v1  ;;  %3198 = vmatprep.mubr.bf16.mxu1 %v6264_v1 }
 0x1aa   : > { %3976 = vmatpush1.bf16.msra.mxu0 %v6088_v20  ;;  %5328 = vmatpush1.bf16.msra.mxu1 %v7196_v21  ;;  %v7474_v20 = vld [vmem:[%s8130_s5 + $0x1d4] ss:$8 sps:$4 sm:$0xff]  }
 0x1ab   : > { %3977 = vmatprep.subr.bf16.mxu0 %v6093_v22  ;;  %5313 = vmatprep.subr.bf16.mxu1 %v7204_v23  ;;  %v7479_v22 = vld [vmem:[%s8130_s5 + $0x1d0] ss:$8 sps:$4 sm:$0xff]  }
 0x1ae   : > { %3978 = vmatpush1.bf16.msra.mxu0 %v6091_v24  ;;  %5329 = vmatpush1.bf16.msra.mxu1 %v7217_v25  ;;  %v7486_v24 = vld [vmem:[%s8130_s5 + $0x1e4] ss:$8 sps:$4 sm:$0xff]  }
 0x1af   : > { %3979 = vmatprep.subr.bf16.mxu0 %v6096_v26  ;;  %5314 = vmatprep.subr.bf16.mxu1 %v7226_v27  ;;  %v7491_v26 = vld [vmem:[%s8130_s5 + $0x1e0] ss:$8 sps:$4 sm:$0xff]  }
 0x1b0   : > { %5149 = vmatmul.mubr.msk.bf16.gmra.mrb[4].mxu0 %vm2340_vm2, %v6081_v28  ;;  %5157 = vmatmul.mubr.msk.bf16.gmra.mrb[4].mxu1 %vm2340_vm2, %v6081_v28  ;;  %v7498_v28 = vld [vmem:[%s8130_s5 + $0x1f4] ss:$8 sps:$4 sm:$0xff]  }
 0x1b1   : > { %2756 = vmatprep.mubr.bf16.mxu0 %v6264_v1  ;;  %3208 = vmatprep.mubr.bf16.mxu1 %v6264_v1 }
 0x1b2   : > { %3980 = vmatpush1.bf16.msra.mxu0 %v6094_v29  ;;  %5330 = vmatpush1.bf16.msra.mxu1 %v7236_v30  ;;  %v7503_v29 = vld [vmem:[%s8130_s5 + $0x1f0] ss:$8 sps:$4 sm:$0xff]  }
 0x1b3   : > { %3981 = vmatprep.subr.bf16.mxu0 %v6099_v31  ;;  %5315 = vmatprep.subr.bf16.mxu1 %v7245_v32  ;;  %8153 = vst [vmem:[#allocation6_spill] sm:$0xff] %v7503_v29  ;;  %v7508_v31 = vshrl.u32 %v494_v43, 7 }
 0x1b5   : > { %8154 = vst [vmem:[#allocation7_spill] sm:$0xff] %v7508_v31 }
 0x1b6   : > { %3982 = vmatpush1.bf16.msra.mxu0 %v6097_v33  ;;  %5331 = vmatpush1.bf16.msra.mxu1 %v7258_v34  ;;  %v3281_v33 = vsub.s32 2, %v7508_v31 }
 0x1b7   : > { %3983 = vmatprep.subr.bf16.mxu0 %v6102_v35  ;;  %5316 = vmatprep.subr.bf16.mxu1 %v7267_v36  ;;  %v3269_v35 = vld [vmem:[%s8129_s4] sm:$0xf] }
 0x1b8   : > { %5150 = vmatmul.mubr.msk.bf16.gmra.mrb[8].mxu0 %vm2340_vm2, %v6082_v37  ;;  %5158 = vmatmul.mubr.msk.bf16.gmra.mrb[8].mxu1 %vm2340_vm2, %v6082_v37  ;;  %v8137_v37 = vsub.s32 1, %v7508_v31 }
 0x1b9   : > { %2766 = vmatprep.mubr.bf16.mxu0 %v6264_v1  ;;  %3218 = vmatprep.mubr.bf16.mxu1 %v6264_v1 }
 0x1ba   : > { %3984 = vmatpush1.bf16.msra.mxu0 %v6100_v38  ;;  %5332 = vmatpush1.bf16.msra.mxu1 %v7277_v39  ;;  %v3285_v38 = vsub.s32 3, %v7508_v31  ;;  %v7526_v43 = vrot.slane %v3269_v35, %v8137_v37 }
 0x1bb   : > { %3985 = vmatprep.subr.bf16.mxu0 %v6105_v40  ;;  %5317 = vmatprep.subr.bf16.mxu1 %v7365_v3  ;;  %v7517_v40 = vsub.s32 0, %v7508_v31 }
 0x1bd   : > { %8155 = vst [vmem:[#allocation8_spill] sm:$0xff] %v7517_v40 }
 0x1be   : > { %3986 = vmatpush1.bf16.msra.mxu0 %v6103_v41  ;;  %v7520_v41 = vrot.slane %v3269_v35, %v7517_v40 }
 0x1bf   : > { %3987 = vmatprep.subr.bf16.mxu0 %v6108_v42  ;;  %v7522_v42 = vrot.slane %v3269_v35, %v3281_v33 }
 0x1c0   : > { %5151 = vmatmul.mubr.msk.bf16.gmra.mrb[12].mxu0 %vm2340_vm2, %v6083_v45  ;;  %5159 = vmatmul.mubr.msk.bf16.gmra.mrb[12].mxu1 %vm2340_vm2, %v6083_v45  ;;  %v7528_v45 = vrot.slane %v3269_v35, %v3285_v38 }
 0x1c1   : > { %2776 = vmatprep.mubr.bf16.mxu0 %v6264_v1  ;;  %3228 = vmatprep.mubr.bf16.mxu1 %v6264_v1 }
 0x1c2   : > { %3988 = vmatpush1.bf16.msra.mxu0 %v6106_v46 }
 0x1c3   : > { %3989 = vmatprep.subr.bf16.mxu0 %v6111_v47 }
 0x1c6   : > { %3990 = vmatpush1.bf16.msra.mxu0 %v6109_v48 }
 0x1c7   : > { %3991 = vmatprep.subr.bf16.mxu0 %v6114_v50 }
 0x1c8   : > { %5152 = vmatmul.mubr.msk.bf16.gmra.mrb[16].mxu0 %vm2340_vm2, %v6084_v51  ;;  %5160 = vmatmul.mubr.msk.bf16.gmra.mrb[16].mxu1 %vm2340_vm2, %v6084_v51 }
 0x1c9   : > { %2786 = vmatprep.mubr.bf16.mxu0 %v6264_v1  ;;  %3238 = vmatprep.mubr.bf16.mxu1 %v6264_v1 }
 0x1ca   : > { %3992 = vmatpush1.bf16.msra.mxu0 %v6112_v52 }
 0x1cb   : > { %3993 = vmatprep.subr.bf16.mxu0 %v6120_v53 }
 0x1ce   : > { %3994 = vmatpush1.bf16.msra.mxu0 %v6118_v54 }
 0x1cf   : > { %3995 = vmatprep.subr.bf16.mxu0 %v6126_v55 }
 0x1d0   : > { %5153 = vmatmul.mubr.msk.bf16.gmra.mrb[20].mxu0 %vm2340_vm2, %v6085_v56  ;;  %5161 = vmatmul.mubr.msk.bf16.gmra.mrb[20].mxu1 %vm2340_vm2, %v6085_v56 }
 0x1d1   : > { %2796 = vmatprep.mubr.bf16.mxu0 %v6264_v1  ;;  %3248 = vmatprep.mubr.bf16.mxu1 %v6264_v1 }
 0x1d2   : > { %3996 = vmatpush1.bf16.msra.mxu0 %v6124_v57 }
 0x1d3   : > { %3997 = vmatprep.subr.bf16.mxu0 %v6132_v58 }
 0x1d6   : > { %3998 = vmatpush1.bf16.msra.mxu0 %v6130_v59 }
 0x1d7   : > { %3999 = vmatprep.subr.bf16.mxu0 %v6138_v60 }
 0x1d8   : > { %5154 = vmatmul.mubr.msk.bf16.gmra.mrb[24].mxu0 %vm2340_vm2, %v6086_v61  ;;  %5162 = vmatmul.mubr.msk.bf16.gmra.mrb[24].mxu1 %vm2340_vm2, %v6086_v61 }
 0x1d9   : > { %2806 = vmatprep.mubr.bf16.mxu0 %v6264_v1  ;;  %3258 = vmatprep.mubr.bf16.mxu1 %v6264_v1  ;;  %v7370_v1 = vld [vmem:[%s8130_s5 + $0x150] ss:$8 sps:$4 sm:$0xff]  }
 0x1da   : > { %4000 = vmatpush1.bf16.msra.mxu0 %v6136_v62  ;;  %5333 = vmatpush1.bf16.msra.mxu1 %v7370_v1 }
 0x1db   : > { %4001 = vmatprep.subr.bf16.mxu0 %v6144_v63  ;;  %5318 = vmatprep.subr.bf16.mxu1 %v7380_v5 }
 0x1de   : > { %4002 = vmatpush1.bf16.msra.mxu0 %v6142_v0  ;;  %5334 = vmatpush1.bf16.msra.mxu1 %v7388_v8 }
 0x1df   : > { %4003 = vmatprep.subr.bf16.mxu0 %v6150_v4  ;;  %5319 = vmatprep.subr.bf16.mxu1 %v7398_v10 }
 0x1e0   : > { %5155 = vmatmul.mubr.msk.bf16.gmra.mrb[28].mxu0 %vm2340_vm2, %v6087_v2  ;;  %5163 = vmatmul.mubr.msk.bf16.gmra.mrb[28].mxu1 %vm2340_vm2, %v6087_v2 }
 0x1e2   : > { %4004 = vmatpush1.bf16.msra.mxu0 %v6148_v6  ;;  %5335 = vmatpush1.bf16.msra.mxu1 %v7406_v12 }
 0x1e3   : > { %4005 = vmatprep.subr.bf16.mxu0 %v6156_v9  ;;  %5320 = vmatprep.subr.bf16.mxu1 %v7414_v13 }
 0x1e6   : > { %4006 = vmatpush1.bf16.msra.mxu0 %v6154_v11  ;;  %5336 = vmatpush1.bf16.msra.mxu1 %v7419_v14 }
 0x1e7   : > { %4088 = vmatprep.subr.bf16.mxu0 %v7171_v7  ;;  %v7431_v7 = vld [vmem:[%s8130_s5 + $0x190] ss:$8 sps:$4 sm:$0xff]   ;;  %5321 = vmatprep.subr.bf16.mxu1 %v7426_v44 }
 0x1ea   : > { %5337 = vmatpush1.bf16.msra.mxu1 %v7431_v7 }
 0x1eb   : > { %5322 = vmatprep.subr.bf16.mxu1 %v7438_v15 }
 0x1ee   : > { %5338 = vmatpush1.bf16.msra.mxu1 %v7443_v16 }
 0x1ef   : > { %5323 = vmatprep.subr.bf16.mxu1 %v7450_v17 }
 0x1f2   : > { %5339 = vmatpush1.bf16.msra.mxu1 %v7455_v18 }
 0x1f3   : > { %5324 = vmatprep.subr.bf16.mxu1 %v7462_v19 }
 0x1f6   : > { %5340 = vmatpush1.bf16.msra.mxu1 %v7467_v49 }
 0x1f7   : > { %5325 = vmatprep.subr.bf16.mxu1 %v7474_v20 }
 0x1fa   : > { %5341 = vmatpush1.bf16.msra.mxu1 %v7479_v22 }
 0x1fb   : > { %5326 = vmatprep.subr.bf16.mxu1 %v7486_v24 }
 0x1fe   : > { %5342 = vmatpush1.bf16.msra.mxu1 %v7491_v26 }
 0x1ff   : > { %5327 = vmatprep.subr.bf16.mxu1 %v7498_v28 }
 0x202   : > { %5343 = vmatpush1.bf16.msra.mxu1 %v7503_v29 }
 0x27b   : > { %v2738_v46 = vpop.f32.mrb[0].mxu0  ;;  %v3190_v47 = vpop.f32.mrb[0].mxu1 }
 0x27c   : > { %v3291_v48 = vadd.f32 %v7520_v41, %v2738_v46  ;;  %v3293_v50 = vadd.f32 %v7522_v42, %v3190_v47  ;;  %v2740_v51 = vpop.f32.mrb[1].mxu0  ;;  %v3192_v52 = vpop.f32.mrb[1].mxu1 }
 0x27d   : > { %v3292_v53 = vadd.f32 %v7526_v43, %v2740_v51  ;;  %v3294_v54 = vadd.f32 %v7528_v45, %v3192_v52  ;;  %v2742_v55 = vpop.f32.mrb[2].mxu0  ;;  %v3194_v56 = vpop.f32.mrb[2].mxu1 }
 0x27e   : > { %vm3355_vm3 = vcmp.gt.f32.partialorder %v3291_v48, 0.0  ;;  %v3419_v57 = vmul.f32 0.2, %v3291_v48  ;;  %vm3357_vm4 = vcmp.gt.f32.partialorder %v3293_v50, 0.0  ;;  %v3421_v58 = vmul.f32 0.2, %v3293_v50 }
 0x27f   : > { %vm3356_vm5 = vcmp.gt.f32.partialorder %v3292_v53, 0.0  ;;  %v3420_v59 = vmul.f32 0.2, %v3292_v53  ;;  %v3295_v60 = vadd.f32 %v7520_v41, %v2742_v55  ;;  %v3297_v61 = vadd.f32 %v7522_v42, %v3194_v56  ;;  %v2744_v62 = vpop.f32.mrb[3].mxu0  ;;  %v3196_v63 = vpop.f32.mrb[3].mxu1 }
 0x280   : > { %vm3358_vm6 = vcmp.gt.f32.partialorder %v3294_v54, 0.0  ;;  %v3422_v0 = vmul.f32 0.2, %v3294_v54  ;;  %v3296_v2 = vadd.f32 %v7526_v43, %v2744_v62  ;;  %v3298_v4 = vadd.f32 %v7528_v45, %v3196_v63 }
 0x281   : > { %vm3359_vm7 = vcmp.gt.f32.partialorder %v3295_v60, 0.0  ;;  %v3423_v6 = vmul.f32 0.2, %v3295_v60  ;;  %vm3361_vm8 = vcmp.gt.f32.partialorder %v3297_v61, 0.0  ;;  %v3425_v9 = vmul.f32 0.2, %v3297_v61 }
 0x282   : > { %v3483_v11 = vsel %vm3355_vm3, %v3291_v48, %v3419_v57  ;;  %vm3360_vm9 = vcmp.gt.f32.partialorder %v3296_v2, 0.0  ;;  %v3424_v33 = vmul.f32 0.2, %v3296_v2  ;;  %v3426_v35 = vmul.f32 0.2, %v3298_v4 }
 0x283   : > { %v7540_v38 = vsel %vm3357_vm4, %v3293_v50, %v3421_v58  ;;  %v3487_v46 = vsel %vm3359_vm7, %v3295_v60, %v3423_v6  ;;  %v7542_v47 = vsel %vm3361_vm8, %v3297_v61, %v3425_v9  ;;  %vm3362_vm10 = vcmp.gt.f32.partialorder %v3298_v4, 0.0  ;;  %v2748_v51 = vpop.f32.mrb[4].mxu0  ;;  %v3200_v52 = vpop.f32.mrb[4].mxu1 }
 0x284   : > { %8156 = vst [vmem:[#allocation9_spill] sm:$0xff] %v7540_v38  ;;  %8157 = vst [vmem:[#allocation10_spill] sm:$0xff] %v7542_v47  ;;  %v3547_v55 = vpack.c.bf16 %v3487_v46, %v3483_v11  ;;  %v3299_v62 = vadd.f32 %v7520_v41, %v2748_v51  ;;  %v3301_v48 = vadd.f32 %v7522_v42, %v3200_v52  ;;  %v2750_v57 = vpop.f32.mrb[5].mxu0  ;;  %v3202_v63 = vpop.f32.mrb[5].mxu1 }
 0x285   : > { %v3300_v37 = vadd.f32 %v7526_v43, %v2750_v57  ;;  %v2752_v50 = vpop.f32.mrb[6].mxu0  ;;  %v3204_v58 = vpop.f32.mrb[6].mxu1  ;;  %v3488_v60 = vsel %vm3360_vm9, %v3296_v2, %v3424_v33  ;;  %v3302_v61 = vadd.f32 %v7528_v45, %v3202_v63  ;;  %v3484_v6 = vsel %vm3356_vm5, %v3292_v53, %v3420_v59 }
 0x286   : > { %v7553_v9 = vsel %vm3358_vm6, %v3294_v54, %v3422_v0  ;;  %v7556_v11 = vsel %vm3362_vm10, %v3298_v4, %v3426_v35  ;;  %vm3363_vm11 = vcmp.gt.f32.partialorder %v3299_v62, 0.0  ;;  %v3427_v46 = vmul.f32 0.2, %v3299_v62  ;;  %v2754_v2 = vpop.f32.mrb[7].mxu0  ;;  %v3206_v33 = vpop.f32.mrb[7].mxu1 }
 0x287   : > { %8158 = vst [vmem:[#allocation11_spill] sm:$0xff] %v7553_v9  ;;  %vm3365_vm12 = vcmp.gt.f32.partialorder %v3301_v48, 0.0  ;;  %v3429_v51 = vmul.f32 0.2, %v3301_v48  ;;  %vm3364_vm13 = vcmp.gt.f32.partialorder %v3300_v37, 0.0  ;;  %v3303_v52 = vadd.f32 %v7520_v41, %v2752_v50 }
 0x288   : > { %v3305_v57 = vadd.f32 %v7522_v42, %v3204_v58  ;;  %v3548_v63 = vpack.c.bf16 %v3488_v60, %v3484_v6  ;;  %v3428_v56 = vmul.f32 0.2, %v3300_v37  ;;  %v3304_v53 = vadd.f32 %v7526_v43, %v2754_v2 }
 0x289   : > { %v3306_v54 = vadd.f32 %v7528_v45, %v3206_v33  ;;  %vm3366_vm14 = vcmp.gt.f32.partialorder %v3302_v61, 0.0  ;;  %vm3367_vm15 = vcmp.gt.f32.partialorder %v3303_v52, 0.0  ;;  %v3431_v0 = vmul.f32 0.2, %v3303_v52 }
 0x28a   : > { %v3433_v4 = vmul.f32 0.2, %v3305_v57  ;;  %4007 = vmatprep.mubr.bf16.mxu0 %v3548_v63  ;;  %vm3368_vm0 = vcmp.gt.f32.partialorder %v3304_v53, 0.0  ;;  %v3432_v35 = vmul.f32 0.2, %v3304_v53  ;;  %vm3369_vm2 = vcmp.gt.f32.partialorder %v3305_v57, 0.0 }
 0x28b   : > { %vm3370_vm1 = vcmp.gt.f32.partialorder %v3306_v54, 0.0  ;;  %v3434_v50 = vmul.f32 0.2, %v3306_v54  ;;  %4008 = vmatmul.mubr.bf16.vlgmr.msra.gmra.mrb[32].mxu0 %v3547_v55  ;;  %v3430_v58 = vmul.f32 0.2, %v3302_v61  ;;  %v2758_v60 = vpop.f32.mrb[8].mxu0  ;;  %v3491_v2 = vsel %vm3363_vm11, %v3299_v62, %v3427_v46 }
 0x28c   : > { %4089 = vmatpush1.bf16.msra.mxu0 %v7196_v21  ;;  %v3210_v6 = vpop.f32.mrb[8].mxu1  ;;  %v3495_v33 = vsel %vm3367_vm15, %v3303_v52, %v3431_v0  ;;  %v3307_v59 = vadd.f32 %v7520_v41, %v2758_v60  ;;  %v2760_v31 = vpop.f32.mrb[9].mxu0  ;;  %v3492_v40 = vsel %vm3364_vm13, %v3300_v37, %v3428_v56  ;;  %v3496_v38 = vsel %vm3368_vm0, %v3304_v53, %v3432_v35 }
 0x28d   : > { %4090 = vmatprep.subr.bf16.mxu0 %v7204_v23  ;;  %v3212_v63 = vpop.f32.mrb[9].mxu1  ;;  %v3551_v55 = vpack.c.bf16 %v3495_v33, %v3491_v2  ;;  %v2762_v47 = vpop.f32.mrb[10].mxu0  ;;  %v3552_v9 = vpack.c.bf16 %v3496_v38, %v3492_v40  ;;  %v7571_v21 = vsel %vm3370_vm1, %v3306_v54, %v3434_v50  ;;  %v3308_v62 = vadd.f32 %v7526_v43, %v2760_v31 }
 0x28e   : > { %v3214_v29 = vpop.f32.mrb[10].mxu1  ;;  %v7575_v46 = vsel %vm3369_vm2, %v3305_v57, %v3433_v4  ;;  %v3310_v23 = vadd.f32 %v7528_v45, %v3212_v63  ;;  %v7580_v37 = vsel %vm3366_vm14, %v3302_v61, %v3430_v58  ;;  %v7583_v56 = vsel %vm3365_vm12, %v3301_v48, %v3429_v51  ;;  %v2764_v52 = vpop.f32.mrb[11].mxu0 }
 0x28f   : > { %8159 = vst [vmem:[#allocation12_spill] sm:$0xff] %v7575_v46  ;;  %4017 = vmatprep.mubr.bf16.mxu0 %v3552_v9  ;;  %8160 = vst [vmem:[#allocation13_spill] sm:$0xff] %v7583_v56  ;;  %v3435_v40 = vmul.f32 0.2, %v3307_v59  ;;  %v7586_v38 = vadd.f32 %v7522_v42, %v3210_v6  ;;  %v3311_v31 = vadd.f32 %v7520_v41, %v2762_v47  ;;  %v3216_v57 = vpop.f32.mrb[11].mxu1  ;;  %vm3371_vm3 = vcmp.gt.f32.partialorder %v3307_v59, 0.0 }
 0x290   : > { %4091 = vmatpush1.bf16.msra.mxu0 %v7217_v25  ;;  %v3312_v61 = vadd.f32 %v7526_v43, %v2764_v52  ;;  %v3314_v9 = vadd.f32 %v7528_v45, %v3216_v57  ;;  %vm3372_vm4 = vcmp.gt.f32.partialorder %v3308_v62, 0.0  ;;  %v3436_v54 = vmul.f32 0.2, %v3308_v62 }
 0x291   : > { %4092 = vmatprep.subr.bf16.mxu0 %v7226_v27  ;;  %vm3375_vm5 = vcmp.gt.f32.partialorder %v3311_v31, 0.0  ;;  %v3439_v47 = vmul.f32 0.2, %v3311_v31  ;;  %vm3374_vm6 = vcmp.gt.f32.partialorder %v3310_v23, 0.0  ;;  %v7597_v27 = vadd.f32 %v7522_v42, %v3214_v29 }
 0x292   : > { %vm3376_vm7 = vcmp.gt.f32.partialorder %v3312_v61, 0.0  ;;  %v3440_v0 = vmul.f32 0.2, %v3312_v61  ;;  %v3438_v4 = vmul.f32 0.2, %v3310_v23  ;;  %v3499_v60 = vsel %vm3371_vm3, %v3307_v59, %v3435_v40 }
 0x293   : > { %v2768_v48 = vpop.f32.mrb[12].mxu0  ;;  %v3220_v51 = vpop.f32.mrb[12].mxu1  ;;  %4018 = vmatmul.mubr.bf16.gmra.mrb[36].mxu0 %v3551_v55  ;;  %v3503_v6 = vsel %vm3375_vm5, %v3311_v31, %v3439_v47  ;;  %v3442_v2 = vmul.f32 0.2, %v3314_v9  ;;  %v7605_v57 = vmul.f32 0.2, %v7586_v38  ;;  %v3500_v59 = vsel %vm3372_vm4, %v3308_v62, %v3436_v54 }
 0x294   : > { %4093 = vmatpush1.bf16.msra.mxu0 %v7236_v30  ;;  %v3315_v35 = vadd.f32 %v7520_v41, %v2768_v48  ;;  %v2770_v50 = vpop.f32.mrb[13].mxu0  ;;  %v3222_v58 = vpop.f32.mrb[13].mxu1  ;;  %v3504_v55 = vsel %vm3376_vm7, %v3312_v61, %v3440_v0  ;;  %v3555_v52 = vpack.c.bf16 %v3503_v6, %v3499_v60  ;;  %vm3378_vm8 = vcmp.gt.f32.partialorder %v3314_v9, 0.0 }
 0x295   : > { %4094 = vmatprep.subr.bf16.mxu0 %v7245_v32  ;;  %v3316_v33 = vadd.f32 %v7526_v43, %v2770_v50  ;;  %v2772_v63 = vpop.f32.mrb[14].mxu0  ;;  %v3224_v29 = vpop.f32.mrb[14].mxu1  ;;  %v7608_v30 = vmul.f32 0.2, %v7597_v27  ;;  %v7611_v48 = vadd.f32 %v7522_v42, %v3220_v51  ;;  %v3556_v47 = vpack.c.bf16 %v3504_v55, %v3500_v59 }
 0x296   : > { %v3443_v32 = vmul.f32 0.2, %v3315_v35  ;;  %vm3379_vm9 = vcmp.gt.f32.partialorder %v3315_v35, 0.0  ;;  %v3319_v40 = vadd.f32 %v7520_v41, %v2772_v63  ;;  %v2774_v31 = vpop.f32.mrb[15].mxu0  ;;  %v3226_v61 = vpop.f32.mrb[15].mxu1  ;;  %v7618_v0 = vsel %vm3374_vm6, %v3310_v23, %v3438_v4 }
 0x297   : > { %8161 = vst [vmem:[#allocation14_spill] sm:$0xff] %v7618_v0  ;;  %vm3380_vm10 = vcmp.gt.f32.partialorder %v3316_v33, 0.0  ;;  %v7621_v50 = vadd.f32 %v7528_v45, %v3222_v58  ;;  %v3320_v51 = vadd.f32 %v7526_v43, %v2774_v31  ;;  %v7625_v62 = vsel %vm3378_vm8, %v3314_v9, %v3442_v2  ;;  %4027 = vmatprep.mubr.bf16.mxu0 %v3556_v47 }
 0x298   : > { %4095 = vmatpush1.bf16.msra.mxu0 %v7258_v34  ;;  %8162 = vst [vmem:[#allocation15_spill] sm:$0xff] %v7625_v62  ;;  %vm3383_vm11 = vcmp.gt.f32.partialorder %v3319_v40, 0.0  ;;  %v3447_v54 = vmul.f32 0.2, %v3319_v40  ;;  %v7628_v6 = vadd.f32 %v7522_v42, %v3224_v29  ;;  %v3444_v23 = vmul.f32 0.2, %v3316_v33 }
 0x299   : > { %4096 = vmatprep.subr.bf16.mxu0 %v7267_v36  ;;  %v7631_v36 = vadd.f32 %v7528_v45, %v3226_v61  ;;  %vm3384_vm12 = vcmp.gt.f32.partialorder %v3320_v51, 0.0  ;;  %v3448_v4 = vmul.f32 0.2, %v3320_v51  ;;  %v3507_v58 = vsel %vm3379_vm9, %v3315_v35, %v3443_v32 }
 0x29a   : > { %v3511_v55 = vsel %vm3383_vm11, %v3319_v40, %v3447_v54  ;;  %v7642_v31 = vmul.f32 0.2, %v7611_v48  ;;  %v7648_v47 = vmul.f32 0.2, %v7621_v50  ;;  %v7651_v40 = vmul.f32 0.2, %v7628_v6 }
 0x29b   : > { %v2778_v34 = vpop.f32.mrb[16].mxu0  ;;  %v3230_v60 = vpop.f32.mrb[16].mxu1  ;;  %4028 = vmatmul.mubr.bf16.gmra.mrb[40].mxu0 %v3555_v52  ;;  %v3512_v32 = vsel %vm3384_vm12, %v3320_v51, %v3448_v4  ;;  %v3559_v61 = vpack.c.bf16 %v3511_v55, %v3507_v58 }
 0x29c   : > { %4097 = vmatpush1.bf16.msra.mxu0 %v7277_v39  ;;  %v7636_v9 = vadd.f32 %v7520_v41, %v2778_v34  ;;  %v3325_v2 = vadd.f32 %v7522_v42, %v3230_v60  ;;  %v2780_v63 = vpop.f32.mrb[17].mxu0  ;;  %v3232_v29 = vpop.f32.mrb[17].mxu1  ;;  %v7654_v34 = vmul.f32 0.2, %v7631_v36 }
 0x29d   : > { %4098 = vmatprep.subr.bf16.mxu0 %v7365_v3  ;;  %v3324_v35 = vadd.f32 %v7526_v43, %v2780_v63  ;;  %v2782_v52 = vpop.f32.mrb[18].mxu0  ;;  %v3234_v39 = vpop.f32.mrb[18].mxu1  ;;  %v3326_v60 = vadd.f32 %v7528_v45, %v3232_v29  ;;  %v3508_v63 = vsel %vm3380_vm10, %v3316_v33, %v3444_v23 }
 0x29e   : > { %vm3387_vm13 = vcmp.gt.f32.partialorder %v7636_v9, 0.0  ;;  %v3453_v3 = vmul.f32 0.2, %v3325_v2  ;;  %vm3389_vm14 = vcmp.gt.f32.partialorder %v3325_v2, 0.0  ;;  %v3329_v51 = vadd.f32 %v7522_v42, %v3234_v39  ;;  %v2784_v4 = vpop.f32.mrb[19].mxu0  ;;  %v3236_v58 = vpop.f32.mrb[19].mxu1 }
 0x29f   : > { %v3452_v54 = vmul.f32 0.2, %v3324_v35  ;;  %vm3388_vm15 = vcmp.gt.f32.partialorder %v3324_v35, 0.0  ;;  %v3560_v55 = vpack.c.bf16 %v3512_v32, %v3508_v63  ;;  %v3451_v59 = vmul.f32 0.2, %v7636_v9 }
 0x2a0   : > { %4099 = vmatpush1.bf16.msra.mxu0 %v7370_v1  ;;  %v3327_v53 = vadd.f32 %v7520_v41, %v2782_v52  ;;  %v3328_v29 = vadd.f32 %v7526_v43, %v2784_v4  ;;  %v3330_v25 = vadd.f32 %v7528_v45, %v3236_v58  ;;  %vm3390_vm0 = vcmp.gt.f32.partialorder %v3326_v60, 0.0 }
 0x2a1   : > { %4100 = vmatprep.subr.bf16.mxu0 %v7380_v5  ;;  %v3454_v1 = vmul.f32 0.2, %v3326_v60  ;;  %vm3393_vm1 = vcmp.gt.f32.partialorder %v3329_v51, 0.0  ;;  %v3457_v0 = vmul.f32 0.2, %v3329_v51  ;;  %4037 = vmatprep.mubr.bf16.mxu0 %v3560_v55  ;;  %v3517_v39 = vsel %vm3389_vm14, %v3325_v2, %v3453_v3 }
 0x2a2   : > { %vm3392_vm2 = vcmp.gt.f32.partialorder %v3328_v29, 0.0  ;;  %v3456_v32 = vmul.f32 0.2, %v3328_v29  ;;  %v3516_v52 = vsel %vm3388_vm15, %v3324_v35, %v3452_v54  ;;  %v3458_v4 = vmul.f32 0.2, %v3330_v25 }
 0x2a3   : > { %v2788_v33 = vpop.f32.mrb[20].mxu0  ;;  %v3240_v23 = vpop.f32.mrb[20].mxu1  ;;  %4038 = vmatmul.mubr.bf16.gmra.mrb[44].mxu0 %v3559_v61  ;;  %v3521_v63 = vsel %vm3393_vm1, %v3329_v51, %v3457_v0  ;;  %v3455_v55 = vmul.f32 0.2, %v3327_v53  ;;  %vm3394_vm3 = vcmp.gt.f32.partialorder %v3330_v25, 0.0  ;;  %vm3391_vm4 = vcmp.gt.f32.partialorder %v3327_v53, 0.0 }
 0x2a4   : > { %4101 = vmatpush1.bf16.msra.mxu0 %v7388_v8  ;;  %v7670_v5 = vadd.f32 %v7520_v41, %v2788_v33  ;;  %v7673_v58 = vadd.f32 %v7522_v42, %v3240_v23  ;;  %v2790_v62 = vpop.f32.mrb[21].mxu0  ;;  %v3242_v56 = vpop.f32.mrb[21].mxu1  ;;  %v3565_v46 = vpack.c.bf16 %v3521_v63, %v3517_v39  ;;  %v3520_v0 = vsel %vm3392_vm2, %v3328_v29, %v3456_v32 }
 0x2a5   : > { %4102 = vmatprep.subr.bf16.mxu0 %v7398_v10  ;;  %v2792_v2 = vpop.f32.mrb[22].mxu0  ;;  %v3244_v61 = vpop.f32.mrb[22].mxu1  ;;  %v3332_v8 = vadd.f32 %v7526_v43, %v2790_v62  ;;  %v7679_v35 = vadd.f32 %v7528_v45, %v3242_v56  ;;  %v3518_v3 = vsel %vm3390_vm0, %v3326_v60, %v3454_v1  ;;  %v3515_v10 = vsel %vm3387_vm13, %v7636_v9, %v3451_v59 }
 0x2a6   : > { %vm3395_vm5 = vcmp.gt.f32.partialorder %v7670_v5, 0.0  ;;  %v7684_v54 = vmul.f32 0.2, %v7670_v5  ;;  %v7687_v51 = vmul.f32 0.2, %v7673_v58  ;;  %v7694_v62 = vadd.f32 %v7520_v41, %v2792_v2  ;;  %v2794_v60 = vpop.f32.mrb[23].mxu0 }
 0x2a7   : > { %v7697_v56 = vadd.f32 %v7522_v42, %v3244_v61  ;;  %v3246_v29 = vpop.f32.mrb[23].mxu1  ;;  %v3564_v33 = vpack.c.bf16 %v3520_v0, %v3516_v52  ;;  %v3522_v23 = vsel %vm3394_vm3, %v3330_v25, %v3458_v4  ;;  %vm3397_vm6 = vcmp.gt.f32.partialorder %v7673_v58, 0.0 }
 0x2a8   : > { %4103 = vmatpush1.bf16.msra.mxu0 %v7406_v12  ;;  %v3336_v1 = vadd.f32 %v7526_v43, %v2794_v60  ;;  %v3338_v39 = vadd.f32 %v7528_v45, %v3246_v29  ;;  %v3566_v12 = vpack.c.bf16 %v3522_v23, %v3518_v3  ;;  %v3519_v9 = vsel %vm3391_vm4, %v3327_v53, %v3455_v55 }
 0x2a9   : > { %4104 = vmatprep.subr.bf16.mxu0 %v7414_v13  ;;  %vm3396_vm7 = vcmp.gt.f32.partialorder %v3332_v8, 0.0  ;;  %v3460_v63 = vmul.f32 0.2, %v3332_v8  ;;  %vm3398_vm8 = vcmp.gt.f32.partialorder %v7679_v35, 0.0  ;;  %v3462_v52 = vmul.f32 0.2, %v7679_v35  ;;  %4047 = vmatprep.mubr.bf16.mxu0 %v3564_v33 }
 0x2aa   : > { %vm3399_vm9 = vcmp.gt.f32.partialorder %v7694_v62, 0.0  ;;  %v3463_v25 = vmul.f32 0.2, %v7694_v62  ;;  %vm3400_vm10 = vcmp.gt.f32.partialorder %v3336_v1, 0.0  ;;  %v3464_v4 = vmul.f32 0.2, %v3336_v1  ;;  %4160 = vmatprep.mubr.bf16.mxu1 %v3566_v12 }
 0x2ab   : > { %v2798_v59 = vpop.f32.mrb[24].mxu0  ;;  %v3250_v32 = vpop.f32.mrb[24].mxu1  ;;  %v3465_v13 = vmul.f32 0.2, %v7697_v56  ;;  %v3563_v2 = vpack.c.bf16 %v3519_v9, %v3515_v10  ;;  %4161 = vmatmul.mubr.bf16.vlgmr.msra.gmra.mrb[32].mxu1 %v3565_v46  ;;  %v3466_v3 = vmul.f32 0.2, %v3338_v39 }
 0x2ac   : > { %4105 = vmatpush1.bf16.msra.mxu0 %v7419_v14  ;;  %v7712_v53 = vadd.f32 %v7520_v41, %v2798_v59  ;;  %v7715_v55 = vadd.f32 %v7522_v42, %v3250_v32  ;;  %v2800_v61 = vpop.f32.mrb[25].mxu0  ;;  %v3252_v0 = vpop.f32.mrb[25].mxu1  ;;  %v3528_v46 = vsel %vm3400_vm10, %v3336_v1, %v3464_v4  ;;  %vm3401_vm11 = vcmp.gt.f32.partialorder %v7697_v56, 0.0 }
 0x2ad   : > { %4106 = vmatprep.subr.bf16.mxu0 %v7426_v44  ;;  %v7719_v60 = vadd.f32 %v7526_v43, %v2800_v61  ;;  %v7722_v29 = vadd.f32 %v7528_v45, %v3252_v0  ;;  %v2802_v10 = vpop.f32.mrb[26].mxu0  ;;  %v3254_v14 = vpop.f32.mrb[26].mxu1  ;;  %vm3402_vm12 = vcmp.gt.f32.partialorder %v3338_v39, 0.0  ;;  %4048 = vmatmul.mubr.bf16.gmra.mrb[48].mxu0 %v3563_v2  ;;  %v3524_v1 = vsel %vm3396_vm7, %v3332_v8, %v3460_v63 }
 0x2ae   : > { %v7727_v33 = vmul.f32 0.2, %v7712_v53  ;;  %v7730_v23 = vmul.f32 0.2, %v7715_v55  ;;  %vm3403_vm14 = vcmp.gt.f32.partialorder %v7712_v53, 0.0  ;;  %v7744_v9 = vadd.f32 %v7520_v41, %v2802_v10  ;;  %v2804_v32 = vpop.f32.mrb[27].mxu0 }
 0x2af   : > { %vm3404_vm13 = vcmp.gt.f32.partialorder %v7719_v60, 0.0  ;;  %v7734_v44 = vmul.f32 0.2, %v7719_v60  ;;  %v7737_v12 = vmul.f32 0.2, %v7722_v29  ;;  %vm3406_vm15 = vcmp.gt.f32.partialorder %v7722_v29, 0.0 }
 0x2b0   : > { %4107 = vmatpush1.bf16.msra.mxu0 %v7431_v7  ;;  %v7747_v59 = vadd.f32 %v7522_v42, %v3254_v14  ;;  %v3256_v4 = vpop.f32.mrb[27].mxu1  ;;  %v3568_v2 = vpack.c.bf16 %v3528_v46, %v3524_v1  ;;  %v3526_v61 = vsel %vm3398_vm8, %v7679_v35, %v3462_v52  ;;  %v7753_v8 = vadd.f32 %v7526_v43, %v2804_v32 }
 0x2b1   : > { %v7756_v7 = vadd.f32 %v7528_v45, %v3256_v4  ;;  %4108 = vmatprep.subr.bf16.mxu0 %v7438_v15  ;;  %v3530_v63 = vsel %vm3402_vm12, %v3338_v39, %v3466_v3  ;;  %v3523_v0 = vsel %vm3395_vm5, %v7670_v5, %v7684_v54  ;;  %vm3405_vm0 = vcmp.gt.f32.partialorder %v7715_v55, 0.0 }
 0x2b2   : > { %vm3407_vm1 = vcmp.gt.f32.partialorder %v7744_v9, 0.0  ;;  %v7767_v35 = vmul.f32 0.2, %v7744_v9  ;;  %vm3409_vm2 = vcmp.gt.f32.partialorder %v7747_v59, 0.0  ;;  %v7771_v15 = vmul.f32 0.2, %v7747_v59  ;;  %4057 = vmatprep.mubr.bf16.mxu0 %v3568_v2 }
 0x2b3   : > { %v2808_v10 = vpop.f32.mrb[28].mxu0  ;;  %v3260_v14 = vpop.f32.mrb[28].mxu1  ;;  %vm3408_vm3 = vcmp.gt.f32.partialorder %v7753_v8, 0.0  ;;  %v3472_v39 = vmul.f32 0.2, %v7753_v8  ;;  %vm3410_vm4 = vcmp.gt.f32.partialorder %v7756_v7, 0.0  ;;  %v3570_v54 = vpack.c.bf16 %v3530_v63, %v3526_v61 }
 0x2b4   : > { %v3474_v5 = vmul.f32 0.2, %v7756_v7  ;;  %v3527_v52 = vsel %vm3399_vm9, %v7694_v62, %v3463_v25  ;;  %4109 = vmatpush1.bf16.msra.mxu0 %v7443_v16  ;;  %v3525_v3 = vsel %vm3397_vm6, %v7673_v58, %v7687_v51  ;;  %v3529_v46 = vsel %vm3401_vm11, %v7697_v56, %v3465_v13  ;;  %v2810_v1 = vpop.f32.mrb[29].mxu0  ;;  %v3262_v32 = vpop.f32.mrb[29].mxu1 }
 0x2b5   : > { %v3567_v4 = vpack.c.bf16 %v3527_v52, %v3523_v0  ;;  %v3569_v2 = vpack.c.bf16 %v3529_v46, %v3525_v3  ;;  %4110 = vmatprep.subr.bf16.mxu0 %v7450_v17  ;;  %v3347_v61 = vadd.f32 %v7520_v41, %v2808_v10  ;;  %v7791_v62 = vadd.f32 %v7522_v42, %v3260_v14  ;;  %v2812_v16 = vpop.f32.mrb[30].mxu0  ;;  %v3264_v25 = vpop.f32.mrb[30].mxu1 }
 0x2b6   : > { %4170 = vmatprep.mubr.bf16.mxu1 %v3570_v54  ;;  %v3348_v58 = vadd.f32 %v7526_v43, %v2810_v1  ;;  %v3350_v51 = vadd.f32 %v7528_v45, %v3262_v32  ;;  %v3351_v56 = vadd.f32 %v7520_v41, %v2812_v16  ;;  %v3353_v13 = vadd.f32 %v7522_v42, %v3264_v25  ;;  %v2814_v63 = vpop.f32.mrb[31].mxu0  ;;  %v3266_v17 = vpop.f32.mrb[31].mxu1  ;;  %v8178_v25 = vld [vmem:[#allocation14_spill] sm:$0xff] }
 0x2b7   : > { %4058 = vmatmul.mubr.bf16.gmra.mrb[52].mxu0 %v3567_v4  ;;  %4171 = vmatmul.mubr.bf16.gmra.mrb[36].mxu1 %v3569_v2  ;;  %vm3411_vm8 = vcmp.gt.f32.partialorder %v3347_v61, 0.0  ;;  %v3475_v0 = vmul.f32 0.2, %v3347_v61  ;;  %vm3413_vm9 = vcmp.gt.f32.partialorder %v7791_v62, 0.0  ;;  %v3477_v10 = vmul.f32 0.2, %v7791_v62 }
 0x2b8   : > { %vm3381_vm10 = vcmp.gt.f32.partialorder %v7611_v48, 0.0  ;;  %4111 = vmatpush1.bf16.msra.mxu0 %v7455_v18  ;;  %vm3412_vm12 = vcmp.gt.f32.partialorder %v3348_v58, 0.0  ;;  %v3476_v41 = vmul.f32 0.2, %v3348_v58  ;;  %vm3414_vm5 = vcmp.gt.f32.partialorder %v3350_v51, 0.0 }
 0x2b9   : > { %v3478_v42 = vmul.f32 0.2, %v3350_v51  ;;  %vm3415_vm6 = vcmp.gt.f32.partialorder %v3351_v56, 0.0  ;;  %v3479_v14 = vmul.f32 0.2, %v3351_v56  ;;  %vm3417_vm7 = vcmp.gt.f32.partialorder %v3353_v13, 0.0  ;;  %4112 = vmatprep.subr.bf16.mxu0 %v7462_v19 }
 0x2ba   : > { %v3481_v54 = vmul.f32 0.2, %v3353_v13  ;;  %v3352_v52 = vadd.f32 %v7526_v43, %v2814_v63  ;;  %v3354_v3 = vadd.f32 %v7528_v45, %v3266_v17  ;;  %v3532_v46 = vsel %vm3404_vm13, %v7719_v60, %v7734_v44  ;;  %v6190_v63 = vld [vmem:[%s8132_s7 + $0x58] sm:$0xff]  }
 0x2bb   : > { %v3536_v18 = vsel %vm3408_vm3, %v7753_v8, %v3472_v39  ;;  %v3534_v32 = vsel %vm3406_vm15, %v7722_v29, %v7737_v12  ;;  %v3538_v19 = vsel %vm3410_vm4, %v7756_v7, %v3474_v5  ;;  %v3531_v43 = vsel %vm3403_vm14, %v7712_v53, %v7727_v33  ;;  %v6191_v17 = vld [vmem:[%s8132_s7 + $0x18] sm:$0xff]  }
 0x2bc   : > { %v3572_v1 = vpack.c.bf16 %v3536_v18, %v3532_v46  ;;  %vm3416_vm13 = vcmp.gt.f32.partialorder %v3352_v52, 0.0  ;;  %v3480_v45 = vmul.f32 0.2, %v3352_v52  ;;  %vm3418_vm11 = vcmp.gt.f32.partialorder %v3354_v3, 0.0  ;;  %4113 = vmatpush1.bf16.msra.mxu0 %v7467_v49  ;;  %v3643_v46 = vld [vmem:[%s8131_s6] sm:$0x3] }
 0x2bd   : > { %v3482_v60 = vmul.f32 0.2, %v3354_v3  ;;  %v3574_v44 = vpack.c.bf16 %v3538_v19, %v3534_v32  ;;  %v3535_v29 = vsel %vm3407_vm1, %v7744_v9, %v7767_v35  ;;  %v3533_v12 = vsel %vm3405_vm0, %v7715_v55, %v7730_v23  ;;  %4114 = vmatprep.subr.bf16.mxu0 %v7474_v20  ;;  %v8180_v18 = vld [vmem:[#allocation8_spill] sm:$0xff]  ;;  %v8181_v19 = vld [vmem:[#allocation7_spill] sm:$0xff] }
 0x2be   : > { %4067 = vmatprep.mubr.bf16.mxu0 %v3572_v1  ;;  %v3537_v53 = vsel %vm3409_vm2, %v7747_v59, %v7771_v15  ;;  %v3571_v33 = vpack.c.bf16 %v3535_v29, %v3531_v43  ;;  %v3540_v49 = vsel %vm3412_vm12, %v3348_v58, %v3476_v41  ;;  %v3544_v7 = vsel %vm3416_vm13, %v3352_v52, %v3480_v45  ;;  %v6194_v41 = vld [vmem:[%s8132_s7 + $0x68] sm:$0xff]   ;;  %v6198_v52 = vld [vmem:[%s8132_s7 + $0x78] sm:$0xff]  }
 0x2bf   : > { %v3573_v8 = vpack.c.bf16 %v3537_v53, %v3533_v12  ;;  %4180 = vmatprep.mubr.bf16.mxu1 %v3574_v44  ;;  %v3576_v39 = vpack.c.bf16 %v3544_v7, %v3540_v49  ;;  %v3542_v9 = vsel %vm3414_vm5, %v3350_v51, %v3478_v42  ;;  %v3546_v35 = vsel %vm3418_vm11, %v3354_v3, %v3482_v60  ;;  %v6187_v51 = vld [vmem:[%s8132_s7 + $0x8] sm:$0xff]   ;;  %v6199_v3 = vld [vmem:[%s8132_s7 + $0x38] sm:$0xff]  }
 0x2c0   : > { %v3539_v55 = vsel %vm3411_vm8, %v3347_v61, %v3475_v0  ;;  %vm3386_vm14 = vcmp.gt.f32.partialorder %v7631_v36, 0.0  ;;  %4068 = vmatmul.mubr.bf16.gmra.mrb[56].mxu0 %v3571_v33  ;;  %v3578_v23 = vpack.c.bf16 %v3546_v35, %v3542_v9  ;;  %v3543_v59 = vsel %vm3415_vm6, %v3351_v56, %v3479_v14  ;;  %v6188_v56 = vld [vmem:[%s8132_s7 + $0x50] sm:$0xff]   ;;  %v6192_v0 = vld [vmem:[%s8132_s7 + $0x60] sm:$0xff]   ;;  %v6195_v42 = vld [vmem:[%s8132_s7 + $0x28] sm:$0xff]  }
 0x2c1   : > { %4181 = vmatmul.mubr.bf16.gmra.mrb[40].mxu1 %v3573_v8  ;;  %v3541_v20 = vsel %vm3413_vm9, %v7791_v62, %v3477_v10  ;;  %4115 = vmatpush1.bf16.msra.mxu0 %v7479_v22  ;;  %v3575_v15 = vpack.c.bf16 %v3543_v59, %v3539_v55  ;;  %v3545_v5 = vsel %vm3417_vm7, %v3353_v13, %v3481_v54  ;;  %vm8163_vm15 = vcmp.gt.f32.partialorder %v7586_v38, 0.0  ;;  %v6189_v13 = vld [vmem:[%s8132_s7 + $0x10] sm:$0xff]   ;;  %v6193_v10 = vld [vmem:[%s8132_s7 + $0x20] sm:$0xff]  }
 0x2c2   : > { %4077 = vmatprep.mubr.bf16.mxu0 %v3576_v39  ;;  %v3501_v4 = vsel %vm8163_vm15, %v7586_v38, %v7605_v57  ;;  %4116 = vmatprep.subr.bf16.mxu0 %v7486_v24  ;;  %v3577_v2 = vpack.c.bf16 %v3545_v5, %v3541_v20  ;;  %vm8164_vm0 = vcmp.gt.f32.partialorder %v7597_v27, 0.0  ;;  %vm8165_vm1 = vcmp.gt.f32.partialorder %v7621_v50, 0.0  ;;  %v6196_v14 = vld [vmem:[%s8132_s7 + $0x70] sm:$0xff]  }
 0x2c3   : > { %4190 = vmatprep.mubr.bf16.mxu1 %v3578_v23  ;;  %v3505_v61 = vsel %vm8164_vm0, %v7597_v27, %v7608_v30  ;;  %v3510_v22 = vsel %vm8165_vm1, %v7621_v50, %v7648_v47  ;;  %v3514_v38 = vsel %vm3386_vm14, %v7631_v36, %v7654_v34  ;;  %v3509_v24 = vsel %vm3381_vm10, %v7611_v48, %v7642_v31  ;;  %v8167_v50 = vld [vmem:[#allocation11_spill] sm:$0xff]  ;;  %v8169_v47 = vld [vmem:[#allocation6_spill] sm:$0xff]  ;;  %v8171_v31 = vld [vmem:[#allocation9_spill] sm:$0xff] }
 0x2c4   : > { %v3557_v62 = vpack.c.bf16 %v3505_v61, %v3501_v4  ;;  %vm8166_vm2 = vcmp.gt.f32.partialorder %v7628_v6, 0.0  ;;  %v3562_v57 = vpack.c.bf16 %v3514_v38, %v3510_v22  ;;  %v8168_v36 = vpack.c.bf16 %v7556_v11, %v8167_v50  ;;  %v8170_v48 = vld [vmem:[#allocation10_spill] sm:$0xff]  ;;  %v6197_v54 = vld [vmem:[%s8132_s7 + $0x30] sm:$0xff]  }
 0x2c5   : > { %v3513_v27 = vsel %vm8166_vm2, %v7628_v6, %v7651_v40  ;;  %4117 = vmatpush1.bf16.msra.mxu0 %v7491_v26  ;;  %v8172_v34 = vpack.c.bf16 %v8170_v48, %v8171_v31  ;;  %v8173_v6 = vpack.c.bf16 %v7571_v21, %v7580_v37  ;;  %v8174_v40 = vld [vmem:[#allocation12_spill] sm:$0xff]  ;;  %v8175_v26 = vld [vmem:[#allocation13_spill] sm:$0xff]  ;;  %v6186_v37 = vld [vmem:[%s8132_s7 + $0x48] sm:$0xff]   ;;  %v7946_v1 = vrot.slane %v3643_v46, %v8180_v18 }
 0x2c6   : > { %v3561_v30 = vpack.c.bf16 %v3513_v27, %v3509_v24  ;;  %4118 = vmatprep.subr.bf16.mxu0 %v7498_v28  ;;  %v8176_v16 = vpack.c.bf16 %v8174_v40, %v8175_v26  ;;  %v8177_v28 = vld [vmem:[#allocation15_spill] sm:$0xff]  ;;  %v6184_v11 = vld [vmem:[%s8132_s7 + $0x40] sm:$0xff]   ;;  %v8182_v43 = vsub.s32 1, %v8181_v19 }
 0x2c7   : > { %v8179_v58 = vpack.c.bf16 %v8177_v28, %v8178_v25  ;;  %v6185_v21 = vld [vmem:[%s8132_s7] sm:$0xff]   ;;  %5248 = vmatprep.subr.bf16.mxu1 %v6184_v11 }
 0x2c8   : > { %4078 = vmatmul.mubr.bf16.gmra.mrb[60].mxu0 %v3575_v15  ;;  %5249 = vmatpush3.bf16.msra.mxu1 %v6185_v21  ;;  %v7950_v45 = vrot.slane %v3643_v46, %v8182_v43 }
 0x2c9   : > { %4191 = vmatmul.mubr.bf16.gmra.mrb[44].mxu1 %v3577_v2  ;;  %4120 = vmatprep.mubr.bf16.mxu0 %v8168_v36 }
 0x2ca   : > { %4119 = vmatpush1.bf16.msra.mxu0 %v8169_v47  ;;  %5250 = vmatprep.subr.bf16.mxu1 %v6186_v37 }
 0x2cc   : > { %5251 = vmatpush3.bf16.msra.mxu1 %v6187_v51 }
 0x2cd   : > { %5252 = vmatprep.subr.bf16.mxu1 %v6188_v56 }
 0x2d0   : > { %4121 = vmatmul.mubr.bf16.vlgmr.msra.gmra.mrb[32].mxu0 %v8172_v34  ;;  %5253 = vmatpush3.bf16.msra.mxu1 %v6189_v13 }
 0x2d1   : > { %4130 = vmatprep.mubr.bf16.mxu0 %v8173_v6  ;;  %5254 = vmatprep.subr.bf16.mxu1 %v6190_v63 }
 0x2d4   : > { %5255 = vmatpush3.bf16.msra.mxu1 %v6191_v17 }
 0x2d5   : > { %5256 = vmatprep.subr.bf16.mxu1 %v6192_v0 }
 0x2d8   : > { %4131 = vmatmul.mubr.bf16.gmra.mrb[36].mxu0 %v8176_v16  ;;  %5257 = vmatpush3.bf16.msra.mxu1 %v6193_v10 }
 0x2d9   : > { %4140 = vmatprep.mubr.bf16.mxu0 %v8179_v58  ;;  %5258 = vmatprep.subr.bf16.mxu1 %v6194_v41 }
 0x2dc   : > { %5259 = vmatpush3.bf16.msra.mxu1 %v6195_v42 }
 0x2dd   : > { %5260 = vmatprep.subr.bf16.mxu1 %v6196_v14 }
 0x2e0   : > { %4141 = vmatmul.mubr.bf16.gmra.mrb[40].mxu0 %v3557_v62  ;;  %5261 = vmatpush3.bf16.msra.mxu1 %v6197_v54 }
 0x2e1   : > { %4150 = vmatprep.mubr.bf16.mxu0 %v3562_v57  ;;  %5262 = vmatprep.subr.bf16.mxu1 %v6198_v52 }
 0x2e4   : > { %5263 = vmatpush3.bf16.msra.mxu1 %v6199_v3 }
 0x2e8   : > { %4151 = vmatmul.mubr.bf16.gmra.mrb[44].mxu0 %v3561_v30 }
 0x37e   : > { %v4162_v32 = vpop.f32.mrb[32].mxu1 }
 0x37f   : > { %v4164_v60 = vpop.f32.mrb[33].mxu1 }
 0x380   : > { %v4049_v44 = vpop.f32.mrb[48].mxu0  ;;  %v4166_v29 = vpop.f32.mrb[34].mxu1 }
 0x381   : > { %v4050_v12 = vadd.f32 %v4049_v44, %v7946_v1  ;;  %v4051_v53 = vpop.f32.mrb[49].mxu0  ;;  %v4168_v33 = vpop.f32.mrb[35].mxu1 }
 0x382   : > { %v4052_v8 = vadd.f32 %v4051_v53, %v7950_v45  ;;  %v4053_v49 = vpop.f32.mrb[50].mxu0 }
 0x383   : > { %v4163_v7 = vadd.f32 %v4162_v32, %v4050_v12  ;;  %v4054_v39 = vadd.f32 %v4053_v49, %v7946_v1  ;;  %v4055_v9 = vpop.f32.mrb[51].mxu0 }
 0x384   : > { %v4165_v35 = vadd.f32 %v4164_v60, %v4052_v8  ;;  %v4056_v55 = vadd.f32 %v4055_v9, %v7950_v45 }
 0x385   : > { %v4249_v23 = vmul.f32 0.2, %v4163_v7  ;;  %v4167_v59 = vadd.f32 %v4166_v29, %v4054_v39  ;;  %vm4217_vm3 = vcmp.gt.f32.partialorder %v4163_v7, 0.0 }
 0x386   : > { %v4250_v20 = vmul.f32 0.2, %v4165_v35  ;;  %v4169_v15 = vadd.f32 %v4168_v33, %v4056_v55  ;;  %vm4218_vm4 = vcmp.gt.f32.partialorder %v4165_v35, 0.0 }
 0x387   : > { %vm4219_vm5 = vcmp.gt.f32.partialorder %v4167_v59, 0.0  ;;  %v4251_v5 = vmul.f32 0.2, %v4167_v59  ;;  %v7956_v22 = vsel %vm4217_vm3, %v4163_v7, %v4249_v23 }
 0x388   : > { %vm4220_vm6 = vcmp.gt.f32.partialorder %v4169_v15, 0.0  ;;  %v4252_v4 = vmul.f32 0.2, %v4169_v15  ;;  %v7961_v57 = vsel %vm4218_vm4, %v4165_v35, %v4250_v20 }
 0x389   : > { %v7958_v62 = vsel %vm4219_vm5, %v4167_v59, %v4251_v5 }
 0x38a   : > { %v4059_v2 = vpop.f32.mrb[52].mxu0  ;;  %v4172_v61 = vpop.f32.mrb[36].mxu1  ;;  %v7963_v30 = vsel %vm4220_vm6, %v4169_v15, %v4252_v4  ;;  %v4305_v50 = vpack.c.bf16 %v7958_v62, %v7956_v22 }
 0x38b   : > { %v4060_v38 = vadd.f32 %v4059_v2, %v7946_v1  ;;  %v4061_v24 = vpop.f32.mrb[53].mxu0  ;;  %v4174_v27 = vpop.f32.mrb[37].mxu1  ;;  %v4306_v31 = vpack.c.bf16 %v7963_v30, %v7961_v57 }
 0x38c   : > { %v4062_v36 = vadd.f32 %v4061_v24, %v7950_v45  ;;  %v4063_v47 = vpop.f32.mrb[54].mxu0  ;;  %v4176_v48 = vpop.f32.mrb[38].mxu1 }
 0x38d   : > { %v4173_v34 = vadd.f32 %v4172_v61, %v4060_v38  ;;  %v4064_v6 = vadd.f32 %v4063_v47, %v7946_v1  ;;  %v4065_v40 = vpop.f32.mrb[55].mxu0  ;;  %v4178_v26 = vpop.f32.mrb[39].mxu1 }
 0x38e   : > { %v4175_v16 = vadd.f32 %v4174_v27, %v4062_v36  ;;  %v4066_v28 = vadd.f32 %v4065_v40, %v7950_v45 }
 0x38f   : > { %v4253_v25 = vmul.f32 0.2, %v4173_v34  ;;  %v4177_v58 = vadd.f32 %v4176_v48, %v4064_v6  ;;  %vm4221_vm7 = vcmp.gt.f32.partialorder %v4173_v34, 0.0 }
 0x390   : > { %v4254_v11 = vmul.f32 0.2, %v4175_v16  ;;  %v4179_v21 = vadd.f32 %v4178_v26, %v4066_v28  ;;  %vm4222_vm8 = vcmp.gt.f32.partialorder %v4175_v16, 0.0 }
 0x391   : > { %vm4223_vm9 = vcmp.gt.f32.partialorder %v4177_v58, 0.0  ;;  %v4255_v37 = vmul.f32 0.2, %v4177_v58  ;;  %v7972_v63 = vsel %vm4221_vm7, %v4173_v34, %v4253_v25 }
 0x392   : > { %vm4224_vm10 = vcmp.gt.f32.partialorder %v4179_v21, 0.0  ;;  %v4256_v51 = vmul.f32 0.2, %v4179_v21  ;;  %v7977_v42 = vsel %vm4222_vm8, %v4175_v16, %v4254_v11 }
 0x393   : > { %v4069_v56 = vpop.f32.mrb[56].mxu0  ;;  %v7974_v17 = vsel %vm4223_vm9, %v4177_v58, %v4255_v37 }
 0x394   : > { %v4182_v13 = vpop.f32.mrb[40].mxu1  ;;  %v4070_v0 = vadd.f32 %v4069_v56, %v7946_v1  ;;  %v4071_v10 = vpop.f32.mrb[57].mxu0  ;;  %v7979_v14 = vsel %vm4224_vm10, %v4179_v21, %v4256_v51  ;;  %v4307_v54 = vpack.c.bf16 %v7974_v17, %v7972_v63 }
 0x395   : > { %v4184_v41 = vpop.f32.mrb[41].mxu1  ;;  %v4072_v52 = vadd.f32 %v4071_v10, %v7950_v45  ;;  %v4073_v3 = vpop.f32.mrb[58].mxu0  ;;  %v4308_v32 = vpack.c.bf16 %v7979_v14, %v7977_v42 }
 0x396   : > { %v4186_v46 = vpop.f32.mrb[42].mxu1  ;;  %v4183_v19 = vadd.f32 %v4182_v13, %v4070_v0  ;;  %v4074_v43 = vadd.f32 %v4073_v3, %v7946_v1  ;;  %v4075_v60 = vpop.f32.mrb[59].mxu0 }
 0x397   : > { %v4188_v44 = vpop.f32.mrb[43].mxu1  ;;  %v4185_v29 = vadd.f32 %v4184_v41, %v4072_v52  ;;  %v4076_v12 = vadd.f32 %v4075_v60, %v7950_v45 }
 0x398   : > { %v4257_v53 = vmul.f32 0.2, %v4183_v19  ;;  %v4187_v33 = vadd.f32 %v4186_v46, %v4074_v43  ;;  %vm4225_vm11 = vcmp.gt.f32.partialorder %v4183_v19, 0.0 }
 0x399   : > { %v4258_v8 = vmul.f32 0.2, %v4185_v29  ;;  %v4189_v49 = vadd.f32 %v4188_v44, %v4076_v12  ;;  %vm4226_vm12 = vcmp.gt.f32.partialorder %v4185_v29, 0.0 }
 0x39a   : > { %vm4227_vm13 = vcmp.gt.f32.partialorder %v4187_v33, 0.0  ;;  %v4259_v7 = vmul.f32 0.2, %v4187_v33  ;;  %v7989_v20 = vsel %vm4225_vm11, %v4183_v19, %v4257_v53 }
 0x39b   : > { %vm4228_vm14 = vcmp.gt.f32.partialorder %v4189_v49, 0.0  ;;  %v4260_v39 = vmul.f32 0.2, %v4189_v49  ;;  %v4079_v9 = vpop.f32.mrb[60].mxu0  ;;  %v7994_v61 = vsel %vm4226_vm12, %v4185_v29, %v4258_v8 }
 0x39c   : > { %v4192_v35 = vpop.f32.mrb[44].mxu1  ;;  %v4080_v55 = vadd.f32 %v4079_v9, %v7946_v1  ;;  %v4081_v23 = vpop.f32.mrb[61].mxu0  ;;  %v7991_v15 = vsel %vm4227_vm13, %v4187_v33, %v4259_v7 }
 0x39d   : > { %v4194_v59 = vpop.f32.mrb[45].mxu1  ;;  %v4082_v5 = vadd.f32 %v4081_v23, %v7950_v45  ;;  %v4083_v4 = vpop.f32.mrb[62].mxu0  ;;  %v7996_v38 = vsel %vm4228_vm14, %v4189_v49, %v4260_v39  ;;  %v4309_v24 = vpack.c.bf16 %v7991_v15, %v7989_v20 }
 0x39e   : > { %v4196_v2 = vpop.f32.mrb[46].mxu1  ;;  %v4193_v27 = vadd.f32 %v4192_v35, %v4080_v55  ;;  %v4084_v36 = vadd.f32 %v4083_v4, %v7946_v1  ;;  %v4085_v47 = vpop.f32.mrb[63].mxu0  ;;  %v4310_v34 = vpack.c.bf16 %v7996_v38, %v7994_v61 }
 0x39f   : > { %v4198_v48 = vpop.f32.mrb[47].mxu1  ;;  %v4195_v6 = vadd.f32 %v4194_v59, %v4082_v5  ;;  %v4086_v40 = vadd.f32 %v4085_v47, %v7950_v45 }
 0x3a0   : > { %v4261_v26 = vmul.f32 0.2, %v4193_v27  ;;  %v4197_v16 = vadd.f32 %v4196_v2, %v4084_v36  ;;  %vm4229_vm15 = vcmp.gt.f32.partialorder %v4193_v27, 0.0 }
 0x3a1   : > { %v4262_v28 = vmul.f32 0.2, %v4195_v6  ;;  %v4199_v25 = vadd.f32 %v4198_v48, %v4086_v40  ;;  %vm4230_vm0 = vcmp.gt.f32.partialorder %v4195_v6, 0.0 }
 0x3a2   : > { %vm4231_vm1 = vcmp.gt.f32.partialorder %v4197_v16, 0.0  ;;  %v4263_v58 = vmul.f32 0.2, %v4197_v16  ;;  %v8005_v56 = vsel %vm4229_vm15, %v4193_v27, %v4261_v26 }
 0x3a3   : > { %vm4232_vm2 = vcmp.gt.f32.partialorder %v4199_v25, 0.0  ;;  %v4264_v11 = vmul.f32 0.2, %v4199_v25  ;;  %v4122_v21 = vpop.f32.mrb[32].mxu0  ;;  %v8010_v41 = vsel %vm4230_vm0, %v4195_v6, %v4262_v28 }
 0x3a4   : > { %v5344_v37 = vadd.f32 %v4122_v21, %v7946_v1  ;;  %v4124_v51 = vpop.f32.mrb[33].mxu0  ;;  %v8007_v13 = vsel %vm4231_vm1, %v4197_v16, %v4263_v58 }
 0x3a5   : > { %v5345_v0 = vadd.f32 %v4124_v51, %v7950_v45  ;;  %v4126_v10 = vpop.f32.mrb[34].mxu0  ;;  %v8012_v52 = vsel %vm4232_vm2, %v4199_v25, %v4264_v11  ;;  %v4311_v3 = vpack.c.bf16 %v8007_v13, %v8005_v56 }
 0x3a6   : > { %v4233_v46 = vmul.f32 0.2, %v5344_v37  ;;  %v5346_v19 = vadd.f32 %v4126_v10, %v7946_v1  ;;  %v4128_v43 = vpop.f32.mrb[35].mxu0  ;;  %v4312_v60 = vpack.c.bf16 %v8012_v52, %v8010_v41  ;;  %vm4201_vm3 = vcmp.gt.f32.partialorder %v5344_v37, 0.0 }
 0x3a7   : > { %v4234_v44 = vmul.f32 0.2, %v5345_v0  ;;  %v5347_v29 = vadd.f32 %v4128_v43, %v7950_v45  ;;  %vm4202_vm4 = vcmp.gt.f32.partialorder %v5345_v0, 0.0 }
 0x3a8   : > { %vm4203_vm5 = vcmp.gt.f32.partialorder %v5346_v19, 0.0  ;;  %v4235_v12 = vmul.f32 0.2, %v5346_v19  ;;  %v4265_v33 = vsel %vm4201_vm3, %v5344_v37, %v4233_v46 }
 0x3a9   : > { %vm4204_vm6 = vcmp.gt.f32.partialorder %v5347_v29, 0.0  ;;  %v4236_v53 = vmul.f32 0.2, %v5347_v29  ;;  %v4266_v39 = vsel %vm4202_vm4, %v5345_v0, %v4234_v44 }
 0x3aa   : > { %v4267_v8 = vsel %vm4203_vm5, %v5346_v19, %v4235_v12 }
 0x3ab   : > { %v4297_v49 = vpack.c.bf16 %v4267_v8, %v4265_v33  ;;  %v4132_v7 = vpop.f32.mrb[36].mxu0  ;;  %v4268_v9 = vsel %vm4204_vm6, %v5347_v29, %v4236_v53 }
 0x3ac   : > { %v5348_v35 = vadd.f32 %v4132_v7, %v7946_v1  ;;  %v4134_v55 = vpop.f32.mrb[37].mxu0  ;;  %v4298_v23 = vpack.c.bf16 %v4268_v9, %v4266_v39 }
 0x3ad   : > { %v5349_v59 = vadd.f32 %v4134_v55, %v7950_v45  ;;  %v4136_v5 = vpop.f32.mrb[38].mxu0 }
 0x3ae   : > { %v4237_v4 = vmul.f32 0.2, %v5348_v35  ;;  %v5350_v2 = vadd.f32 %v4136_v5, %v7946_v1  ;;  %v4138_v27 = vpop.f32.mrb[39].mxu0  ;;  %4480 = vmatprep.mubr.bf16.mxu1 %v4298_v23  ;;  %vm4205_vm7 = vcmp.gt.f32.partialorder %v5348_v35, 0.0 }
 0x3af   : > { %v4238_v36 = vmul.f32 0.2, %v5349_v59  ;;  %v5351_v47 = vadd.f32 %v4138_v27, %v7950_v45  ;;  %4481 = vmatmul.mubr.bf16.vlgmr.msra.gmra.mrb[48].mxu1 %v4297_v49  ;;  %vm4206_vm8 = vcmp.gt.f32.partialorder %v5349_v59, 0.0 }
 0x3b0   : > { %vm4207_vm9 = vcmp.gt.f32.partialorder %v5350_v2, 0.0  ;;  %v4239_v48 = vmul.f32 0.2, %v5350_v2  ;;  %v4269_v40 = vsel %vm4205_vm7, %v5348_v35, %v4237_v4 }
 0x3b1   : > { %vm4208_vm10 = vcmp.gt.f32.partialorder %v5351_v47, 0.0  ;;  %v4240_v6 = vmul.f32 0.2, %v5351_v47  ;;  %v4270_v28 = vsel %vm4206_vm8, %v5349_v59, %v4238_v36 }
 0x3b2   : > { %v4271_v26 = vsel %vm4207_vm9, %v5350_v2, %v4239_v48 }
 0x3b3   : > { %v4142_v16 = vpop.f32.mrb[40].mxu0  ;;  %v4272_v25 = vsel %vm4208_vm10, %v5351_v47, %v4240_v6  ;;  %v4299_v58 = vpack.c.bf16 %v4271_v26, %v4269_v40 }
 0x3b4   : > { %v5352_v11 = vadd.f32 %v4142_v16, %v7946_v1  ;;  %v4144_v21 = vpop.f32.mrb[41].mxu0  ;;  %v4300_v37 = vpack.c.bf16 %v4272_v25, %v4270_v28 }
 0x3b5   : > { %v5353_v51 = vadd.f32 %v4144_v21, %v7950_v45  ;;  %v4146_v0 = vpop.f32.mrb[42].mxu0 }
 0x3b6   : > { %v4241_v10 = vmul.f32 0.2, %v5352_v11  ;;  %v5354_v46 = vadd.f32 %v4146_v0, %v7946_v1  ;;  %v4148_v19 = vpop.f32.mrb[43].mxu0  ;;  %4488 = vmatprep.mubr.bf16.mxu1 %v4300_v37  ;;  %vm4209_vm11 = vcmp.gt.f32.partialorder %v5352_v11, 0.0 }
 0x3b7   : > { %v4242_v43 = vmul.f32 0.2, %v5353_v51  ;;  %v5355_v44 = vadd.f32 %v4148_v19, %v7950_v45  ;;  %4489 = vmatmul.mubr.bf16.gmra.mrb[52].mxu1 %v4299_v58  ;;  %vm4210_vm12 = vcmp.gt.f32.partialorder %v5353_v51, 0.0 }
 0x3b8   : > { %vm4211_vm13 = vcmp.gt.f32.partialorder %v5354_v46, 0.0  ;;  %v4243_v29 = vmul.f32 0.2, %v5354_v46  ;;  %v4273_v53 = vsel %vm4209_vm11, %v5352_v11, %v4241_v10 }
 0x3b9   : > { %vm4212_vm14 = vcmp.gt.f32.partialorder %v5355_v44, 0.0  ;;  %v4244_v12 = vmul.f32 0.2, %v5355_v44  ;;  %v4274_v49 = vsel %vm4210_vm12, %v5353_v51, %v4242_v43 }
 0x3ba   : > { %v4275_v33 = vsel %vm4211_vm13, %v5354_v46, %v4243_v29 }
 0x3bb   : > { %v4152_v8 = vpop.f32.mrb[44].mxu0  ;;  %v4276_v7 = vsel %vm4212_vm14, %v5355_v44, %v4244_v12  ;;  %v4301_v39 = vpack.c.bf16 %v4275_v33, %v4273_v53 }
 0x3bc   : > { %v5356_v9 = vadd.f32 %v4152_v8, %v7946_v1  ;;  %v4154_v35 = vpop.f32.mrb[45].mxu0  ;;  %v4302_v55 = vpack.c.bf16 %v4276_v7, %v4274_v49 }
 0x3bd   : > { %v5357_v23 = vadd.f32 %v4154_v35, %v7950_v45  ;;  %v4156_v59 = vpop.f32.mrb[46].mxu0 }
 0x3be   : > { %v4245_v5 = vmul.f32 0.2, %v5356_v9  ;;  %v5358_v4 = vadd.f32 %v4156_v59, %v7946_v1  ;;  %v4158_v2 = vpop.f32.mrb[47].mxu0  ;;  %4496 = vmatprep.mubr.bf16.mxu1 %v4302_v55  ;;  %vm4213_vm15 = vcmp.gt.f32.partialorder %v5356_v9, 0.0 }
 0x3bf   : > { %v4246_v27 = vmul.f32 0.2, %v5357_v23  ;;  %v5359_v36 = vadd.f32 %v4158_v2, %v7950_v45  ;;  %4497 = vmatmul.mubr.bf16.gmra.mrb[56].mxu1 %v4301_v39  ;;  %vm4214_vm0 = vcmp.gt.f32.partialorder %v5357_v23, 0.0  ;;  %v8059_v45 = vld [vmem:[%s8133_s8] ss:$0 sm:$0xff] }
 0x3c0   : > { %vm4215_vm1 = vcmp.gt.f32.partialorder %v5358_v4, 0.0  ;;  %v4247_v47 = vmul.f32 0.2, %v5358_v4  ;;  %v4277_v6 = vsel %vm4213_vm15, %v5356_v9, %v4245_v5 }
 0x3c1   : > { %vm4216_vm2 = vcmp.gt.f32.partialorder %v5359_v36, 0.0  ;;  %v4248_v48 = vmul.f32 0.2, %v5359_v36  ;;  %v4278_v26 = vsel %vm4214_vm0, %v5357_v23, %v4246_v27 }
 0x3c2   : > { %v4279_v40 = vsel %vm4215_vm1, %v5358_v4, %v4247_v47 }
 0x3c3   : > { %v4280_v16 = vsel %vm4216_vm2, %v5359_v36, %v4248_v48  ;;  %v4303_v28 = vpack.c.bf16 %v4279_v40, %v4277_v6 }
 0x3c4   : > { %v4304_v25 = vpack.c.bf16 %v4280_v16, %v4278_v26 }
 0x3c6   : > { %4504 = vmatprep.mubr.bf16.mxu1 %v4304_v25 }
 0x3c7   : > { %4505 = vmatmul.mubr.bf16.gmra.mrb[60].mxu1 %v4303_v28 }
 0x3c8   : > { %4512 = vmatprep.mubr.bf16.mxu1 %v4306_v31 }
 0x3cf   : > { %4513 = vmatmul.mubr.bf16.gmra.mrb[64].mxu1 %v4305_v50 }
 0x3d0   : > { %4520 = vmatprep.mubr.bf16.mxu1 %v4308_v32 }
 0x3d7   : > { %4521 = vmatmul.mubr.bf16.gmra.mrb[68].mxu1 %v4307_v54 }
 0x3d8   : > { %4528 = vmatprep.mubr.bf16.mxu1 %v4310_v34 }
 0x3df   : > { %4529 = vmatmul.mubr.bf16.gmra.mrb[72].mxu1 %v4309_v24 }
 0x3e0   : > { %4536 = vmatprep.mubr.bf16.mxu1 %v4312_v60 }
 0x3e7   : > { %4537 = vmatmul.mubr.bf16.gmra.mrb[76].mxu1 %v4311_v3 }
 0x482   : > { %v5264_v1 = vpop.f32.mrb[48].mxu1 }
 0x483   : > { %v5265_v22 = vpop.f32.mrb[49].mxu1 }
 0x484   : > { %v5266_v62 = vadd.f32 %v5265_v22, %v5264_v1  ;;  %v5267_v57 = vpop.f32.mrb[50].mxu1 }
 0x485   : > { %v5268_v30 = vpop.f32.mrb[51].mxu1 }
 0x486   : > { %v4483_v50 = vadd.f32 %v5266_v62, %v8059_v45  ;;  %v5269_v31 = vadd.f32 %v5268_v30, %v5267_v57 }
 0x488   : > { %v4486_v63 = vadd.f32 %v5269_v31, %v8059_v45  ;;  %vm4545_vm3 = vcmp.gt.f32.partialorder %v4483_v50, 0.0  ;;  %v4561_v17 = vmul.f32 0.2, %v4483_v50 }
 0x48a   : > { %v4562_v42 = vmul.f32 0.2, %v4486_v63  ;;  %v5270_v14 = vpop.f32.mrb[52].mxu1  ;;  %v4577_v54 = vsel %vm4545_vm3, %v4483_v50, %v4561_v17  ;;  %vm4546_vm4 = vcmp.gt.f32.partialorder %v4486_v63, 0.0 }
 0x48b   : > { %v5271_v32 = vpop.f32.mrb[53].mxu1  ;;  %4593 = vxpose.xlu0.b32.start [1/16] %v4577_v54, 128 }
 0x48c   : > { %v5272_v20 = vadd.f32 %v5271_v32, %v5270_v14  ;;  %v5273_v15 = vpop.f32.mrb[54].mxu1  ;;  %v4578_v34 = vsel %vm4546_vm4, %v4486_v63, %v4562_v42 }
 0x48d   : > { %v5274_v61 = vpop.f32.mrb[55].mxu1 }
 0x48e   : > { %v4491_v38 = vadd.f32 %v5272_v20, %v8059_v45  ;;  %v5275_v24 = vadd.f32 %v5274_v61, %v5273_v15 }
 0x48f   : > { %4594 = vxpose.xlu0.b32.cont [2/16] %v4578_v34, 128 }
 0x490   : > { %v4563_v56 = vmul.f32 0.2, %v4491_v38  ;;  %v4494_v13 = vadd.f32 %v5275_v24, %v8059_v45  ;;  %vm4547_vm5 = vcmp.gt.f32.partialorder %v4491_v38, 0.0 }
 0x492   : > { %v4564_v41 = vmul.f32 0.2, %v4494_v13  ;;  %v5276_v52 = vpop.f32.mrb[56].mxu1  ;;  %v4579_v3 = vsel %vm4547_vm5, %v4491_v38, %v4563_v56  ;;  %vm4548_vm6 = vcmp.gt.f32.partialorder %v4494_v13, 0.0 }
 0x493   : > { %v5277_v60 = vpop.f32.mrb[57].mxu1  ;;  %4595 = vxpose.xlu0.b32.cont [3/16] %v4579_v3, 128 }
 0x494   : > { %v5278_v58 = vadd.f32 %v5277_v60, %v5276_v52  ;;  %v5279_v11 = vpop.f32.mrb[58].mxu1  ;;  %v4580_v0 = vsel %vm4548_vm6, %v4494_v13, %v4564_v41 }
 0x495   : > { %v5280_v21 = vpop.f32.mrb[59].mxu1 }
 0x496   : > { %v4499_v37 = vadd.f32 %v5278_v58, %v8059_v45  ;;  %v5281_v51 = vadd.f32 %v5280_v21, %v5279_v11 }
 0x497   : > { %4596 = vxpose.xlu0.b32.cont [4/16] %v4580_v0, 128 }
 0x498   : > { %v4565_v10 = vmul.f32 0.2, %v4499_v37  ;;  %v4502_v46 = vadd.f32 %v5281_v51, %v8059_v45  ;;  %vm4549_vm7 = vcmp.gt.f32.partialorder %v4499_v37, 0.0 }
 0x49a   : > { %v4566_v19 = vmul.f32 0.2, %v4502_v46  ;;  %v5282_v43 = vpop.f32.mrb[60].mxu1  ;;  %v4581_v44 = vsel %vm4549_vm7, %v4499_v37, %v4565_v10  ;;  %vm4550_vm8 = vcmp.gt.f32.partialorder %v4502_v46, 0.0 }
 0x49b   : > { %v5283_v29 = vpop.f32.mrb[61].mxu1  ;;  %4597 = vxpose.xlu0.b32.cont [5/16] %v4581_v44, 128 }
 0x49c   : > { %v5284_v12 = vadd.f32 %v5283_v29, %v5282_v43  ;;  %v5285_v53 = vpop.f32.mrb[62].mxu1  ;;  %v4582_v7 = vsel %vm4550_vm8, %v4502_v46, %v4566_v19  ;;  %v4644_v43 = vpop.permute.xlu1 %4643 }
 0x49d   : > { %v5286_v33 = vpop.f32.mrb[63].mxu1 }
 0x49e   : > { %v4507_v8 = vadd.f32 %v5284_v12, %v8059_v45  ;;  %v5287_v49 = vadd.f32 %v5286_v33, %v5285_v53 }
 0x49f   : > { %4598 = vxpose.xlu0.b32.cont [6/16] %v4582_v7, 128 }
 0x4a0   : > { %v4567_v39 = vmul.f32 0.2, %v4507_v8  ;;  %v4510_v9 = vadd.f32 %v5287_v49, %v8059_v45  ;;  %vm4551_vm9 = vcmp.gt.f32.partialorder %v4507_v8, 0.0  ;;  %v4649_v44 = vpop.permute.xlu1 %4648 }
 0x4a2   : > { %v4568_v35 = vmul.f32 0.2, %v4510_v9  ;;  %v5288_v55 = vpop.f32.mrb[64].mxu1  ;;  %v4583_v23 = vsel %vm4551_vm9, %v4507_v8, %v4567_v39  ;;  %vm4552_vm10 = vcmp.gt.f32.partialorder %v4510_v9, 0.0 }
 0x4a3   : > { %v5289_v59 = vpop.f32.mrb[65].mxu1  ;;  %4599 = vxpose.xlu0.b32.cont [7/16] %v4583_v23, 128 }
 0x4a4   : > { %v5290_v5 = vadd.f32 %v5289_v59, %v5288_v55  ;;  %v5291_v4 = vpop.f32.mrb[66].mxu1  ;;  %v4584_v47 = vsel %vm4552_vm10, %v4510_v9, %v4568_v35  ;;  %v4654_v29 = vpop.permute.xlu1 %4653 }
 0x4a5   : > { %v5292_v2 = vpop.f32.mrb[67].mxu1 }
 0x4a6   : > { %v4515_v27 = vadd.f32 %v5290_v5, %v8059_v45  ;;  %v5293_v36 = vadd.f32 %v5292_v2, %v5291_v4 }
 0x4a7   : > { %4600 = vxpose.xlu0.b32.cont [8/16] %v4584_v47, 128 }
 0x4a8   : > { %v4569_v48 = vmul.f32 0.2, %v4515_v27  ;;  %v4518_v6 = vadd.f32 %v5293_v36, %v8059_v45  ;;  %vm4553_vm11 = vcmp.gt.f32.partialorder %v4515_v27, 0.0  ;;  %v4659_v12 = vpop.permute.xlu1 %4658 }
 0x4aa   : > { %v4570_v40 = vmul.f32 0.2, %v4518_v6  ;;  %v5294_v26 = vpop.f32.mrb[68].mxu1  ;;  %v4585_v16 = vsel %vm4553_vm11, %v4515_v27, %v4569_v48  ;;  %vm4554_vm12 = vcmp.gt.f32.partialorder %v4518_v6, 0.0 }
 0x4ab   : > { %v5295_v28 = vpop.f32.mrb[69].mxu1  ;;  %4601 = vxpose.xlu0.b32.cont [9/16] %v4585_v16, 128 }
 0x4ac   : > { %v5296_v25 = vadd.f32 %v5295_v28, %v5294_v26  ;;  %v5297_v1 = vpop.f32.mrb[70].mxu1  ;;  %v4586_v30 = vsel %vm4554_vm12, %v4518_v6, %v4570_v40  ;;  %v4664_v53 = vpop.permute.xlu1 %4663 }
 0x4ad   : > { %v5298_v22 = vpop.f32.mrb[71].mxu1 }
 0x4ae   : > { %v4523_v62 = vadd.f32 %v5296_v25, %v8059_v45  ;;  %v5299_v57 = vadd.f32 %v5298_v22, %v5297_v1 }
 0x4af   : > { %4602 = vxpose.xlu0.b32.cont [10/16] %v4586_v30, 128 }
 0x4b0   : > { %v4571_v50 = vmul.f32 0.2, %v4523_v62  ;;  %v4526_v31 = vadd.f32 %v5299_v57, %v8059_v45  ;;  %vm4555_vm13 = vcmp.gt.f32.partialorder %v4523_v62, 0.0  ;;  %v4669_v33 = vpop.permute.xlu1 %4668 }
 0x4b2   : > { %v4572_v63 = vmul.f32 0.2, %v4526_v31  ;;  %v5300_v17 = vpop.f32.mrb[72].mxu1  ;;  %v4587_v42 = vsel %vm4555_vm13, %v4523_v62, %v4571_v50  ;;  %vm4556_vm14 = vcmp.gt.f32.partialorder %v4526_v31, 0.0 }
 0x4b3   : > { %v5301_v14 = vpop.f32.mrb[73].mxu1  ;;  %4603 = vxpose.xlu0.b32.cont [11/16] %v4587_v42, 128 }
 0x4b4   : > { %v5302_v54 = vadd.f32 %v5301_v14, %v5300_v17  ;;  %v5303_v32 = vpop.f32.mrb[74].mxu1  ;;  %v4588_v38 = vsel %vm4556_vm14, %v4526_v31, %v4572_v63  ;;  %v4674_v7 = vpop.permute.xlu1 %4673 }
 0x4b5   : > { %v5304_v20 = vpop.f32.mrb[75].mxu1 }
 0x4b6   : > { %v4531_v15 = vadd.f32 %v5302_v54, %v8059_v45  ;;  %v5305_v61 = vadd.f32 %v5304_v20, %v5303_v32 }
 0x4b7   : > { %4604 = vxpose.xlu0.b32.cont [12/16] %v4588_v38, 128 }
 0x4b8   : > { %v4573_v24 = vmul.f32 0.2, %v4531_v15  ;;  %v4534_v34 = vadd.f32 %v5305_v61, %v8059_v45  ;;  %vm4557_vm15 = vcmp.gt.f32.partialorder %v4531_v15, 0.0  ;;  %v4679_v9 = vpop.permute.xlu1 %4678 }
 0x4ba   : > { %v4574_v56 = vmul.f32 0.2, %v4534_v34  ;;  %v5306_v13 = vpop.f32.mrb[76].mxu1  ;;  %v4589_v41 = vsel %vm4557_vm15, %v4531_v15, %v4573_v24  ;;  %vm4558_vm0 = vcmp.gt.f32.partialorder %v4534_v34, 0.0 }
 0x4bb   : > { %4605 = vxpose.xlu0.b32.cont [13/16] %v4589_v41, 128  ;;  %v5307_v52 = vpop.f32.mrb[77].mxu1 }
 0x4bc   : > { %v5308_v3 = vadd.f32 %v5307_v52, %v5306_v13  ;;  %v5309_v60 = vpop.f32.mrb[78].mxu1  ;;  %v4590_v37 = vsel %vm4558_vm0, %v4534_v34, %v4574_v56  ;;  %v4684_v55 = vpop.permute.xlu1 %4683 }
 0x4bd   : > { %v5310_v58 = vpop.f32.mrb[79].mxu1 }
 0x4be   : > { %v4539_v11 = vadd.f32 %v5308_v3, %v8059_v45  ;;  %v5311_v21 = vadd.f32 %v5310_v58, %v5309_v60 }
 0x4bf   : > { %4606 = vxpose.xlu0.b32.cont [14/16] %v4590_v37, 128 }
 0x4c0   : > { %v4575_v51 = vmul.f32 0.2, %v4539_v11  ;;  %v4542_v0 = vadd.f32 %v5311_v21, %v8059_v45  ;;  %vm4559_vm1 = vcmp.gt.f32.partialorder %v4539_v11, 0.0  ;;  %v4689_v59 = vpop.permute.xlu1 %4688 }
 0x4c2   : > { %v4576_v10 = vmul.f32 0.2, %v4542_v0  ;;  %v4591_v46 = vsel %vm4559_vm1, %v4539_v11, %v4575_v51  ;;  %vm4560_vm2 = vcmp.gt.f32.partialorder %v4542_v0, 0.0 }
 0x4c3   : > { %4607 = vxpose.xlu0.b32.cont [15/16] %v4591_v46, 128 }
 0x4c4   : > { %v4592_v19 = vsel %vm4560_vm2, %v4542_v0, %v4576_v10  ;;  %v4694_v2 = vpop.permute.xlu1 %4693 }
 0x4c7   : > { %4608 = vxpose.xlu0.b32.end [16/16] %v4592_v19, 128 }
 0x4c8   : > { %v4699_v26 = vpop.permute.xlu1 %4698 }
 0x4cc   : > { %v4704_v50 = vpop.permute.xlu1 %4703 }
 0x4d0   : > { %v4709_v20 = vpop.permute.xlu1 %4708 }
 0x4d4   : > { %v4714_v52 = vpop.permute.xlu1 %4713 }
 0x4d8   : > { %v4719_v51 = vpop.permute.xlu1 %4718 }
 0x50b   : > { %v4609_v8 = vpop.trf.xlu0 }
 0x50c   : > { %v4721_v47 = vmul.f32 %v4644_v43, %v4609_v8 }
 0x50f   : > { %v4610_v49 = vpop.trf.xlu0 }
 0x510   : > { %v4722_v27 = vmul.f32 %v4649_v44, %v4610_v49 }
 0x512   : > { %v4737_v6 = vadd.f32 %v4722_v27, %v4721_v47 }
 0x513   : > { %v4611_v39 = vpop.trf.xlu0 }
 0x514   : > { %v4723_v48 = vmul.f32 %v4654_v29, %v4611_v39 }
 0x516   : > { %v4738_v28 = vadd.f32 %v4737_v6, %v4723_v48 }
 0x517   : > { %v4612_v35 = vpop.trf.xlu0 }
 0x518   : > { %v4724_v40 = vmul.f32 %v4659_v12, %v4612_v35 }
 0x51a   : > { %v4739_v1 = vadd.f32 %v4738_v28, %v4724_v40 }
 0x51b   : > { %v4613_v45 = vpop.trf.xlu0 }
 0x51c   : > { %v4725_v25 = vmul.f32 %v4664_v53, %v4613_v45  ;;  %v4762_v53 = vpop.permute.xlu1 %4761 }
 0x51d   : > { %v4767_v8 = vrot.slane %v4762_v53, %v8180_v18 }
 0x51e   : > { %v4740_v57 = vadd.f32 %v4739_v1, %v4725_v25 }
 0x51f   : > { %v4614_v23 = vpop.trf.xlu0 }
 0x520   : > { %v4726_v22 = vmul.f32 %v4669_v33, %v4614_v23 }
 0x522   : > { %v4741_v31 = vadd.f32 %v4740_v57, %v4726_v22 }
 0x523   : > { %v4615_v5 = vpop.trf.xlu0 }
 0x524   : > { %v4727_v30 = vmul.f32 %v4674_v7, %v4615_v5 }
 0x526   : > { %v4742_v42 = vadd.f32 %v4741_v31, %v4727_v30 }
 0x527   : > { %v4616_v4 = vpop.trf.xlu0 }
 0x528   : > { %v4728_v63 = vmul.f32 %v4679_v9, %v4616_v4 }
 0x52a   : > { %v4743_v54 = vadd.f32 %v4742_v42, %v4728_v63 }
 0x52b   : > { %v4617_v36 = vpop.trf.xlu0 }
 0x52c   : > { %v4729_v14 = vmul.f32 %v4684_v55, %v4617_v36 }
 0x52e   : > { %v4744_v61 = vadd.f32 %v4743_v54, %v4729_v14 }
 0x52f   : > { %v4618_v16 = vpop.trf.xlu0 }
 0x530   : > { %v4730_v32 = vmul.f32 %v4689_v59, %v4618_v16 }
 0x532   : > { %v4745_v24 = vadd.f32 %v4744_v61, %v4730_v32 }
 0x533   : > { %v4619_v62 = vpop.trf.xlu0 }
 0x534   : > { %v4731_v38 = vmul.f32 %v4694_v2, %v4619_v62 }
 0x536   : > { %v4746_v13 = vadd.f32 %v4745_v24, %v4731_v38 }
 0x537   : > { %v4620_v17 = vpop.trf.xlu0 }
 0x538   : > { %v4732_v34 = vmul.f32 %v4699_v26, %v4620_v17 }
 0x53a   : > { %v4747_v3 = vadd.f32 %v4746_v13, %v4732_v34 }
 0x53b   : > { %v4621_v15 = vpop.trf.xlu0 }
 0x53c   : > { %v4733_v41 = vmul.f32 %v4704_v50, %v4621_v15 }
 0x53e   : > { %v4748_v11 = vadd.f32 %v4747_v3, %v4733_v41 }
 0x53f   : > { %v4622_v56 = vpop.trf.xlu0 }
 0x540   : > { %v4734_v60 = vmul.f32 %v4709_v20, %v4622_v56 }
 0x542   : > { %v4749_v37 = vadd.f32 %v4748_v11, %v4734_v60 }
 0x543   : > { %v4623_v58 = vpop.trf.xlu0 }
 0x544   : > { %v4735_v21 = vmul.f32 %v4714_v52, %v4623_v58 }
 0x546   : > { %v4750_v10 = vadd.f32 %v4749_v37, %v4735_v21 }
 0x547   : > { %v4624_v0 = vpop.trf.xlu0 }
 0x548   : > { %v4736_v46 = vmul.f32 %v4719_v51, %v4624_v0 }
 0x54a   : > { %v4751_v19 = vadd.f32 %v4750_v10, %v4736_v46 }
 0x54c   : > { %v4752_v43 = vrot.slane %v4751_v19, 4 }
 0x54e   : > { %v4753_v44 = vadd.f32 %v4752_v43, %v4751_v19 }
 0x550   : > { %v4754_v29 = vrot.slane %v4753_v44, 2 }
 0x552   : > { %v4755_v12 = vadd.f32 %v4754_v29, %v4753_v44 }
 0x554   : > { %v4756_v33 = vrot.slane %v4755_v12, 1 }
 0x556   : > { %v4757_v49 = vadd.f32 %v4756_v33, %v4755_v12 }
 0x558   : > { %v4768_v7 = vadd.f32 %v4767_v8, %v4757_v49 }
 0x55a   : > { %4769 = vst [vmem:[%s399_s1] sm:$0x1] %v4768_v7 }
 0x55b   : > { %6213 = shalt.err (!%p6210_p3)
}
 0x55c   : > { %s6214_s30 = scalar_lea.hbm %s8083_s13, 16  ;;  %s6218_s1 = scalar_lea.hbm %s8136_s11, 32 }
 0x55d   : > { %p6215_p4 = scmp.ne.s32.totalorder %s8083_s13, %s6214_s30  ;;  %p6219_p9 = scmp.lt.u32.totalorder %s8083_s13, %s8136_s11 }
 0x55e   : > { %p6220_p10 = scmp.lt.u32.totalorder %s6218_s1, %s6214_s30  ;;  %p6222_p12 = scmp.lt.u32.totalorder %s6214_s30, %s8083_s13 }
 0x55f   : > { %p6216_p7 = pnand %p6215_p4, %p6365_p5 }
 0x560   : > { %p6221_p11 = por %p6220_p10, %p6219_p9 }
 0x561   : > { %p6217_p8 = pneg %p6216_p7 }
 0x562   : > { %p6223_p13 = por %p6222_p12, %p6221_p11 }
 0x564   : > { %p6224_p0 = pnand %p6223_p13, %p6217_p8 }
 0x566   : > { %6227 = shalt.err (!%p6224_p0)
}
 0x567   : > { %5665 = dma.vmem_to_hbm [thread:$0]  (%p6365_p5), %s8085_s25, 16, %s8083_s13, %s4771_s15  }
 0x568 PF: > { %p5671_p1 = scmp.ge.s32.totalorder %s6262_s22, 2  ;;  %s4795_s17 = sand.u32 1, %s6250_s19  }
 0x569   : > { %s4796_s14 = scalar_lea.sflag [#allocation4], %s4795_s17 }
 0x56a   : > { %p5668_p2 = pnand %p5671_p1, %p6369_p6 }
 0x56c   : > { %6245 = dma.done.wait (!%p5668_p2), %s4796_s14, 16  }
 0x56d   : > { %6247 = vsyncadd (!%p5668_p2), %s4796_s14, 4294967280  ;;  %p23_p3 = scmp.ge.s32.totalorder %s6353_s24, 4   ;;  %s8183_s19 = smov %s6254_s20 }
 0x56e   : > { %s8184_s20 = smov %s6258_s21  ;;  %s8185_s21 = smov %s6363_s27 }
 0x56f   : > { %s8186_s22 = smov %s6353_s24  ;;  %25 = sbr.rel (!%p23_p3) target bundleno = 6 (0x6), region = 102 }
 0x576   :  { %4800 = vsyncpa [#allocation4], 1 }
 0x577   :  { %4802 = vsyncpa [#allocation4 + $0x1], 1 }

</bundles_post_ra>
